<compile_context>
chip_gen: v7x
topology: tpu7x:2x2x1
jax: 0.10.0
libtpu: 0.0.40
codegen_flags: <defaults>
</compile_context>

<pallas_src>
import functools

import jax
import jax.numpy as jnp
from jax.experimental import pallas as pl
from jax.experimental.pallas import tpu as pltpu


# -----------------------------------------------------------------------------
# Fused Pallas kernel: one grid step == one batch element, everything in VMEM.
# -----------------------------------------------------------------------------
def _dual_attention_kernel(
    x1_ref, x2_ref,
    w1_ref, b1_ref,      # stream-1 [q|k|v] weights (3,E,E) bf16, biases (3,1,E) f32
    w2_ref, b2_ref,      # stream-2 [q|k|v]
    wo1_ref, bo1_ref,    # out1 proj per-head (H,D,E) bf16, bias (1,E) f32
    wo2_ref, bo2_ref,    # out2 proj per-head (H,D,E) bf16, bias (1,E) f32
    o1_ref, o2_ref,
    *, num_heads,
):
    x1 = x1_ref[0]                                    # (S1, E) bf16
    x2 = x2_ref[0]                                    # (S2, E) bf16
    E = x1.shape[-1]
    D = E // num_heads

    def proj(x, w_ref, b_ref, idx):
        # bf16 x bf16 MXU matmul with f32 accumulation; cast back to bf16 so
        # the attention matmuls also run at full bf16 MXU rate.
        y = jnp.dot(x, w_ref[idx], preferred_element_type=jnp.float32) + b_ref[idx]
        return y.astype(jnp.bfloat16)

    # scaling is already folded into the q projection weights/bias.
    q1 = proj(x1, w1_ref, b1_ref, 0)
    k1 = proj(x1, w1_ref, b1_ref, 1)
    v1 = proj(x1, w1_ref, b1_ref, 2)
    q2 = proj(x2, w2_ref, b2_ref, 0)
    k2 = proj(x2, w2_ref, b2_ref, 1)
    v2 = proj(x2, w2_ref, b2_ref, 2)

    def cross_attn_out(q, k, v, wo_ref, bo_ref):
        # q:(Sq,E), k/v:(Sk,E) bf16.  Returns (Sq,E) f32 equal to
        #   concat_h(softmax(Qh Kh^T * scaling) Vh) @ Wo + bo
        # computed as a per-head accumulated sum (no concat / lane relayout).
        acc = jnp.zeros((q.shape[0], E), dtype=jnp.float32)
        for h in range(num_heads):                    # static unroll (small H)
            sl = slice(h * D, (h + 1) * D)            # lane-aligned when D % 128 == 0
            qh, kh, vh = q[:, sl], k[:, sl], v[:, sl]
            # scores without materializing kh.T
            s = jax.lax.dot_general(
                qh, kh, (((1,), (1,)), ((), ())),
                preferred_element_type=jnp.float32)   # (Sq, Sk)
            m = jnp.max(s, axis=-1, keepdims=True)
            e = jnp.exp(s - m)                        # f32 exp (safe on v5e)
            inv = pl.reciprocal(jnp.sum(e, axis=-1, keepdims=True),
                                approx=True)          # EUP
            pv = jnp.dot(e.astype(jnp.bfloat16), vh,
                         preferred_element_type=jnp.float32) * inv      # (Sq, D)
            acc = acc + jnp.dot(pv.astype(jnp.bfloat16), wo_ref[h],
                                preferred_element_type=jnp.float32)     # (Sq, E)
        return acc + bo_ref[...]

    # attention_type == 'cross', bidirectional == True
    o1_ref[0] = cross_attn_out(q1, k2, v2, wo1_ref, bo1_ref)   # x1 attends to x2
    o2_ref[0] = cross_attn_out(q2, k1, v1, wo2_ref, bo2_ref)   # x2 attends to x1


# -----------------------------------------------------------------------------
# One-time weight prep (hoisted out of the forward path).
# -----------------------------------------------------------------------------
def prepare_params(params, embed_dim, num_heads):
    """Folds `scaling` into q proj, stacks q/k/v weights on a leading axis,
    reshapes out-proj weights per head, and casts weights to bf16."""
    E, H = embed_dim, num_heads
    D = E // H
    scaling = float(D) ** -0.5

    def stack_qkv(qn, kn, vn):
        w = jnp.stack([params[qn + "_w"] * scaling,
                       params[kn + "_w"],
                       params[vn + "_w"]], axis=0).astype(jnp.bfloat16)   # (3,E,E)
        b = jnp.stack([params[qn + "_b"] * scaling,
                       params[kn + "_b"],
                       params[vn + "_b"]], axis=0).reshape(3, 1, E)       # (3,1,E)
        return w, b.astype(jnp.float32)

    w1, b1 = stack_qkv("q1", "k1", "v1")
    w2, b2 = stack_qkv("q2", "k2", "v2")
    wo1 = params["out1_w"].reshape(H, D, E).astype(jnp.bfloat16)          # (H,D,E)
    wo2 = params["out2_w"].reshape(H, D, E).astype(jnp.bfloat16)
    bo1 = params["out1_b"].reshape(1, E).astype(jnp.float32)
    bo2 = params["out2_b"].reshape(1, E).astype(jnp.float32)
    return dict(w1=w1, b1=b1, w2=w2, b2=b2, wo1=wo1, bo1=bo1, wo2=wo2, bo2=bo2)


# -----------------------------------------------------------------------------
# Forward wrapper
# -----------------------------------------------------------------------------
def dual_attention_forward(prepped, x1, x2, num_heads):
    B, S1, E = x1.shape
    _, S2, _ = x2.shape
    H = num_heads
    D = E // H

    # Cast activations once so the DMA'd bytes are already bf16.
    x1b = x1.astype(jnp.bfloat16)
    x2b = x2.astype(jnp.bfloat16)

    kern = functools.partial(_dual_attention_kernel, num_heads=num_heads)

    const3 = lambda b: (0, 0, 0)   # weight blocks: same tile every grid step
    const2 = lambda b: (0, 0)

    out1, out2 = pl.pallas_call(
        kern,
        out_shape=(jax.ShapeDtypeStruct((B, S1, E), jnp.float32),
                   jax.ShapeDtypeStruct((B, S2, E), jnp.float32)),
        grid=(B,),
        in_specs=[
            pl.BlockSpec((1, S1, E), lambda b: (b, 0, 0)),   # x1 (bf16)
            pl.BlockSpec((1, S2, E), lambda b: (b, 0, 0)),   # x2 (bf16)
            pl.BlockSpec((3, E, E), const3),                 # w1 qkv (bf16)
            pl.BlockSpec((3, 1, E), const3),                 # b1 qkv (f32)
            pl.BlockSpec((3, E, E), const3),                 # w2 qkv (bf16)
            pl.BlockSpec((3, 1, E), const3),                 # b2 qkv (f32)
            pl.BlockSpec((H, D, E), const3),                 # wo1 per-head (bf16)
            pl.BlockSpec((1, E), const2),                    # bo1 (f32)
            pl.BlockSpec((H, D, E), const3),                 # wo2 per-head (bf16)
            pl.BlockSpec((1, E), const2),                    # bo2 (f32)
        ],
        out_specs=(pl.BlockSpec((1, S1, E), lambda b: (b, 0, 0)),
                   pl.BlockSpec((1, S2, E), lambda b: (b, 0, 0))),
        compiler_params=pltpu.CompilerParams(
            dimension_semantics=("parallel",),               # batch -> megacore (v7x)
            vmem_limit_bytes=32 * 1024 * 1024),
    )(x1b, x2b,
      prepped["w1"], prepped["b1"], prepped["w2"], prepped["b2"],
      prepped["wo1"], prepped["bo1"], prepped["wo2"], prepped["bo2"])
    return out1, out2


# -----------------------------------------------------------------------------
# Params & pure-JAX f32 reference for sanity check
# -----------------------------------------------------------------------------
def init_params(key, embed_dim):
    names = ["q1", "k2", "v2", "q2", "k1", "v1", "out1", "out2"]
    params = {}
    for i, n in enumerate(names):
        kw, kb = jax.random.split(jax.random.fold_in(key, i))
        bound = 1.0 / jnp.sqrt(embed_dim)
        # weights stored already transposed: (in, out)
        params[n + "_w"] = jax.random.uniform(
            kw, (embed_dim, embed_dim), jnp.float32, -bound, bound)
        params[n + "_b"] = jax.random.uniform(
            kb, (embed_dim,), jnp.float32, -bound, bound)
    return params


def _split_heads(x, num_heads):
    B, S, E = x.shape
    D = E // num_heads
    return x.reshape(B, S, num_heads, D).transpose(0, 2, 1, 3)


def _merge_heads(x):
    B, H, S, D = x.shape
    return x.transpose(0, 2, 1, 3).reshape(B, S, H * D)


def reference_forward(params, x1, x2, num_heads):
    E = x1.shape[-1]
    D = E // num_heads
    scaling = float(D) ** -0.5

    def proj(x, name):
        return x @ params[name + "_w"] + params[name + "_b"]

    def attn(q, k, v):
        s = jnp.einsum("bhqd,bhkd->bhqk", q, k) * scaling
        p = jax.nn.softmax(s, axis=-1)
        return jnp.einsum("bhqk,bhkd->bhqd", p, v)

    q1 = _split_heads(proj(x1, "q1"), num_heads)
    k2 = _split_heads(proj(x2, "k2"), num_heads)
    v2 = _split_heads(proj(x2, "v2"), num_heads)
    q2 = _split_heads(proj(x2, "q2"), num_heads)
    k1 = _split_heads(proj(x1, "k1"), num_heads)
    v1 = _split_heads(proj(x1, "v1"), num_heads)

    a1 = _merge_heads(attn(q1, k2, v2))
    a2 = _merge_heads(attn(q2, k1, v1))
    o1 = a1 @ params["out1_w"] + params["out1_b"]
    o2 = a2 @ params["out2_w"] + params["out2_b"]
    return o1, o2


if __name__ == "__main__":
    key = jax.random.PRNGKey(0)
    k_par, k_x1, k_x2 = jax.random.split(key, 3)

    batch, seq1, seq2, embed_dim, num_heads = 2, 8, 8, 32, 8

    params = init_params(k_par, embed_dim)
    x1 = jax.random.normal(k_x1, (batch, seq1, embed_dim), jnp.float32)
    x2 = jax.random.normal(k_x2, (batch, seq2, embed_dim), jnp.float32)

    prepped = prepare_params(params, embed_dim, num_heads)   # once, not per call

    out1, out2 = dual_attention_forward(prepped, x1, x2, num_heads)
    out1 = jax.block_until_ready(out1)
    out2 = jax.block_until_ready(out2)

    ref1, ref2 = reference_forward(params, x1, x2, num_heads)
    # bf16 operands + approx reciprocal vs f32 reference -> allow a few e-2 abs.
    err1 = float(jnp.max(jnp.abs(out1 - ref1)))
    err2 = float(jnp.max(jnp.abs(out2 - ref2)))
    assert err1 < 5e-2, err1
    assert err2 < 5e-2, err2

    print("KERNEL_OK")
</pallas_src>

<mosaic_0001>
module attributes {stable_mosaic.version = 11 : i64} {
  func.func @_dual_attention_kernel(%arg0: i32, %arg1: memref<1x8x32xbf16, #tpu.memory_space<vmem>>, %arg2: memref<1x8x32xbf16, #tpu.memory_space<vmem>>, %arg3: memref<3x32x32xbf16, #tpu.memory_space<vmem>>, %arg4: memref<3x1x32xf32, #tpu.memory_space<vmem>>, %arg5: memref<3x32x32xbf16, #tpu.memory_space<vmem>>, %arg6: memref<3x1x32xf32, #tpu.memory_space<vmem>>, %arg7: memref<8x4x32xbf16, #tpu.memory_space<vmem>>, %arg8: memref<1x32xf32, #tpu.memory_space<vmem>>, %arg9: memref<8x4x32xbf16, #tpu.memory_space<vmem>>, %arg10: memref<1x32xf32, #tpu.memory_space<vmem>>, %arg11: memref<1x8x32xf32, #tpu.memory_space<vmem>>, %arg12: memref<1x8x32xf32, #tpu.memory_space<vmem>>) attributes {dimension_semantics = [#tpu.dimension_semantics<parallel>], iteration_bounds = array<i64: 2>, scalar_prefetch = 0 : i64, scratch_operands = 0 : i64, tpu.core_type = #tpu.core_type<tc>, window_params = [{transform_indices = @transform_0, window_bounds = array<i64: 1, 8, 32>}, {transform_indices = @transform_1, window_bounds = array<i64: 1, 8, 32>}, {pipeline_mode = #tpu.pipeline_mode<synchronous>, transform_indices = @transform_2, window_bounds = array<i64: 3, 32, 32>}, {pipeline_mode = #tpu.pipeline_mode<synchronous>, transform_indices = @transform_3, window_bounds = array<i64: 3, 1, 32>}, {pipeline_mode = #tpu.pipeline_mode<synchronous>, transform_indices = @transform_4, window_bounds = array<i64: 3, 32, 32>}, {pipeline_mode = #tpu.pipeline_mode<synchronous>, transform_indices = @transform_5, window_bounds = array<i64: 3, 1, 32>}, {pipeline_mode = #tpu.pipeline_mode<synchronous>, transform_indices = @transform_6, window_bounds = array<i64: 8, 4, 32>}, {pipeline_mode = #tpu.pipeline_mode<synchronous>, transform_indices = @transform_7, window_bounds = array<i64: 1, 32>}, {pipeline_mode = #tpu.pipeline_mode<synchronous>, transform_indices = @transform_8, window_bounds = array<i64: 8, 4, 32>}, {pipeline_mode = #tpu.pipeline_mode<synchronous>, transform_indices = @transform_9, window_bounds = array<i64: 1, 32>}, {transform_indices = @transform_10, window_bounds = array<i64: 1, 8, 32>}, {transform_indices = @transform_11, window_bounds = array<i64: 1, 8, 32>}]} {
    %c0 = arith.constant 0 : index
    %c0_0 = arith.constant 0 : index
    %c0_1 = arith.constant 0 : index
    %0 = vector.load %arg1[%c0, %c0_0, %c0_1] : memref<1x8x32xbf16, #tpu.memory_space<vmem>>, vector<1x8x32xbf16>
    %1 = vector.shape_cast %0 : vector<1x8x32xbf16> to vector<8x32xbf16>
    %c0_2 = arith.constant 0 : index
    %c0_3 = arith.constant 0 : index
    %c0_4 = arith.constant 0 : index
    %2 = vector.load %arg2[%c0_2, %c0_3, %c0_4] : memref<1x8x32xbf16, #tpu.memory_space<vmem>>, vector<1x8x32xbf16>
    %3 = vector.shape_cast %2 : vector<1x8x32xbf16> to vector<8x32xbf16>
    %c0_5 = arith.constant 0 : index
    %c0_6 = arith.constant 0 : index
    %c0_7 = arith.constant 0 : index
    %4 = vector.load %arg3[%c0_5, %c0_6, %c0_7] : memref<3x32x32xbf16, #tpu.memory_space<vmem>>, vector<1x32x32xbf16>
    %5 = vector.shape_cast %4 : vector<1x32x32xbf16> to vector<32x32xbf16>
    %cst = arith.constant dense<0.000000e+00> : vector<8x32xf32>
    %6 = tpu.matmul %1, %5, %cst {dimension_numbers = #tpu.dot_dimension_numbers<[1], [0], [0], [1], [0, 0, 1, 1], [], []>} : vector<8x32xbf16>, vector<32x32xbf16>, vector<8x32xf32> -> vector<8x32xf32>
    %c0_8 = arith.constant 0 : index
    %c0_9 = arith.constant 0 : index
    %c0_10 = arith.constant 0 : index
    %7 = vector.load %arg4[%c0_8, %c0_9, %c0_10] : memref<3x1x32xf32, #tpu.memory_space<vmem>>, vector<1x1x32xf32>
    %8 = vector.shape_cast %7 : vector<1x1x32xf32> to vector<1x32xf32>
    %9 = vector.broadcast %8 : vector<1x32xf32> to vector<8x32xf32>
    %10 = arith.addf %6, %9 : vector<8x32xf32>
    %11 = arith.truncf %10 : vector<8x32xf32> to vector<8x32xbf16>
    %c1 = arith.constant 1 : index
    %c0_11 = arith.constant 0 : index
    %c0_12 = arith.constant 0 : index
    %12 = vector.load %arg3[%c1, %c0_11, %c0_12] : memref<3x32x32xbf16, #tpu.memory_space<vmem>>, vector<1x32x32xbf16>
    %13 = vector.shape_cast %12 : vector<1x32x32xbf16> to vector<32x32xbf16>
    %cst_13 = arith.constant dense<0.000000e+00> : vector<8x32xf32>
    %14 = tpu.matmul %1, %13, %cst_13 {dimension_numbers = #tpu.dot_dimension_numbers<[1], [0], [0], [1], [0, 0, 1, 1], [], []>} : vector<8x32xbf16>, vector<32x32xbf16>, vector<8x32xf32> -> vector<8x32xf32>
    %c1_14 = arith.constant 1 : index
    %c0_15 = arith.constant 0 : index
    %c0_16 = arith.constant 0 : index
    %15 = vector.load %arg4[%c1_14, %c0_15, %c0_16] : memref<3x1x32xf32, #tpu.memory_space<vmem>>, vector<1x1x32xf32>
    %16 = vector.shape_cast %15 : vector<1x1x32xf32> to vector<1x32xf32>
    %17 = vector.broadcast %16 : vector<1x32xf32> to vector<8x32xf32>
    %18 = arith.addf %14, %17 : vector<8x32xf32>
    %19 = arith.truncf %18 : vector<8x32xf32> to vector<8x32xbf16>
    %c2 = arith.constant 2 : index
    %c0_17 = arith.constant 0 : index
    %c0_18 = arith.constant 0 : index
    %20 = vector.load %arg3[%c2, %c0_17, %c0_18] : memref<3x32x32xbf16, #tpu.memory_space<vmem>>, vector<1x32x32xbf16>
    %21 = vector.shape_cast %20 : vector<1x32x32xbf16> to vector<32x32xbf16>
    %cst_19 = arith.constant dense<0.000000e+00> : vector<8x32xf32>
    %22 = tpu.matmul %1, %21, %cst_19 {dimension_numbers = #tpu.dot_dimension_numbers<[1], [0], [0], [1], [0, 0, 1, 1], [], []>} : vector<8x32xbf16>, vector<32x32xbf16>, vector<8x32xf32> -> vector<8x32xf32>
    %c2_20 = arith.constant 2 : index
    %c0_21 = arith.constant 0 : index
    %c0_22 = arith.constant 0 : index
    %23 = vector.load %arg4[%c2_20, %c0_21, %c0_22] : memref<3x1x32xf32, #tpu.memory_space<vmem>>, vector<1x1x32xf32>
    %24 = vector.shape_cast %23 : vector<1x1x32xf32> to vector<1x32xf32>
    %25 = vector.broadcast %24 : vector<1x32xf32> to vector<8x32xf32>
    %26 = arith.addf %22, %25 : vector<8x32xf32>
    %27 = arith.truncf %26 : vector<8x32xf32> to vector<8x32xbf16>
    %c0_23 = arith.constant 0 : index
    %c0_24 = arith.constant 0 : index
    %c0_25 = arith.constant 0 : index
    %28 = vector.load %arg5[%c0_23, %c0_24, %c0_25] : memref<3x32x32xbf16, #tpu.memory_space<vmem>>, vector<1x32x32xbf16>
    %29 = vector.shape_cast %28 : vector<1x32x32xbf16> to vector<32x32xbf16>
    %cst_26 = arith.constant dense<0.000000e+00> : vector<8x32xf32>
    %30 = tpu.matmul %3, %29, %cst_26 {dimension_numbers = #tpu.dot_dimension_numbers<[1], [0], [0], [1], [0, 0, 1, 1], [], []>} : vector<8x32xbf16>, vector<32x32xbf16>, vector<8x32xf32> -> vector<8x32xf32>
    %c0_27 = arith.constant 0 : index
    %c0_28 = arith.constant 0 : index
    %c0_29 = arith.constant 0 : index
    %31 = vector.load %arg6[%c0_27, %c0_28, %c0_29] : memref<3x1x32xf32, #tpu.memory_space<vmem>>, vector<1x1x32xf32>
    %32 = vector.shape_cast %31 : vector<1x1x32xf32> to vector<1x32xf32>
    %33 = vector.broadcast %32 : vector<1x32xf32> to vector<8x32xf32>
    %34 = arith.addf %30, %33 : vector<8x32xf32>
    %35 = arith.truncf %34 : vector<8x32xf32> to vector<8x32xbf16>
    %c1_30 = arith.constant 1 : index
    %c0_31 = arith.constant 0 : index
    %c0_32 = arith.constant 0 : index
    %36 = vector.load %arg5[%c1_30, %c0_31, %c0_32] : memref<3x32x32xbf16, #tpu.memory_space<vmem>>, vector<1x32x32xbf16>
    %37 = vector.shape_cast %36 : vector<1x32x32xbf16> to vector<32x32xbf16>
    %cst_33 = arith.constant dense<0.000000e+00> : vector<8x32xf32>
    %38 = tpu.matmul %3, %37, %cst_33 {dimension_numbers = #tpu.dot_dimension_numbers<[1], [0], [0], [1], [0, 0, 1, 1], [], []>} : vector<8x32xbf16>, vector<32x32xbf16>, vector<8x32xf32> -> vector<8x32xf32>
    %c1_34 = arith.constant 1 : index
    %c0_35 = arith.constant 0 : index
    %c0_36 = arith.constant 0 : index
    %39 = vector.load %arg6[%c1_34, %c0_35, %c0_36] : memref<3x1x32xf32, #tpu.memory_space<vmem>>, vector<1x1x32xf32>
    %40 = vector.shape_cast %39 : vector<1x1x32xf32> to vector<1x32xf32>
    %41 = vector.broadcast %40 : vector<1x32xf32> to vector<8x32xf32>
    %42 = arith.addf %38, %41 : vector<8x32xf32>
    %43 = arith.truncf %42 : vector<8x32xf32> to vector<8x32xbf16>
    %c2_37 = arith.constant 2 : index
    %c0_38 = arith.constant 0 : index
    %c0_39 = arith.constant 0 : index
    %44 = vector.load %arg5[%c2_37, %c0_38, %c0_39] : memref<3x32x32xbf16, #tpu.memory_space<vmem>>, vector<1x32x32xbf16>
    %45 = vector.shape_cast %44 : vector<1x32x32xbf16> to vector<32x32xbf16>
    %cst_40 = arith.constant dense<0.000000e+00> : vector<8x32xf32>
    %46 = tpu.matmul %3, %45, %cst_40 {dimension_numbers = #tpu.dot_dimension_numbers<[1], [0], [0], [1], [0, 0, 1, 1], [], []>} : vector<8x32xbf16>, vector<32x32xbf16>, vector<8x32xf32> -> vector<8x32xf32>
    %c2_41 = arith.constant 2 : index
    %c0_42 = arith.constant 0 : index
    %c0_43 = arith.constant 0 : index
    %47 = vector.load %arg6[%c2_41, %c0_42, %c0_43] : memref<3x1x32xf32, #tpu.memory_space<vmem>>, vector<1x1x32xf32>
    %48 = vector.shape_cast %47 : vector<1x1x32xf32> to vector<1x32xf32>
    %49 = vector.broadcast %48 : vector<1x32xf32> to vector<8x32xf32>
    %50 = arith.addf %46, %49 : vector<8x32xf32>
    %51 = arith.truncf %50 : vector<8x32xf32> to vector<8x32xbf16>
    %cst_44 = arith.constant 0.000000e+00 : f32
    %52 = vector.broadcast %cst_44 : f32 to vector<8x32xf32>
    %53 = vector.extract_strided_slice %11 {offsets = [0, 0], sizes = [8, 4], strides = [1, 1]} : vector<8x32xbf16> to vector<8x4xbf16>
    %54 = vector.extract_strided_slice %43 {offsets = [0, 0], sizes = [8, 4], strides = [1, 1]} : vector<8x32xbf16> to vector<8x4xbf16>
    %55 = vector.extract_strided_slice %51 {offsets = [0, 0], sizes = [8, 4], strides = [1, 1]} : vector<8x32xbf16> to vector<8x4xbf16>
    %cst_45 = arith.constant dense<0.000000e+00> : vector<8x8xf32>
    %56 = tpu.matmul %53, %54, %cst_45 {dimension_numbers = #tpu.dot_dimension_numbers<[1], [1], [0], [0], [0, 0, 1, 0], [], []>} : vector<8x4xbf16>, vector<8x4xbf16>, vector<8x8xf32> -> vector<8x8xf32>
    %cst_46 = arith.constant dense<0xFF800000> : vector<8xf32>
    %57 = vector.multi_reduction <maximumf>, %56, %cst_46 [1] : vector<8x8xf32> to vector<8xf32>
    %58 = vector.shape_cast %57 : vector<8xf32> to vector<8x1xf32>
    %59 = vector.broadcast %58 : vector<8x1xf32> to vector<8x8xf32>
    %60 = arith.subf %56, %59 : vector<8x8xf32>
    %61 = math.exp %60 : vector<8x8xf32>
    %cst_47 = arith.constant dense<0.000000e+00> : vector<8xf32>
    %62 = vector.multi_reduction <add>, %61, %cst_47 [1] : vector<8x8xf32> to vector<8xf32>
    %63 = vector.shape_cast %62 : vector<8xf32> to vector<8x1xf32>
    %64 = tpu.reciprocal %63 {approx = true} : vector<8x1xf32> -> vector<8x1xf32>
    %65 = arith.truncf %61 : vector<8x8xf32> to vector<8x8xbf16>
    %cst_48 = arith.constant dense<0.000000e+00> : vector<8x4xf32>
    %66 = tpu.matmul %65, %55, %cst_48 {dimension_numbers = #tpu.dot_dimension_numbers<[1], [0], [0], [1], [0, 0, 1, 1], [], []>} : vector<8x8xbf16>, vector<8x4xbf16>, vector<8x4xf32> -> vector<8x4xf32>
    %67 = vector.broadcast %64 : vector<8x1xf32> to vector<8x4xf32>
    %68 = arith.mulf %66, %67 : vector<8x4xf32>
    %69 = arith.truncf %68 : vector<8x4xf32> to vector<8x4xbf16>
    %c0_49 = arith.constant 0 : index
    %c0_50 = arith.constant 0 : index
    %c0_51 = arith.constant 0 : index
    %70 = vector.load %arg7[%c0_49, %c0_50, %c0_51] : memref<8x4x32xbf16, #tpu.memory_space<vmem>>, vector<1x4x32xbf16>
    %71 = vector.shape_cast %70 : vector<1x4x32xbf16> to vector<4x32xbf16>
    %cst_52 = arith.constant dense<0.000000e+00> : vector<8x32xf32>
    %72 = tpu.matmul %69, %71, %cst_52 {dimension_numbers = #tpu.dot_dimension_numbers<[1], [0], [0], [1], [0, 0, 1, 1], [], []>} : vector<8x4xbf16>, vector<4x32xbf16>, vector<8x32xf32> -> vector<8x32xf32>
    %73 = arith.addf %52, %72 : vector<8x32xf32>
    %74 = vector.extract_strided_slice %11 {offsets = [0, 4], sizes = [8, 4], strides = [1, 1]} : vector<8x32xbf16> to vector<8x4xbf16>
    %75 = vector.extract_strided_slice %43 {offsets = [0, 4], sizes = [8, 4], strides = [1, 1]} : vector<8x32xbf16> to vector<8x4xbf16>
    %76 = vector.extract_strided_slice %51 {offsets = [0, 4], sizes = [8, 4], strides = [1, 1]} : vector<8x32xbf16> to vector<8x4xbf16>
    %cst_53 = arith.constant dense<0.000000e+00> : vector<8x8xf32>
    %77 = tpu.matmul %74, %75, %cst_53 {dimension_numbers = #tpu.dot_dimension_numbers<[1], [1], [0], [0], [0, 0, 1, 0], [], []>} : vector<8x4xbf16>, vector<8x4xbf16>, vector<8x8xf32> -> vector<8x8xf32>
    %cst_54 = arith.constant dense<0xFF800000> : vector<8xf32>
    %78 = vector.multi_reduction <maximumf>, %77, %cst_54 [1] : vector<8x8xf32> to vector<8xf32>
    %79 = vector.shape_cast %78 : vector<8xf32> to vector<8x1xf32>
    %80 = vector.broadcast %79 : vector<8x1xf32> to vector<8x8xf32>
    %81 = arith.subf %77, %80 : vector<8x8xf32>
    %82 = math.exp %81 : vector<8x8xf32>
    %cst_55 = arith.constant dense<0.000000e+00> : vector<8xf32>
    %83 = vector.multi_reduction <add>, %82, %cst_55 [1] : vector<8x8xf32> to vector<8xf32>
    %84 = vector.shape_cast %83 : vector<8xf32> to vector<8x1xf32>
    %85 = tpu.reciprocal %84 {approx = true} : vector<8x1xf32> -> vector<8x1xf32>
    %86 = arith.truncf %82 : vector<8x8xf32> to vector<8x8xbf16>
    %cst_56 = arith.constant dense<0.000000e+00> : vector<8x4xf32>
    %87 = tpu.matmul %86, %76, %cst_56 {dimension_numbers = #tpu.dot_dimension_numbers<[1], [0], [0], [1], [0, 0, 1, 1], [], []>} : vector<8x8xbf16>, vector<8x4xbf16>, vector<8x4xf32> -> vector<8x4xf32>
    %88 = vector.broadcast %85 : vector<8x1xf32> to vector<8x4xf32>
    %89 = arith.mulf %87, %88 : vector<8x4xf32>
    %90 = arith.truncf %89 : vector<8x4xf32> to vector<8x4xbf16>
    %c1_57 = arith.constant 1 : index
    %c0_58 = arith.constant 0 : index
    %c0_59 = arith.constant 0 : index
    %91 = vector.load %arg7[%c1_57, %c0_58, %c0_59] : memref<8x4x32xbf16, #tpu.memory_space<vmem>>, vector<1x4x32xbf16>
    %92 = vector.shape_cast %91 : vector<1x4x32xbf16> to vector<4x32xbf16>
    %cst_60 = arith.constant dense<0.000000e+00> : vector<8x32xf32>
    %93 = tpu.matmul %90, %92, %cst_60 {dimension_numbers = #tpu.dot_dimension_numbers<[1], [0], [0], [1], [0, 0, 1, 1], [], []>} : vector<8x4xbf16>, vector<4x32xbf16>, vector<8x32xf32> -> vector<8x32xf32>
    %94 = arith.addf %73, %93 : vector<8x32xf32>
    %95 = vector.extract_strided_slice %11 {offsets = [0, 8], sizes = [8, 4], strides = [1, 1]} : vector<8x32xbf16> to vector<8x4xbf16>
    %96 = vector.extract_strided_slice %43 {offsets = [0, 8], sizes = [8, 4], strides = [1, 1]} : vector<8x32xbf16> to vector<8x4xbf16>
    %97 = vector.extract_strided_slice %51 {offsets = [0, 8], sizes = [8, 4], strides = [1, 1]} : vector<8x32xbf16> to vector<8x4xbf16>
    %cst_61 = arith.constant dense<0.000000e+00> : vector<8x8xf32>
    %98 = tpu.matmul %95, %96, %cst_61 {dimension_numbers = #tpu.dot_dimension_numbers<[1], [1], [0], [0], [0, 0, 1, 0], [], []>} : vector<8x4xbf16>, vector<8x4xbf16>, vector<8x8xf32> -> vector<8x8xf32>
    %cst_62 = arith.constant dense<0xFF800000> : vector<8xf32>
    %99 = vector.multi_reduction <maximumf>, %98, %cst_62 [1] : vector<8x8xf32> to vector<8xf32>
    %100 = vector.shape_cast %99 : vector<8xf32> to vector<8x1xf32>
    %101 = vector.broadcast %100 : vector<8x1xf32> to vector<8x8xf32>
    %102 = arith.subf %98, %101 : vector<8x8xf32>
    %103 = math.exp %102 : vector<8x8xf32>
    %cst_63 = arith.constant dense<0.000000e+00> : vector<8xf32>
    %104 = vector.multi_reduction <add>, %103, %cst_63 [1] : vector<8x8xf32> to vector<8xf32>
    %105 = vector.shape_cast %104 : vector<8xf32> to vector<8x1xf32>
    %106 = tpu.reciprocal %105 {approx = true} : vector<8x1xf32> -> vector<8x1xf32>
    %107 = arith.truncf %103 : vector<8x8xf32> to vector<8x8xbf16>
    %cst_64 = arith.constant dense<0.000000e+00> : vector<8x4xf32>
    %108 = tpu.matmul %107, %97, %cst_64 {dimension_numbers = #tpu.dot_dimension_numbers<[1], [0], [0], [1], [0, 0, 1, 1], [], []>} : vector<8x8xbf16>, vector<8x4xbf16>, vector<8x4xf32> -> vector<8x4xf32>
    %109 = vector.broadcast %106 : vector<8x1xf32> to vector<8x4xf32>
    %110 = arith.mulf %108, %109 : vector<8x4xf32>
    %111 = arith.truncf %110 : vector<8x4xf32> to vector<8x4xbf16>
    %c2_65 = arith.constant 2 : index
    %c0_66 = arith.constant 0 : index
    %c0_67 = arith.constant 0 : index
    %112 = vector.load %arg7[%c2_65, %c0_66, %c0_67] : memref<8x4x32xbf16, #tpu.memory_space<vmem>>, vector<1x4x32xbf16>
    %113 = vector.shape_cast %112 : vector<1x4x32xbf16> to vector<4x32xbf16>
    %cst_68 = arith.constant dense<0.000000e+00> : vector<8x32xf32>
    %114 = tpu.matmul %111, %113, %cst_68 {dimension_numbers = #tpu.dot_dimension_numbers<[1], [0], [0], [1], [0, 0, 1, 1], [], []>} : vector<8x4xbf16>, vector<4x32xbf16>, vector<8x32xf32> -> vector<8x32xf32>
    %115 = arith.addf %94, %114 : vector<8x32xf32>
    %116 = vector.extract_strided_slice %11 {offsets = [0, 12], sizes = [8, 4], strides = [1, 1]} : vector<8x32xbf16> to vector<8x4xbf16>
    %117 = vector.extract_strided_slice %43 {offsets = [0, 12], sizes = [8, 4], strides = [1, 1]} : vector<8x32xbf16> to vector<8x4xbf16>
    %118 = vector.extract_strided_slice %51 {offsets = [0, 12], sizes = [8, 4], strides = [1, 1]} : vector<8x32xbf16> to vector<8x4xbf16>
    %cst_69 = arith.constant dense<0.000000e+00> : vector<8x8xf32>
    %119 = tpu.matmul %116, %117, %cst_69 {dimension_numbers = #tpu.dot_dimension_numbers<[1], [1], [0], [0], [0, 0, 1, 0], [], []>} : vector<8x4xbf16>, vector<8x4xbf16>, vector<8x8xf32> -> vector<8x8xf32>
    %cst_70 = arith.constant dense<0xFF800000> : vector<8xf32>
    %120 = vector.multi_reduction <maximumf>, %119, %cst_70 [1] : vector<8x8xf32> to vector<8xf32>
    %121 = vector.shape_cast %120 : vector<8xf32> to vector<8x1xf32>
    %122 = vector.broadcast %121 : vector<8x1xf32> to vector<8x8xf32>
    %123 = arith.subf %119, %122 : vector<8x8xf32>
    %124 = math.exp %123 : vector<8x8xf32>
    %cst_71 = arith.constant dense<0.000000e+00> : vector<8xf32>
    %125 = vector.multi_reduction <add>, %124, %cst_71 [1] : vector<8x8xf32> to vector<8xf32>
    %126 = vector.shape_cast %125 : vector<8xf32> to vector<8x1xf32>
    %127 = tpu.reciprocal %126 {approx = true} : vector<8x1xf32> -> vector<8x1xf32>
    %128 = arith.truncf %124 : vector<8x8xf32> to vector<8x8xbf16>
    %cst_72 = arith.constant dense<0.000000e+00> : vector<8x4xf32>
    %129 = tpu.matmul %128, %118, %cst_72 {dimension_numbers = #tpu.dot_dimension_numbers<[1], [0], [0], [1], [0, 0, 1, 1], [], []>} : vector<8x8xbf16>, vector<8x4xbf16>, vector<8x4xf32> -> vector<8x4xf32>
    %130 = vector.broadcast %127 : vector<8x1xf32> to vector<8x4xf32>
    %131 = arith.mulf %129, %130 : vector<8x4xf32>
    %132 = arith.truncf %131 : vector<8x4xf32> to vector<8x4xbf16>
    %c3 = arith.constant 3 : index
    %c0_73 = arith.constant 0 : index
    %c0_74 = arith.constant 0 : index
    %133 = vector.load %arg7[%c3, %c0_73, %c0_74] : memref<8x4x32xbf16, #tpu.memory_space<vmem>>, vector<1x4x32xbf16>
    %134 = vector.shape_cast %133 : vector<1x4x32xbf16> to vector<4x32xbf16>
    %cst_75 = arith.constant dense<0.000000e+00> : vector<8x32xf32>
    %135 = tpu.matmul %132, %134, %cst_75 {dimension_numbers = #tpu.dot_dimension_numbers<[1], [0], [0], [1], [0, 0, 1, 1], [], []>} : vector<8x4xbf16>, vector<4x32xbf16>, vector<8x32xf32> -> vector<8x32xf32>
    %136 = arith.addf %115, %135 : vector<8x32xf32>
    %137 = vector.extract_strided_slice %11 {offsets = [0, 16], sizes = [8, 4], strides = [1, 1]} : vector<8x32xbf16> to vector<8x4xbf16>
    %138 = vector.extract_strided_slice %43 {offsets = [0, 16], sizes = [8, 4], strides = [1, 1]} : vector<8x32xbf16> to vector<8x4xbf16>
    %139 = vector.extract_strided_slice %51 {offsets = [0, 16], sizes = [8, 4], strides = [1, 1]} : vector<8x32xbf16> to vector<8x4xbf16>
    %cst_76 = arith.constant dense<0.000000e+00> : vector<8x8xf32>
    %140 = tpu.matmul %137, %138, %cst_76 {dimension_numbers = #tpu.dot_dimension_numbers<[1], [1], [0], [0], [0, 0, 1, 0], [], []>} : vector<8x4xbf16>, vector<8x4xbf16>, vector<8x8xf32> -> vector<8x8xf32>
    %cst_77 = arith.constant dense<0xFF800000> : vector<8xf32>
    %141 = vector.multi_reduction <maximumf>, %140, %cst_77 [1] : vector<8x8xf32> to vector<8xf32>
    %142 = vector.shape_cast %141 : vector<8xf32> to vector<8x1xf32>
    %143 = vector.broadcast %142 : vector<8x1xf32> to vector<8x8xf32>
    %144 = arith.subf %140, %143 : vector<8x8xf32>
    %145 = math.exp %144 : vector<8x8xf32>
    %cst_78 = arith.constant dense<0.000000e+00> : vector<8xf32>
    %146 = vector.multi_reduction <add>, %145, %cst_78 [1] : vector<8x8xf32> to vector<8xf32>
    %147 = vector.shape_cast %146 : vector<8xf32> to vector<8x1xf32>
    %148 = tpu.reciprocal %147 {approx = true} : vector<8x1xf32> -> vector<8x1xf32>
    %149 = arith.truncf %145 : vector<8x8xf32> to vector<8x8xbf16>
    %cst_79 = arith.constant dense<0.000000e+00> : vector<8x4xf32>
    %150 = tpu.matmul %149, %139, %cst_79 {dimension_numbers = #tpu.dot_dimension_numbers<[1], [0], [0], [1], [0, 0, 1, 1], [], []>} : vector<8x8xbf16>, vector<8x4xbf16>, vector<8x4xf32> -> vector<8x4xf32>
    %151 = vector.broadcast %148 : vector<8x1xf32> to vector<8x4xf32>
    %152 = arith.mulf %150, %151 : vector<8x4xf32>
    %153 = arith.truncf %152 : vector<8x4xf32> to vector<8x4xbf16>
    %c4 = arith.constant 4 : index
    %c0_80 = arith.constant 0 : index
    %c0_81 = arith.constant 0 : index
    %154 = vector.load %arg7[%c4, %c0_80, %c0_81] : memref<8x4x32xbf16, #tpu.memory_space<vmem>>, vector<1x4x32xbf16>
    %155 = vector.shape_cast %154 : vector<1x4x32xbf16> to vector<4x32xbf16>
    %cst_82 = arith.constant dense<0.000000e+00> : vector<8x32xf32>
    %156 = tpu.matmul %153, %155, %cst_82 {dimension_numbers = #tpu.dot_dimension_numbers<[1], [0], [0], [1], [0, 0, 1, 1], [], []>} : vector<8x4xbf16>, vector<4x32xbf16>, vector<8x32xf32> -> vector<8x32xf32>
    %157 = arith.addf %136, %156 : vector<8x32xf32>
    %158 = vector.extract_strided_slice %11 {offsets = [0, 20], sizes = [8, 4], strides = [1, 1]} : vector<8x32xbf16> to vector<8x4xbf16>
    %159 = vector.extract_strided_slice %43 {offsets = [0, 20], sizes = [8, 4], strides = [1, 1]} : vector<8x32xbf16> to vector<8x4xbf16>
    %160 = vector.extract_strided_slice %51 {offsets = [0, 20], sizes = [8, 4], strides = [1, 1]} : vector<8x32xbf16> to vector<8x4xbf16>
    %cst_83 = arith.constant dense<0.000000e+00> : vector<8x8xf32>
    %161 = tpu.matmul %158, %159, %cst_83 {dimension_numbers = #tpu.dot_dimension_numbers<[1], [1], [0], [0], [0, 0, 1, 0], [], []>} : vector<8x4xbf16>, vector<8x4xbf16>, vector<8x8xf32> -> vector<8x8xf32>
    %cst_84 = arith.constant dense<0xFF800000> : vector<8xf32>
    %162 = vector.multi_reduction <maximumf>, %161, %cst_84 [1] : vector<8x8xf32> to vector<8xf32>
    %163 = vector.shape_cast %162 : vector<8xf32> to vector<8x1xf32>
    %164 = vector.broadcast %163 : vector<8x1xf32> to vector<8x8xf32>
    %165 = arith.subf %161, %164 : vector<8x8xf32>
    %166 = math.exp %165 : vector<8x8xf32>
    %cst_85 = arith.constant dense<0.000000e+00> : vector<8xf32>
    %167 = vector.multi_reduction <add>, %166, %cst_85 [1] : vector<8x8xf32> to vector<8xf32>
    %168 = vector.shape_cast %167 : vector<8xf32> to vector<8x1xf32>
    %169 = tpu.reciprocal %168 {approx = true} : vector<8x1xf32> -> vector<8x1xf32>
    %170 = arith.truncf %166 : vector<8x8xf32> to vector<8x8xbf16>
    %cst_86 = arith.constant dense<0.000000e+00> : vector<8x4xf32>
    %171 = tpu.matmul %170, %160, %cst_86 {dimension_numbers = #tpu.dot_dimension_numbers<[1], [0], [0], [1], [0, 0, 1, 1], [], []>} : vector<8x8xbf16>, vector<8x4xbf16>, vector<8x4xf32> -> vector<8x4xf32>
    %172 = vector.broadcast %169 : vector<8x1xf32> to vector<8x4xf32>
    %173 = arith.mulf %171, %172 : vector<8x4xf32>
    %174 = arith.truncf %173 : vector<8x4xf32> to vector<8x4xbf16>
    %c5 = arith.constant 5 : index
    %c0_87 = arith.constant 0 : index
    %c0_88 = arith.constant 0 : index
    %175 = vector.load %arg7[%c5, %c0_87, %c0_88] : memref<8x4x32xbf16, #tpu.memory_space<vmem>>, vector<1x4x32xbf16>
    %176 = vector.shape_cast %175 : vector<1x4x32xbf16> to vector<4x32xbf16>
    %cst_89 = arith.constant dense<0.000000e+00> : vector<8x32xf32>
    %177 = tpu.matmul %174, %176, %cst_89 {dimension_numbers = #tpu.dot_dimension_numbers<[1], [0], [0], [1], [0, 0, 1, 1], [], []>} : vector<8x4xbf16>, vector<4x32xbf16>, vector<8x32xf32> -> vector<8x32xf32>
    %178 = arith.addf %157, %177 : vector<8x32xf32>
    %179 = vector.extract_strided_slice %11 {offsets = [0, 24], sizes = [8, 4], strides = [1, 1]} : vector<8x32xbf16> to vector<8x4xbf16>
    %180 = vector.extract_strided_slice %43 {offsets = [0, 24], sizes = [8, 4], strides = [1, 1]} : vector<8x32xbf16> to vector<8x4xbf16>
    %181 = vector.extract_strided_slice %51 {offsets = [0, 24], sizes = [8, 4], strides = [1, 1]} : vector<8x32xbf16> to vector<8x4xbf16>
    %cst_90 = arith.constant dense<0.000000e+00> : vector<8x8xf32>
    %182 = tpu.matmul %179, %180, %cst_90 {dimension_numbers = #tpu.dot_dimension_numbers<[1], [1], [0], [0], [0, 0, 1, 0], [], []>} : vector<8x4xbf16>, vector<8x4xbf16>, vector<8x8xf32> -> vector<8x8xf32>
    %cst_91 = arith.constant dense<0xFF800000> : vector<8xf32>
    %183 = vector.multi_reduction <maximumf>, %182, %cst_91 [1] : vector<8x8xf32> to vector<8xf32>
    %184 = vector.shape_cast %183 : vector<8xf32> to vector<8x1xf32>
    %185 = vector.broadcast %184 : vector<8x1xf32> to vector<8x8xf32>
    %186 = arith.subf %182, %185 : vector<8x8xf32>
    %187 = math.exp %186 : vector<8x8xf32>
    %cst_92 = arith.constant dense<0.000000e+00> : vector<8xf32>
    %188 = vector.multi_reduction <add>, %187, %cst_92 [1] : vector<8x8xf32> to vector<8xf32>
    %189 = vector.shape_cast %188 : vector<8xf32> to vector<8x1xf32>
    %190 = tpu.reciprocal %189 {approx = true} : vector<8x1xf32> -> vector<8x1xf32>
    %191 = arith.truncf %187 : vector<8x8xf32> to vector<8x8xbf16>
    %cst_93 = arith.constant dense<0.000000e+00> : vector<8x4xf32>
    %192 = tpu.matmul %191, %181, %cst_93 {dimension_numbers = #tpu.dot_dimension_numbers<[1], [0], [0], [1], [0, 0, 1, 1], [], []>} : vector<8x8xbf16>, vector<8x4xbf16>, vector<8x4xf32> -> vector<8x4xf32>
    %193 = vector.broadcast %190 : vector<8x1xf32> to vector<8x4xf32>
    %194 = arith.mulf %192, %193 : vector<8x4xf32>
    %195 = arith.truncf %194 : vector<8x4xf32> to vector<8x4xbf16>
    %c6 = arith.constant 6 : index
    %c0_94 = arith.constant 0 : index
    %c0_95 = arith.constant 0 : index
    %196 = vector.load %arg7[%c6, %c0_94, %c0_95] : memref<8x4x32xbf16, #tpu.memory_space<vmem>>, vector<1x4x32xbf16>
    %197 = vector.shape_cast %196 : vector<1x4x32xbf16> to vector<4x32xbf16>
    %cst_96 = arith.constant dense<0.000000e+00> : vector<8x32xf32>
    %198 = tpu.matmul %195, %197, %cst_96 {dimension_numbers = #tpu.dot_dimension_numbers<[1], [0], [0], [1], [0, 0, 1, 1], [], []>} : vector<8x4xbf16>, vector<4x32xbf16>, vector<8x32xf32> -> vector<8x32xf32>
    %199 = arith.addf %178, %198 : vector<8x32xf32>
    %200 = vector.extract_strided_slice %11 {offsets = [0, 28], sizes = [8, 4], strides = [1, 1]} : vector<8x32xbf16> to vector<8x4xbf16>
    %201 = vector.extract_strided_slice %43 {offsets = [0, 28], sizes = [8, 4], strides = [1, 1]} : vector<8x32xbf16> to vector<8x4xbf16>
    %202 = vector.extract_strided_slice %51 {offsets = [0, 28], sizes = [8, 4], strides = [1, 1]} : vector<8x32xbf16> to vector<8x4xbf16>
    %cst_97 = arith.constant dense<0.000000e+00> : vector<8x8xf32>
    %203 = tpu.matmul %200, %201, %cst_97 {dimension_numbers = #tpu.dot_dimension_numbers<[1], [1], [0], [0], [0, 0, 1, 0], [], []>} : vector<8x4xbf16>, vector<8x4xbf16>, vector<8x8xf32> -> vector<8x8xf32>
    %cst_98 = arith.constant dense<0xFF800000> : vector<8xf32>
    %204 = vector.multi_reduction <maximumf>, %203, %cst_98 [1] : vector<8x8xf32> to vector<8xf32>
    %205 = vector.shape_cast %204 : vector<8xf32> to vector<8x1xf32>
    %206 = vector.broadcast %205 : vector<8x1xf32> to vector<8x8xf32>
    %207 = arith.subf %203, %206 : vector<8x8xf32>
    %208 = math.exp %207 : vector<8x8xf32>
    %cst_99 = arith.constant dense<0.000000e+00> : vector<8xf32>
    %209 = vector.multi_reduction <add>, %208, %cst_99 [1] : vector<8x8xf32> to vector<8xf32>
    %210 = vector.shape_cast %209 : vector<8xf32> to vector<8x1xf32>
    %211 = tpu.reciprocal %210 {approx = true} : vector<8x1xf32> -> vector<8x1xf32>
    %212 = arith.truncf %208 : vector<8x8xf32> to vector<8x8xbf16>
    %cst_100 = arith.constant dense<0.000000e+00> : vector<8x4xf32>
    %213 = tpu.matmul %212, %202, %cst_100 {dimension_numbers = #tpu.dot_dimension_numbers<[1], [0], [0], [1], [0, 0, 1, 1], [], []>} : vector<8x8xbf16>, vector<8x4xbf16>, vector<8x4xf32> -> vector<8x4xf32>
    %214 = vector.broadcast %211 : vector<8x1xf32> to vector<8x4xf32>
    %215 = arith.mulf %213, %214 : vector<8x4xf32>
    %216 = arith.truncf %215 : vector<8x4xf32> to vector<8x4xbf16>
    %c7 = arith.constant 7 : index
    %c0_101 = arith.constant 0 : index
    %c0_102 = arith.constant 0 : index
    %217 = vector.load %arg7[%c7, %c0_101, %c0_102] : memref<8x4x32xbf16, #tpu.memory_space<vmem>>, vector<1x4x32xbf16>
    %218 = vector.shape_cast %217 : vector<1x4x32xbf16> to vector<4x32xbf16>
    %cst_103 = arith.constant dense<0.000000e+00> : vector<8x32xf32>
    %219 = tpu.matmul %216, %218, %cst_103 {dimension_numbers = #tpu.dot_dimension_numbers<[1], [0], [0], [1], [0, 0, 1, 1], [], []>} : vector<8x4xbf16>, vector<4x32xbf16>, vector<8x32xf32> -> vector<8x32xf32>
    %220 = arith.addf %199, %219 : vector<8x32xf32>
    %c0_104 = arith.constant 0 : index
    %c0_105 = arith.constant 0 : index
    %221 = vector.load %arg8[%c0_104, %c0_105] : memref<1x32xf32, #tpu.memory_space<vmem>>, vector<1x32xf32>
    %222 = vector.broadcast %221 : vector<1x32xf32> to vector<8x32xf32>
    %223 = arith.addf %220, %222 : vector<8x32xf32>
    %c0_106 = arith.constant 0 : index
    %c0_107 = arith.constant 0 : index
    %c0_108 = arith.constant 0 : index
    %224 = vector.load %arg11[%c0_106, %c0_107, %c0_108] : memref<1x8x32xf32, #tpu.memory_space<vmem>>, vector<1x8x32xf32>
    %225 = vector.shape_cast %224 : vector<1x8x32xf32> to vector<8x32xf32>
    %226 = vector.shape_cast %223 : vector<8x32xf32> to vector<1x8x32xf32>
    tpu.vector_store %arg11[%c0_106, %c0_107, %c0_108], %226 {strides = array<i32>} : memref<1x8x32xf32, #tpu.memory_space<vmem>>, vector<1x8x32xf32>,
    %cst_109 = arith.constant 0.000000e+00 : f32
    %227 = vector.broadcast %cst_109 : f32 to vector<8x32xf32>
    %228 = vector.extract_strided_slice %35 {offsets = [0, 0], sizes = [8, 4], strides = [1, 1]} : vector<8x32xbf16> to vector<8x4xbf16>
    %229 = vector.extract_strided_slice %19 {offsets = [0, 0], sizes = [8, 4], strides = [1, 1]} : vector<8x32xbf16> to vector<8x4xbf16>
    %230 = vector.extract_strided_slice %27 {offsets = [0, 0], sizes = [8, 4], strides = [1, 1]} : vector<8x32xbf16> to vector<8x4xbf16>
    %cst_110 = arith.constant dense<0.000000e+00> : vector<8x8xf32>
    %231 = tpu.matmul %228, %229, %cst_110 {dimension_numbers = #tpu.dot_dimension_numbers<[1], [1], [0], [0], [0, 0, 1, 0], [], []>} : vector<8x4xbf16>, vector<8x4xbf16>, vector<8x8xf32> -> vector<8x8xf32>
    %cst_111 = arith.constant dense<0xFF800000> : vector<8xf32>
    %232 = vector.multi_reduction <maximumf>, %231, %cst_111 [1] : vector<8x8xf32> to vector<8xf32>
    %233 = vector.shape_cast %232 : vector<8xf32> to vector<8x1xf32>
    %234 = vector.broadcast %233 : vector<8x1xf32> to vector<8x8xf32>
    %235 = arith.subf %231, %234 : vector<8x8xf32>
    %236 = math.exp %235 : vector<8x8xf32>
    %cst_112 = arith.constant dense<0.000000e+00> : vector<8xf32>
    %237 = vector.multi_reduction <add>, %236, %cst_112 [1] : vector<8x8xf32> to vector<8xf32>
    %238 = vector.shape_cast %237 : vector<8xf32> to vector<8x1xf32>
    %239 = tpu.reciprocal %238 {approx = true} : vector<8x1xf32> -> vector<8x1xf32>
    %240 = arith.truncf %236 : vector<8x8xf32> to vector<8x8xbf16>
    %cst_113 = arith.constant dense<0.000000e+00> : vector<8x4xf32>
    %241 = tpu.matmul %240, %230, %cst_113 {dimension_numbers = #tpu.dot_dimension_numbers<[1], [0], [0], [1], [0, 0, 1, 1], [], []>} : vector<8x8xbf16>, vector<8x4xbf16>, vector<8x4xf32> -> vector<8x4xf32>
    %242 = vector.broadcast %239 : vector<8x1xf32> to vector<8x4xf32>
    %243 = arith.mulf %241, %242 : vector<8x4xf32>
    %244 = arith.truncf %243 : vector<8x4xf32> to vector<8x4xbf16>
    %c0_114 = arith.constant 0 : index
    %c0_115 = arith.constant 0 : index
    %c0_116 = arith.constant 0 : index
    %245 = vector.load %arg9[%c0_114, %c0_115, %c0_116] : memref<8x4x32xbf16, #tpu.memory_space<vmem>>, vector<1x4x32xbf16>
    %246 = vector.shape_cast %245 : vector<1x4x32xbf16> to vector<4x32xbf16>
    %cst_117 = arith.constant dense<0.000000e+00> : vector<8x32xf32>
    %247 = tpu.matmul %244, %246, %cst_117 {dimension_numbers = #tpu.dot_dimension_numbers<[1], [0], [0], [1], [0, 0, 1, 1], [], []>} : vector<8x4xbf16>, vector<4x32xbf16>, vector<8x32xf32> -> vector<8x32xf32>
    %248 = arith.addf %227, %247 : vector<8x32xf32>
    %249 = vector.extract_strided_slice %35 {offsets = [0, 4], sizes = [8, 4], strides = [1, 1]} : vector<8x32xbf16> to vector<8x4xbf16>
    %250 = vector.extract_strided_slice %19 {offsets = [0, 4], sizes = [8, 4], strides = [1, 1]} : vector<8x32xbf16> to vector<8x4xbf16>
    %251 = vector.extract_strided_slice %27 {offsets = [0, 4], sizes = [8, 4], strides = [1, 1]} : vector<8x32xbf16> to vector<8x4xbf16>
    %cst_118 = arith.constant dense<0.000000e+00> : vector<8x8xf32>
    %252 = tpu.matmul %249, %250, %cst_118 {dimension_numbers = #tpu.dot_dimension_numbers<[1], [1], [0], [0], [0, 0, 1, 0], [], []>} : vector<8x4xbf16>, vector<8x4xbf16>, vector<8x8xf32> -> vector<8x8xf32>
    %cst_119 = arith.constant dense<0xFF800000> : vector<8xf32>
    %253 = vector.multi_reduction <maximumf>, %252, %cst_119 [1] : vector<8x8xf32> to vector<8xf32>
    %254 = vector.shape_cast %253 : vector<8xf32> to vector<8x1xf32>
    %255 = vector.broadcast %254 : vector<8x1xf32> to vector<8x8xf32>
    %256 = arith.subf %252, %255 : vector<8x8xf32>
    %257 = math.exp %256 : vector<8x8xf32>
    %cst_120 = arith.constant dense<0.000000e+00> : vector<8xf32>
    %258 = vector.multi_reduction <add>, %257, %cst_120 [1] : vector<8x8xf32> to vector<8xf32>
    %259 = vector.shape_cast %258 : vector<8xf32> to vector<8x1xf32>
    %260 = tpu.reciprocal %259 {approx = true} : vector<8x1xf32> -> vector<8x1xf32>
    %261 = arith.truncf %257 : vector<8x8xf32> to vector<8x8xbf16>
    %cst_121 = arith.constant dense<0.000000e+00> : vector<8x4xf32>
    %262 = tpu.matmul %261, %251, %cst_121 {dimension_numbers = #tpu.dot_dimension_numbers<[1], [0], [0], [1], [0, 0, 1, 1], [], []>} : vector<8x8xbf16>, vector<8x4xbf16>, vector<8x4xf32> -> vector<8x4xf32>
    %263 = vector.broadcast %260 : vector<8x1xf32> to vector<8x4xf32>
    %264 = arith.mulf %262, %263 : vector<8x4xf32>
    %265 = arith.truncf %264 : vector<8x4xf32> to vector<8x4xbf16>
    %c1_122 = arith.constant 1 : index
    %c0_123 = arith.constant 0 : index
    %c0_124 = arith.constant 0 : index
    %266 = vector.load %arg9[%c1_122, %c0_123, %c0_124] : memref<8x4x32xbf16, #tpu.memory_space<vmem>>, vector<1x4x32xbf16>
    %267 = vector.shape_cast %266 : vector<1x4x32xbf16> to vector<4x32xbf16>
    %cst_125 = arith.constant dense<0.000000e+00> : vector<8x32xf32>
    %268 = tpu.matmul %265, %267, %cst_125 {dimension_numbers = #tpu.dot_dimension_numbers<[1], [0], [0], [1], [0, 0, 1, 1], [], []>} : vector<8x4xbf16>, vector<4x32xbf16>, vector<8x32xf32> -> vector<8x32xf32>
    %269 = arith.addf %248, %268 : vector<8x32xf32>
    %270 = vector.extract_strided_slice %35 {offsets = [0, 8], sizes = [8, 4], strides = [1, 1]} : vector<8x32xbf16> to vector<8x4xbf16>
    %271 = vector.extract_strided_slice %19 {offsets = [0, 8], sizes = [8, 4], strides = [1, 1]} : vector<8x32xbf16> to vector<8x4xbf16>
    %272 = vector.extract_strided_slice %27 {offsets = [0, 8], sizes = [8, 4], strides = [1, 1]} : vector<8x32xbf16> to vector<8x4xbf16>
    %cst_126 = arith.constant dense<0.000000e+00> : vector<8x8xf32>
    %273 = tpu.matmul %270, %271, %cst_126 {dimension_numbers = #tpu.dot_dimension_numbers<[1], [1], [0], [0], [0, 0, 1, 0], [], []>} : vector<8x4xbf16>, vector<8x4xbf16>, vector<8x8xf32> -> vector<8x8xf32>
    %cst_127 = arith.constant dense<0xFF800000> : vector<8xf32>
    %274 = vector.multi_reduction <maximumf>, %273, %cst_127 [1] : vector<8x8xf32> to vector<8xf32>
    %275 = vector.shape_cast %274 : vector<8xf32> to vector<8x1xf32>
    %276 = vector.broadcast %275 : vector<8x1xf32> to vector<8x8xf32>
    %277 = arith.subf %273, %276 : vector<8x8xf32>
    %278 = math.exp %277 : vector<8x8xf32>
    %cst_128 = arith.constant dense<0.000000e+00> : vector<8xf32>
    %279 = vector.multi_reduction <add>, %278, %cst_128 [1] : vector<8x8xf32> to vector<8xf32>
    %280 = vector.shape_cast %279 : vector<8xf32> to vector<8x1xf32>
    %281 = tpu.reciprocal %280 {approx = true} : vector<8x1xf32> -> vector<8x1xf32>
    %282 = arith.truncf %278 : vector<8x8xf32> to vector<8x8xbf16>
    %cst_129 = arith.constant dense<0.000000e+00> : vector<8x4xf32>
    %283 = tpu.matmul %282, %272, %cst_129 {dimension_numbers = #tpu.dot_dimension_numbers<[1], [0], [0], [1], [0, 0, 1, 1], [], []>} : vector<8x8xbf16>, vector<8x4xbf16>, vector<8x4xf32> -> vector<8x4xf32>
    %284 = vector.broadcast %281 : vector<8x1xf32> to vector<8x4xf32>
    %285 = arith.mulf %283, %284 : vector<8x4xf32>
    %286 = arith.truncf %285 : vector<8x4xf32> to vector<8x4xbf16>
    %c2_130 = arith.constant 2 : index
    %c0_131 = arith.constant 0 : index
    %c0_132 = arith.constant 0 : index
    %287 = vector.load %arg9[%c2_130, %c0_131, %c0_132] : memref<8x4x32xbf16, #tpu.memory_space<vmem>>, vector<1x4x32xbf16>
    %288 = vector.shape_cast %287 : vector<1x4x32xbf16> to vector<4x32xbf16>
    %cst_133 = arith.constant dense<0.000000e+00> : vector<8x32xf32>
    %289 = tpu.matmul %286, %288, %cst_133 {dimension_numbers = #tpu.dot_dimension_numbers<[1], [0], [0], [1], [0, 0, 1, 1], [], []>} : vector<8x4xbf16>, vector<4x32xbf16>, vector<8x32xf32> -> vector<8x32xf32>
    %290 = arith.addf %269, %289 : vector<8x32xf32>
    %291 = vector.extract_strided_slice %35 {offsets = [0, 12], sizes = [8, 4], strides = [1, 1]} : vector<8x32xbf16> to vector<8x4xbf16>
    %292 = vector.extract_strided_slice %19 {offsets = [0, 12], sizes = [8, 4], strides = [1, 1]} : vector<8x32xbf16> to vector<8x4xbf16>
    %293 = vector.extract_strided_slice %27 {offsets = [0, 12], sizes = [8, 4], strides = [1, 1]} : vector<8x32xbf16> to vector<8x4xbf16>
    %cst_134 = arith.constant dense<0.000000e+00> : vector<8x8xf32>
    %294 = tpu.matmul %291, %292, %cst_134 {dimension_numbers = #tpu.dot_dimension_numbers<[1], [1], [0], [0], [0, 0, 1, 0], [], []>} : vector<8x4xbf16>, vector<8x4xbf16>, vector<8x8xf32> -> vector<8x8xf32>
    %cst_135 = arith.constant dense<0xFF800000> : vector<8xf32>
    %295 = vector.multi_reduction <maximumf>, %294, %cst_135 [1] : vector<8x8xf32> to vector<8xf32>
    %296 = vector.shape_cast %295 : vector<8xf32> to vector<8x1xf32>
    %297 = vector.broadcast %296 : vector<8x1xf32> to vector<8x8xf32>
    %298 = arith.subf %294, %297 : vector<8x8xf32>
    %299 = math.exp %298 : vector<8x8xf32>
    %cst_136 = arith.constant dense<0.000000e+00> : vector<8xf32>
    %300 = vector.multi_reduction <add>, %299, %cst_136 [1] : vector<8x8xf32> to vector<8xf32>
    %301 = vector.shape_cast %300 : vector<8xf32> to vector<8x1xf32>
    %302 = tpu.reciprocal %301 {approx = true} : vector<8x1xf32> -> vector<8x1xf32>
    %303 = arith.truncf %299 : vector<8x8xf32> to vector<8x8xbf16>
    %cst_137 = arith.constant dense<0.000000e+00> : vector<8x4xf32>
    %304 = tpu.matmul %303, %293, %cst_137 {dimension_numbers = #tpu.dot_dimension_numbers<[1], [0], [0], [1], [0, 0, 1, 1], [], []>} : vector<8x8xbf16>, vector<8x4xbf16>, vector<8x4xf32> -> vector<8x4xf32>
    %305 = vector.broadcast %302 : vector<8x1xf32> to vector<8x4xf32>
    %306 = arith.mulf %304, %305 : vector<8x4xf32>
    %307 = arith.truncf %306 : vector<8x4xf32> to vector<8x4xbf16>
    %c3_138 = arith.constant 3 : index
    %c0_139 = arith.constant 0 : index
    %c0_140 = arith.constant 0 : index
    %308 = vector.load %arg9[%c3_138, %c0_139, %c0_140] : memref<8x4x32xbf16, #tpu.memory_space<vmem>>, vector<1x4x32xbf16>
    %309 = vector.shape_cast %308 : vector<1x4x32xbf16> to vector<4x32xbf16>
    %cst_141 = arith.constant dense<0.000000e+00> : vector<8x32xf32>
    %310 = tpu.matmul %307, %309, %cst_141 {dimension_numbers = #tpu.dot_dimension_numbers<[1], [0], [0], [1], [0, 0, 1, 1], [], []>} : vector<8x4xbf16>, vector<4x32xbf16>, vector<8x32xf32> -> vector<8x32xf32>
    %311 = arith.addf %290, %310 : vector<8x32xf32>
    %312 = vector.extract_strided_slice %35 {offsets = [0, 16], sizes = [8, 4], strides = [1, 1]} : vector<8x32xbf16> to vector<8x4xbf16>
    %313 = vector.extract_strided_slice %19 {offsets = [0, 16], sizes = [8, 4], strides = [1, 1]} : vector<8x32xbf16> to vector<8x4xbf16>
    %314 = vector.extract_strided_slice %27 {offsets = [0, 16], sizes = [8, 4], strides = [1, 1]} : vector<8x32xbf16> to vector<8x4xbf16>
    %cst_142 = arith.constant dense<0.000000e+00> : vector<8x8xf32>
    %315 = tpu.matmul %312, %313, %cst_142 {dimension_numbers = #tpu.dot_dimension_numbers<[1], [1], [0], [0], [0, 0, 1, 0], [], []>} : vector<8x4xbf16>, vector<8x4xbf16>, vector<8x8xf32> -> vector<8x8xf32>
    %cst_143 = arith.constant dense<0xFF800000> : vector<8xf32>
    %316 = vector.multi_reduction <maximumf>, %315, %cst_143 [1] : vector<8x8xf32> to vector<8xf32>
    %317 = vector.shape_cast %316 : vector<8xf32> to vector<8x1xf32>
    %318 = vector.broadcast %317 : vector<8x1xf32> to vector<8x8xf32>
    %319 = arith.subf %315, %318 : vector<8x8xf32>
    %320 = math.exp %319 : vector<8x8xf32>
    %cst_144 = arith.constant dense<0.000000e+00> : vector<8xf32>
    %321 = vector.multi_reduction <add>, %320, %cst_144 [1] : vector<8x8xf32> to vector<8xf32>
    %322 = vector.shape_cast %321 : vector<8xf32> to vector<8x1xf32>
    %323 = tpu.reciprocal %322 {approx = true} : vector<8x1xf32> -> vector<8x1xf32>
    %324 = arith.truncf %320 : vector<8x8xf32> to vector<8x8xbf16>
    %cst_145 = arith.constant dense<0.000000e+00> : vector<8x4xf32>
    %325 = tpu.matmul %324, %314, %cst_145 {dimension_numbers = #tpu.dot_dimension_numbers<[1], [0], [0], [1], [0, 0, 1, 1], [], []>} : vector<8x8xbf16>, vector<8x4xbf16>, vector<8x4xf32> -> vector<8x4xf32>
    %326 = vector.broadcast %323 : vector<8x1xf32> to vector<8x4xf32>
    %327 = arith.mulf %325, %326 : vector<8x4xf32>
    %328 = arith.truncf %327 : vector<8x4xf32> to vector<8x4xbf16>
    %c4_146 = arith.constant 4 : index
    %c0_147 = arith.constant 0 : index
    %c0_148 = arith.constant 0 : index
    %329 = vector.load %arg9[%c4_146, %c0_147, %c0_148] : memref<8x4x32xbf16, #tpu.memory_space<vmem>>, vector<1x4x32xbf16>
    %330 = vector.shape_cast %329 : vector<1x4x32xbf16> to vector<4x32xbf16>
    %cst_149 = arith.constant dense<0.000000e+00> : vector<8x32xf32>
    %331 = tpu.matmul %328, %330, %cst_149 {dimension_numbers = #tpu.dot_dimension_numbers<[1], [0], [0], [1], [0, 0, 1, 1], [], []>} : vector<8x4xbf16>, vector<4x32xbf16>, vector<8x32xf32> -> vector<8x32xf32>
    %332 = arith.addf %311, %331 : vector<8x32xf32>
    %333 = vector.extract_strided_slice %35 {offsets = [0, 20], sizes = [8, 4], strides = [1, 1]} : vector<8x32xbf16> to vector<8x4xbf16>
    %334 = vector.extract_strided_slice %19 {offsets = [0, 20], sizes = [8, 4], strides = [1, 1]} : vector<8x32xbf16> to vector<8x4xbf16>
    %335 = vector.extract_strided_slice %27 {offsets = [0, 20], sizes = [8, 4], strides = [1, 1]} : vector<8x32xbf16> to vector<8x4xbf16>
    %cst_150 = arith.constant dense<0.000000e+00> : vector<8x8xf32>
    %336 = tpu.matmul %333, %334, %cst_150 {dimension_numbers = #tpu.dot_dimension_numbers<[1], [1], [0], [0], [0, 0, 1, 0], [], []>} : vector<8x4xbf16>, vector<8x4xbf16>, vector<8x8xf32> -> vector<8x8xf32>
    %cst_151 = arith.constant dense<0xFF800000> : vector<8xf32>
    %337 = vector.multi_reduction <maximumf>, %336, %cst_151 [1] : vector<8x8xf32> to vector<8xf32>
    %338 = vector.shape_cast %337 : vector<8xf32> to vector<8x1xf32>
    %339 = vector.broadcast %338 : vector<8x1xf32> to vector<8x8xf32>
    %340 = arith.subf %336, %339 : vector<8x8xf32>
    %341 = math.exp %340 : vector<8x8xf32>
    %cst_152 = arith.constant dense<0.000000e+00> : vector<8xf32>
    %342 = vector.multi_reduction <add>, %341, %cst_152 [1] : vector<8x8xf32> to vector<8xf32>
    %343 = vector.shape_cast %342 : vector<8xf32> to vector<8x1xf32>
    %344 = tpu.reciprocal %343 {approx = true} : vector<8x1xf32> -> vector<8x1xf32>
    %345 = arith.truncf %341 : vector<8x8xf32> to vector<8x8xbf16>
    %cst_153 = arith.constant dense<0.000000e+00> : vector<8x4xf32>
    %346 = tpu.matmul %345, %335, %cst_153 {dimension_numbers = #tpu.dot_dimension_numbers<[1], [0], [0], [1], [0, 0, 1, 1], [], []>} : vector<8x8xbf16>, vector<8x4xbf16>, vector<8x4xf32> -> vector<8x4xf32>
    %347 = vector.broadcast %344 : vector<8x1xf32> to vector<8x4xf32>
    %348 = arith.mulf %346, %347 : vector<8x4xf32>
    %349 = arith.truncf %348 : vector<8x4xf32> to vector<8x4xbf16>
    %c5_154 = arith.constant 5 : index
    %c0_155 = arith.constant 0 : index
    %c0_156 = arith.constant 0 : index
    %350 = vector.load %arg9[%c5_154, %c0_155, %c0_156] : memref<8x4x32xbf16, #tpu.memory_space<vmem>>, vector<1x4x32xbf16>
    %351 = vector.shape_cast %350 : vector<1x4x32xbf16> to vector<4x32xbf16>
    %cst_157 = arith.constant dense<0.000000e+00> : vector<8x32xf32>
    %352 = tpu.matmul %349, %351, %cst_157 {dimension_numbers = #tpu.dot_dimension_numbers<[1], [0], [0], [1], [0, 0, 1, 1], [], []>} : vector<8x4xbf16>, vector<4x32xbf16>, vector<8x32xf32> -> vector<8x32xf32>
    %353 = arith.addf %332, %352 : vector<8x32xf32>
    %354 = vector.extract_strided_slice %35 {offsets = [0, 24], sizes = [8, 4], strides = [1, 1]} : vector<8x32xbf16> to vector<8x4xbf16>
    %355 = vector.extract_strided_slice %19 {offsets = [0, 24], sizes = [8, 4], strides = [1, 1]} : vector<8x32xbf16> to vector<8x4xbf16>
    %356 = vector.extract_strided_slice %27 {offsets = [0, 24], sizes = [8, 4], strides = [1, 1]} : vector<8x32xbf16> to vector<8x4xbf16>
    %cst_158 = arith.constant dense<0.000000e+00> : vector<8x8xf32>
    %357 = tpu.matmul %354, %355, %cst_158 {dimension_numbers = #tpu.dot_dimension_numbers<[1], [1], [0], [0], [0, 0, 1, 0], [], []>} : vector<8x4xbf16>, vector<8x4xbf16>, vector<8x8xf32> -> vector<8x8xf32>
    %cst_159 = arith.constant dense<0xFF800000> : vector<8xf32>
    %358 = vector.multi_reduction <maximumf>, %357, %cst_159 [1] : vector<8x8xf32> to vector<8xf32>
    %359 = vector.shape_cast %358 : vector<8xf32> to vector<8x1xf32>
    %360 = vector.broadcast %359 : vector<8x1xf32> to vector<8x8xf32>
    %361 = arith.subf %357, %360 : vector<8x8xf32>
    %362 = math.exp %361 : vector<8x8xf32>
    %cst_160 = arith.constant dense<0.000000e+00> : vector<8xf32>
    %363 = vector.multi_reduction <add>, %362, %cst_160 [1] : vector<8x8xf32> to vector<8xf32>
    %364 = vector.shape_cast %363 : vector<8xf32> to vector<8x1xf32>
    %365 = tpu.reciprocal %364 {approx = true} : vector<8x1xf32> -> vector<8x1xf32>
    %366 = arith.truncf %362 : vector<8x8xf32> to vector<8x8xbf16>
    %cst_161 = arith.constant dense<0.000000e+00> : vector<8x4xf32>
    %367 = tpu.matmul %366, %356, %cst_161 {dimension_numbers = #tpu.dot_dimension_numbers<[1], [0], [0], [1], [0, 0, 1, 1], [], []>} : vector<8x8xbf16>, vector<8x4xbf16>, vector<8x4xf32> -> vector<8x4xf32>
    %368 = vector.broadcast %365 : vector<8x1xf32> to vector<8x4xf32>
    %369 = arith.mulf %367, %368 : vector<8x4xf32>
    %370 = arith.truncf %369 : vector<8x4xf32> to vector<8x4xbf16>
    %c6_162 = arith.constant 6 : index
    %c0_163 = arith.constant 0 : index
    %c0_164 = arith.constant 0 : index
    %371 = vector.load %arg9[%c6_162, %c0_163, %c0_164] : memref<8x4x32xbf16, #tpu.memory_space<vmem>>, vector<1x4x32xbf16>
    %372 = vector.shape_cast %371 : vector<1x4x32xbf16> to vector<4x32xbf16>
    %cst_165 = arith.constant dense<0.000000e+00> : vector<8x32xf32>
    %373 = tpu.matmul %370, %372, %cst_165 {dimension_numbers = #tpu.dot_dimension_numbers<[1], [0], [0], [1], [0, 0, 1, 1], [], []>} : vector<8x4xbf16>, vector<4x32xbf16>, vector<8x32xf32> -> vector<8x32xf32>
    %374 = arith.addf %353, %373 : vector<8x32xf32>
    %375 = vector.extract_strided_slice %35 {offsets = [0, 28], sizes = [8, 4], strides = [1, 1]} : vector<8x32xbf16> to vector<8x4xbf16>
    %376 = vector.extract_strided_slice %19 {offsets = [0, 28], sizes = [8, 4], strides = [1, 1]} : vector<8x32xbf16> to vector<8x4xbf16>
    %377 = vector.extract_strided_slice %27 {offsets = [0, 28], sizes = [8, 4], strides = [1, 1]} : vector<8x32xbf16> to vector<8x4xbf16>
    %cst_166 = arith.constant dense<0.000000e+00> : vector<8x8xf32>
    %378 = tpu.matmul %375, %376, %cst_166 {dimension_numbers = #tpu.dot_dimension_numbers<[1], [1], [0], [0], [0, 0, 1, 0], [], []>} : vector<8x4xbf16>, vector<8x4xbf16>, vector<8x8xf32> -> vector<8x8xf32>
    %cst_167 = arith.constant dense<0xFF800000> : vector<8xf32>
    %379 = vector.multi_reduction <maximumf>, %378, %cst_167 [1] : vector<8x8xf32> to vector<8xf32>
    %380 = vector.shape_cast %379 : vector<8xf32> to vector<8x1xf32>
    %381 = vector.broadcast %380 : vector<8x1xf32> to vector<8x8xf32>
    %382 = arith.subf %378, %381 : vector<8x8xf32>
    %383 = math.exp %382 : vector<8x8xf32>
    %cst_168 = arith.constant dense<0.000000e+00> : vector<8xf32>
    %384 = vector.multi_reduction <add>, %383, %cst_168 [1] : vector<8x8xf32> to vector<8xf32>
    %385 = vector.shape_cast %384 : vector<8xf32> to vector<8x1xf32>
    %386 = tpu.reciprocal %385 {approx = true} : vector<8x1xf32> -> vector<8x1xf32>
    %387 = arith.truncf %383 : vector<8x8xf32> to vector<8x8xbf16>
    %cst_169 = arith.constant dense<0.000000e+00> : vector<8x4xf32>
    %388 = tpu.matmul %387, %377, %cst_169 {dimension_numbers = #tpu.dot_dimension_numbers<[1], [0], [0], [1], [0, 0, 1, 1], [], []>} : vector<8x8xbf16>, vector<8x4xbf16>, vector<8x4xf32> -> vector<8x4xf32>
    %389 = vector.broadcast %386 : vector<8x1xf32> to vector<8x4xf32>
    %390 = arith.mulf %388, %389 : vector<8x4xf32>
    %391 = arith.truncf %390 : vector<8x4xf32> to vector<8x4xbf16>
    %c7_170 = arith.constant 7 : index
    %c0_171 = arith.constant 0 : index
    %c0_172 = arith.constant 0 : index
    %392 = vector.load %arg9[%c7_170, %c0_171, %c0_172] : memref<8x4x32xbf16, #tpu.memory_space<vmem>>, vector<1x4x32xbf16>
    %393 = vector.shape_cast %392 : vector<1x4x32xbf16> to vector<4x32xbf16>
    %cst_173 = arith.constant dense<0.000000e+00> : vector<8x32xf32>
    %394 = tpu.matmul %391, %393, %cst_173 {dimension_numbers = #tpu.dot_dimension_numbers<[1], [0], [0], [1], [0, 0, 1, 1], [], []>} : vector<8x4xbf16>, vector<4x32xbf16>, vector<8x32xf32> -> vector<8x32xf32>
    %395 = arith.addf %374, %394 : vector<8x32xf32>
    %c0_174 = arith.constant 0 : index
    %c0_175 = arith.constant 0 : index
    %396 = vector.load %arg10[%c0_174, %c0_175] : memref<1x32xf32, #tpu.memory_space<vmem>>, vector<1x32xf32>
    %397 = vector.broadcast %396 : vector<1x32xf32> to vector<8x32xf32>
    %398 = arith.addf %395, %397 : vector<8x32xf32>
    %c0_176 = arith.constant 0 : index
    %c0_177 = arith.constant 0 : index
    %c0_178 = arith.constant 0 : index
    %399 = vector.load %arg12[%c0_176, %c0_177, %c0_178] : memref<1x8x32xf32, #tpu.memory_space<vmem>>, vector<1x8x32xf32>
    %400 = vector.shape_cast %399 : vector<1x8x32xf32> to vector<8x32xf32>
    %401 = vector.shape_cast %398 : vector<8x32xf32> to vector<1x8x32xf32>
    tpu.vector_store %arg12[%c0_176, %c0_177, %c0_178], %401 {strides = array<i32>} : memref<1x8x32xf32, #tpu.memory_space<vmem>>, vector<1x8x32xf32>,
    return
  }
  func.func @transform_0(%arg0: i32) -> (i32, i32, i32) {
    %c0_i32 = arith.constant 0 : i32
    %c0_i32_0 = arith.constant 0 : i32
    %c0_i32_1 = arith.constant 0 : i32
    return %arg0, %c0_i32, %c0_i32_0 : i32, i32, i32
  }
  func.func @transform_1(%arg0: i32) -> (i32, i32, i32) {
    %c0_i32 = arith.constant 0 : i32
    %c0_i32_0 = arith.constant 0 : i32
    %c0_i32_1 = arith.constant 0 : i32
    return %arg0, %c0_i32, %c0_i32_0 : i32, i32, i32
  }
  func.func @transform_2(%arg0: i32) -> (i32, i32, i32) {
    %c0_i32 = arith.constant 0 : i32
    %c0_i32_0 = arith.constant 0 : i32
    %c0_i32_1 = arith.constant 0 : i32
    %c0_i32_2 = arith.constant 0 : i32
    return %c0_i32, %c0_i32_0, %c0_i32_1 : i32, i32, i32
  }
  func.func @transform_3(%arg0: i32) -> (i32, i32, i32) {
    %c0_i32 = arith.constant 0 : i32
    %c0_i32_0 = arith.constant 0 : i32
    %c0_i32_1 = arith.constant 0 : i32
    %c0_i32_2 = arith.constant 0 : i32
    return %c0_i32, %c0_i32_0, %c0_i32_1 : i32, i32, i32
  }
  func.func @transform_4(%arg0: i32) -> (i32, i32, i32) {
    %c0_i32 = arith.constant 0 : i32
    %c0_i32_0 = arith.constant 0 : i32
    %c0_i32_1 = arith.constant 0 : i32
    %c0_i32_2 = arith.constant 0 : i32
    return %c0_i32, %c0_i32_0, %c0_i32_1 : i32, i32, i32
  }
  func.func @transform_5(%arg0: i32) -> (i32, i32, i32) {
    %c0_i32 = arith.constant 0 : i32
    %c0_i32_0 = arith.constant 0 : i32
    %c0_i32_1 = arith.constant 0 : i32
    %c0_i32_2 = arith.constant 0 : i32
    return %c0_i32, %c0_i32_0, %c0_i32_1 : i32, i32, i32
  }
  func.func @transform_6(%arg0: i32) -> (i32, i32, i32) {
    %c0_i32 = arith.constant 0 : i32
    %c0_i32_0 = arith.constant 0 : i32
    %c0_i32_1 = arith.constant 0 : i32
    %c0_i32_2 = arith.constant 0 : i32
    return %c0_i32, %c0_i32_0, %c0_i32_1 : i32, i32, i32
  }
  func.func @transform_7(%arg0: i32) -> (i32, i32) {
    %c0_i32 = arith.constant 0 : i32
    %c0_i32_0 = arith.constant 0 : i32
    %c0_i32_1 = arith.constant 0 : i32
    return %c0_i32, %c0_i32_0 : i32, i32
  }
  func.func @transform_8(%arg0: i32) -> (i32, i32, i32) {
    %c0_i32 = arith.constant 0 : i32
    %c0_i32_0 = arith.constant 0 : i32
    %c0_i32_1 = arith.constant 0 : i32
    %c0_i32_2 = arith.constant 0 : i32
    return %c0_i32, %c0_i32_0, %c0_i32_1 : i32, i32, i32
  }
  func.func @transform_9(%arg0: i32) -> (i32, i32) {
    %c0_i32 = arith.constant 0 : i32
    %c0_i32_0 = arith.constant 0 : i32
    %c0_i32_1 = arith.constant 0 : i32
    return %c0_i32, %c0_i32_0 : i32, i32
  }
  func.func @transform_10(%arg0: i32) -> (i32, i32, i32) {
    %c0_i32 = arith.constant 0 : i32
    %c0_i32_0 = arith.constant 0 : i32
    %c0_i32_1 = arith.constant 0 : i32
    return %arg0, %c0_i32, %c0_i32_0 : i32, i32, i32
  }
  func.func @transform_11(%arg0: i32) -> (i32, i32, i32) {
    %c0_i32 = arith.constant 0 : i32
    %c0_i32_0 = arith.constant 0 : i32
    %c0_i32_1 = arith.constant 0 : i32
    return %arg0, %c0_i32, %c0_i32_0 : i32, i32, i32
  }
}

</mosaic_0001>

<bundles_post_ra>
// kernel: tpu_custom_call.1
= control target key start
LH: loop header
LB: loop body
LE: loop exit
PB: predicated region body
PF: predicated region fallthrough
CT: control target
= control target key end

     0   :  { %s5520_s0 = inlined_call_operand.hbm [shape: bf16[2,8,32], index: 0, kind: input, shape index: {}]   ;;  %s5521_s1 = inlined_call_operand.hbm [shape: bf16[2,8,32], index: 1, kind: input, shape index: {}]   ;;  %s5522_s2 = inlined_call_operand.hbm [shape: bf16[3,32,32], index: 2, kind: input, shape index: {}]   ;;  %s5523_s3 = inlined_call_operand.vmem [shape: f32[3,1,32], index: 3, kind: input, shape index: {}]   ;;  %s5524_s4 = inlined_call_operand.hbm [shape: bf16[3,32,32], index: 4, kind: input, shape index: {}]   ;;  %s5525_s5 = inlined_call_operand.vmem [shape: f32[3,1,32], index: 5, kind: input, shape index: {}]   ;;  %s5526_s6 = inlined_call_operand.vmem [shape: bf16[8,4,32], index: 6, kind: input, shape index: {}]   ;;  %s5527_s7 = inlined_call_operand.vmem [shape: f32[1,32], index: 7, kind: input, shape index: {}]   ;;  %s5528_s8 = inlined_call_operand.hbm [shape: bf16[8,4,32], index: 8, kind: input, shape index: {}]   ;;  %s5529_s9 = inlined_call_operand.vmem [shape: f32[1,32], index: 9, kind: input, shape index: {}]   ;;  %s5530_s10 = inlined_call_operand.hbm [shape: f32[2,8,32], index: 10, kind: output, shape index: {0}]   ;;  %s5531_s11 = inlined_call_operand.hbm [shape: f32[2,8,32], index: 11, kind: output, shape index: {1}]  }
   0x1   :  { %5540 = sst [smem:[#allocation22_spill]] %s5522_s2 }
   0x2   :  { %5541 = sst [smem:[#allocation23_spill]] %s5524_s4 }
   0x3   :  { %5542 = sst [smem:[#allocation24_spill]] %s5528_s8 }
   0x4   :  { %5543 = sst [smem:[#allocation25_spill]] %s5529_s9 }
   0x5   :  { %5544 = sst [smem:[#allocation26_spill]] %s5530_s10 }
   0x6   :  { %5545 = sst [smem:[#allocation27_spill]] %s5531_s11 }
   0x7   :  { %17 = vsyncpa [#allocation3], 0 }
   0x8   :  { %19 = vsyncpa [#allocation3 + $0x1], 0 }
   0x9   :  { %20 = vsyncpa [#allocation6], 0 }
   0xa   :  { %22 = vsyncpa [#allocation6 + $0x1], 0 }
   0xb   :  { %23 = vsyncpa [#allocation9], 0 }
   0xc   :  { %24 = vsyncpa [#allocation4], 0 }
   0xd   :  { %26 = vsyncpa [#allocation4 + $0x1], 0 }
   0xe   :  { %27 = vsyncpa [#allocation13], 0 }
   0xf   :  { %29 = vsyncpa [#allocation13 + $0x1], 0  ;;  %s4721_s17 = smov 0   ;;  %s4723_s18 = smov 0  }
  0x10   :  { %s4725_s19 = smov 0   ;;  %s4727_s20 = smov 0  }
  0x11 LB: > { %5546 = sst [smem:[#allocation20_spill]] %s4627_s17  ;;  %s4742_s21 = sadd.s32 4294967295, %s4639_s20   ;;  %s4639_s20 = sphi %s4727_s20, %s5577_s20   ;;  %s4635_s19 = sphi %s4725_s19, %s5576_s19   ;;  %s4631_s18 = sphi %s4723_s18, %s5575_s18   ;;  %s4627_s17 = sphi %s4721_s17, %s5574_s17  }
  0x12   : > { %s3650_s22 = sadd.s32 4294967294, %s4639_s20   ;;  %p55_p0 = scmp.ne.s32.totalorder %s4631_s18, %s4627_s17 }
  0x13   : > { %p5533_p1 = scmp.eq.s32.totalorder %s4742_s21, 0  ;;  %p279_p3 = scmp.eq.s32.totalorder %s3650_s22, 1 }
  0x14   : > { %p3651_p5 = scmp.ge.s32.totalorder %s4639_s20, 1  ;;  %p312_p7 = scmp.lt.s32.totalorder %s4639_s20, 3 }
  0x15   : > { %p4751_p4 = por %p5533_p1, %p55_p0  ;;  %p4756_p6 = por %p279_p3, %p55_p0 }
  0x16   : > { %p4761_p8 = pnand %p3651_p5, %p312_p7  ;;  %s4641_s26 = smov [#allocation7]  }
  0x17   : > { %s5547_s23 = scalar_select %p4751_p4, 1, 0 }
  0x18   : > { %s5548_s24 = scalar_select %p4756_p6, 1, 0 }
  0x19   : > { %s5550_s25 = scalar_select %p4761_p8, 1, 0 }
  0x1a   : > { %5549 = sst [smem:[#allocation21_spill]] %s5548_s24  ;;  %s324_s27 = sshll.u32 %s4641_s26, 4  ;;  %s4765_s27 = int_to_ptr.vmem [resolvable:$true] %s324_s27 }
  0x1b   : > { %p4229_p9 = pneg %p4761_p8  ;;  %s4642_s29 = smov [#allocation8]  }
  0x1c   : > { %s340_s30 = sshll.u32 %s4642_s29, 4  ;;  %s4643_s12 = smov [#allocation10]   ;;  %s4776_s30 = int_to_ptr.vmem [resolvable:$true] %s340_s30 }
  0x1d   : > { %p4772_p11 = pnand %p4229_p9, %p5533_p1  ;;  %s4778_s13 = sshll.u32 %s4643_s12, 4  ;;  %s363_s13 = int_to_ptr.vmem [resolvable:$true] %s4778_s13 }
  0x1e   : > { %s5552_s2 = sld [smem:[#allocation22_spill]] }
  0x1f   : > { %p4788_p13 = pneg %p4772_p11 }
  0x24   : > { %s4385_s16 = scalar_lea.hbm %s5552_s2, 768 }
  0x25   : > { %p4386_p12 = scmp.ne.s32.totalorder %s5552_s2, %s4385_s16  ;;  %p4392_p5 = scmp.lt.u32.totalorder %s4385_s16, %s5552_s2 }
  0x27   : > { %p4388_p0 = pnand %p4788_p13, %p4386_p12 }
  0x29   : > { %p4389_p3 = pneg %p4388_p0 }
  0x2b   : > { %p4394_p7 = pnand %p4392_p5, %p4389_p3 }
  0x2d   : > { %4397 = shalt.err (!%p4394_p7)
}
  0x2e   : > { %s4398_s14 = scalar_lea.vmem %s4765_s27, 768  ;;  %p4406_p2 = scmp.lt.s32.totalorder %s4765_s27, %s4765_s27 }
  0x2f   : > { %p4399_p9 = scmp.ne.s32.totalorder %s4765_s27, %s4398_s14  ;;  %p4407_p6 = scmp.lt.s32.totalorder %s4398_s14, %s4398_s14 }
  0x31   : > { %p4401_p10 = pnand %p4399_p9, %p4788_p13  ;;  %p4408_p12 = por %p4407_p6, %p4406_p2 }
  0x33   : > { %p4402_p1 = pneg %p4401_p10 }
  0x35   : > { %p4409_p0 = pnand %p4408_p12, %p4402_p1 }
  0x37   : > { %4412 = shalt.err (!%p4409_p0)
}
  0x38   : > { %s4644_s15 = smov 64   ;;  %s4645_s16 = smov 4  }
  0x39   : > { %4232 = dma.hbm_to_vmem [thread:$0]  (!%p4772_p11), %s5552_s2, 768, %s4765_s27, [#allocation6], %s4644_s15, %s4644_s15, %s4645_s16  }
  0x3a   : > { %s5554_s4 = sld [smem:[#allocation23_spill]] }
  0x40   : > { %s4413_s17 = scalar_lea.hbm %s5554_s4, 768 }
  0x41   : > { %p4414_p2 = scmp.ne.s32.totalorder %s5554_s4, %s4413_s17  ;;  %p4420_p10 = scmp.lt.u32.totalorder %s4413_s17, %s5554_s4 }
  0x43   : > { %p4416_p1 = pnand %p4414_p2, %p4788_p13 }
  0x45   : > { %p4417_p6 = pneg %p4416_p1 }
  0x47   : > { %p4422_p3 = pnand %p4420_p10, %p4417_p6 }
  0x49   : > { %4425 = shalt.err (!%p4422_p3)
}
  0x4a   : > { %s4426_s27 = scalar_lea.vmem %s4776_s30, 768  ;;  %p4434_p12 = scmp.lt.s32.totalorder %s4776_s30, %s4776_s30 }
  0x4b   : > { %p4427_p5 = scmp.ne.s32.totalorder %s4776_s30, %s4426_s27  ;;  %p4435_p0 = scmp.lt.s32.totalorder %s4426_s27, %s4426_s27 }
  0x4d   : > { %p4429_p7 = pnand %p4427_p5, %p4788_p13  ;;  %p4436_p2 = por %p4435_p0, %p4434_p12 }
  0x4f   : > { %p4430_p9 = pneg %p4429_p7 }
  0x51   : > { %p4437_p1 = pnand %p4436_p2, %p4430_p9 }
  0x53   : > { %4440 = shalt.err (!%p4437_p1)
}
  0x54   : > { %4235 = dma.hbm_to_vmem [thread:$0]  (!%p4772_p11), %s5554_s4, 768, %s4776_s30, [#allocation9], %s4644_s15, %s4644_s15, %s4645_s16  }
  0x55   : > { %s5555_s8 = sld [smem:[#allocation24_spill]] }
  0x5b   : > { %s4441_s22 = scalar_lea.hbm %s5555_s8, 256 }
  0x5c   : > { %p4442_p6 = scmp.ne.s32.totalorder %s5555_s8, %s4441_s22  ;;  %p4448_p5 = scmp.lt.u32.totalorder %s4441_s22, %s5555_s8 }
  0x5e   : > { %p4444_p10 = pnand %p4442_p6, %p4788_p13 }
  0x60   : > { %p4445_p3 = pneg %p4444_p10 }
  0x62   : > { %p4450_p7 = pnand %p4448_p5, %p4445_p3 }
  0x64   : > { %4453 = shalt.err (!%p4450_p7)
}
  0x65   : > { %s4454_s27 = scalar_lea.vmem %s363_s13, 256  ;;  %p4462_p2 = scmp.lt.s32.totalorder %s363_s13, %s363_s13 }
  0x66   : > { %p4455_p9 = scmp.ne.s32.totalorder %s363_s13, %s4454_s27  ;;  %p4463_p1 = scmp.lt.s32.totalorder %s4454_s27, %s4454_s27 }
  0x68   : > { %p4457_p12 = pnand %p4455_p9, %p4788_p13  ;;  %p4464_p4 = por %p4463_p1, %p4462_p2 }
  0x6a   : > { %p4458_p0 = pneg %p4457_p12 }
  0x6c   : > { %p4465_p8 = pnand %p4464_p4, %p4458_p0 }
  0x6e   : > { %4468 = shalt.err (!%p4465_p8)
}
  0x6f   : > { %s4646_s30 = smov 32   ;;  %s4647_s24 = smov 2  }
  0x70   : > { %4238 = dma.hbm_to_vmem [thread:$0]  (!%p4772_p11), %s5555_s8, 256, %s363_s13, [#allocation9], %s4646_s30, %s4646_s30, %s4647_s24  }
  0x71   : > { %s4852_s9 = sadd.s32 1, %s4639_s20   ;;  %s42_s11 = sadd.s32 1, %s4635_s19 }
  0x72   : > { %s39_s10 = ssub.s32 %s4639_s20, %s4852_s9  ;;  %p49_p8 = scmp.ne.s32.totalorder %s4635_s19, %s4631_s18 }
  0x73   : > { %p40_p4 = scmp.eq.s32.totalorder %s39_s10, 0  ;;  %p50_p13 = scmp.eq.s32.totalorder %s4639_s20, 0 }
  0x74   : > { %p4256_p6 = scmp.lt.s32.totalorder %s4639_s20, 2  ;;  %p5556_p3 = scmp.eq.s32.totalorder %s4742_s21, 1 }
  0x75   : > { %s4862_s17 = scalar_select %p40_p4, %s4635_s19, %s42_s11  }
  0x76   : > { %p51_p10 = por %p50_p13, %p49_p8  ;;  %p4866_p5 = por %p5556_p3, %p49_p8 }
  0x77   : > { %s379_s28 = sand.u32 1, %s4635_s19   ;;  %s3657_s26 = sshll.u32 %s4639_s20, 6 }
  0x78   : > { %s5557_s22 = scalar_select %p4866_p5, 1, 0 }
  0x79   : > { %s4872_s13 = sshll.u32 %s379_s28, 2  ;;  %s4877_s14 = scalar_lea.hbm %s5520_s0, %s3657_s26 }
  0x7a   : > { %s383_s27 = scalar_lea.vmem [#allocation2], %s4872_s13  ;;  %p4880_p11 = pnand %p4256_p6, %p51_p10 }
  0x7b   : > { %s390_s30 = sshll.u32 %s383_s27, 4  ;;  %s4889_s10 = scalar_lea.hbm %s5521_s1, %s3657_s26  ;;  %s4884_s30 = int_to_ptr.vmem [resolvable:$true] %s390_s30 }
  0x7c   : > { %s380_s11 = scalar_lea.sflag [#allocation3], %s379_s28  ;;  %s4469_s29 = scalar_lea.hbm %s4877_s14, 64 }
  0x7d   : > { %p4470_p7 = scmp.ne.s32.totalorder %s4877_s14, %s4469_s29  ;;  %p4471_p9 = pneg %p4880_p11 }
  0x7e   : > { %s4474_s2 = scalar_lea.hbm %s5520_s0, 128  ;;  %p4475_p2 = scmp.lt.u32.totalorder %s4877_s14, %s5520_s0 }
  0x7f   : > { %p4472_p12 = pnand %p4471_p9, %p4470_p7  ;;  %p4476_p1 = scmp.lt.u32.totalorder %s4474_s2, %s4469_s29 }
  0x80   : > { %p4478_p8 = scmp.lt.u32.totalorder %s4469_s29, %s4877_s14 }
  0x81   : > { %p4473_p0 = pneg %p4472_p12  ;;  %p4477_p4 = por %p4476_p1, %p4475_p2 }
  0x83   : > { %p4479_p13 = por %p4478_p8, %p4477_p4 }
  0x85   : > { %p4480_p6 = pnand %p4479_p13, %p4473_p0 }
  0x87   : > { %4483 = shalt.err (!%p4480_p6)
}
  0x88   : > { %s4484_s28 = scalar_lea.vmem %s4884_s30, 64  ;;  %s4648_s26 = smov [#allocation2]  }
  0x89   : > { %p4485_p10 = scmp.ne.s32.totalorder %s4884_s30, %s4484_s28  ;;  %s4489_s15 = sshll.u32 %s4648_s26, 4  ;;  %s4490_s15 = int_to_ptr.vmem [resolvable:$false] %s4489_s15 }
  0x8a   : > { %s4491_s4 = scalar_lea.vmem %s4490_s15, 128  ;;  %p4492_p12 = scmp.lt.s32.totalorder %s4884_s30, %s4490_s15 }
  0x8b   : > { %p4487_p3 = pnand %p4485_p10, %p4471_p9  ;;  %p4493_p2 = scmp.lt.s32.totalorder %s4491_s4, %s4484_s28 }
  0x8d   : > { %p4488_p7 = pneg %p4487_p3  ;;  %p4494_p1 = por %p4493_p2, %p4492_p12 }
  0x8f   : > { %p4495_p4 = pnand %p4494_p1, %p4488_p7 }
  0x91   : > { %4498 = shalt.err (!%p4495_p4)
}
  0x92   : > { %4242 = dma.hbm_to_vmem [thread:$0]  (!%p4880_p11), %s4877_s14, 64, %s4884_s30, %s380_s11  }
  0x93   : > { %s397_s2 = sand.u32 1, %s4639_s20   ;;  %s401_s8 = scalar_lea.vmem [#allocation5], %s4872_s13 }
  0x94   : > { %s408_s16 = sshll.u32 %s401_s8, 4  ;;  %s398_s29 = scalar_lea.sflag [#allocation6], %s397_s2  ;;  %s409_s16 = int_to_ptr.vmem [resolvable:$true] %s408_s16 }
  0x95   : > { %s4499_s12 = scalar_lea.hbm %s4889_s10, 64  ;;  %s4504_s26 = scalar_lea.hbm %s5521_s1, 128 }
  0x96   : > { %p4500_p0 = scmp.ne.s32.totalorder %s4889_s10, %s4499_s12  ;;  %p4505_p6 = scmp.lt.u32.totalorder %s4889_s10, %s5521_s1 }
  0x97   : > { %p4506_p10 = scmp.lt.u32.totalorder %s4504_s26, %s4499_s12  ;;  %p4508_p7 = scmp.lt.u32.totalorder %s4499_s12, %s4889_s10 }
  0x98   : > { %p4502_p8 = pnand %p4500_p0, %p4471_p9 }
  0x99   : > { %p4507_p3 = por %p4506_p10, %p4505_p6 }
  0x9a   : > { %p4503_p13 = pneg %p4502_p8 }
  0x9b   : > { %p4509_p12 = por %p4508_p7, %p4507_p3 }
  0x9d   : > { %p4510_p2 = pnand %p4509_p12, %p4503_p13 }
  0x9f   : > { %4513 = shalt.err (!%p4510_p2)
}
  0xa0   : > { %s4514_s13 = scalar_lea.vmem %s409_s16, 64  ;;  %s4649_s14 = smov [#allocation5]  }
  0xa1   : > { %p4515_p1 = scmp.ne.s32.totalorder %s409_s16, %s4514_s13  ;;  %s4519_s30 = sshll.u32 %s4649_s14, 4  ;;  %s4520_s30 = int_to_ptr.vmem [resolvable:$false] %s4519_s30 }
  0xa2   : > { %s4521_s11 = scalar_lea.vmem %s4520_s30, 128  ;;  %p4522_p8 = scmp.lt.s32.totalorder %s409_s16, %s4520_s30 }
  0xa3   : > { %p4517_p4 = pnand %p4515_p1, %p4471_p9  ;;  %p4523_p5 = scmp.lt.s32.totalorder %s4521_s11, %s4514_s13 }
  0xa5   : > { %p4518_p0 = pneg %p4517_p4  ;;  %p4524_p6 = por %p4523_p5, %p4522_p8 }
  0xa7   : > { %p4525_p10 = pnand %p4524_p6, %p4518_p0 }
  0xa9   : > { %4528 = shalt.err (!%p4525_p10)
}
  0xaa   : > { %4245 = dma.hbm_to_vmem [thread:$0]  (!%p4880_p11), %s4889_s10, 64, %s409_s16, %s398_s29  }
  0xab   : > { %p5559_p13 = scmp.ne.s32.totalorder %s5550_s25, 0 }
  0xac   : > { %s4940_s2 = sand.u32 (!%p5559_p13), 1, %s4631_s18   ;;  %p5560_p9 = scmp.ne.s32.totalorder (!%p5559_p13), %s5547_s23, 0 }
  0xad   : > { %417 = sbr.rel (%p5559_p13) target bundleno = 6753 (0x1a61), region = 60  ;;  %s3661_s8 = sshll.u32 (!%p5559_p13), %s4940_s2, 2 }
  0xae   : > { %s420_s12 = scalar_lea.sflag (!%p5559_p13), [#allocation3], %s4940_s2  ;;  %s423_s27 = scalar_lea.vmem (!%p5559_p13), [#allocation2], %s3661_s8 }
  0xb4   : > { %4602 = dma.done.wait (%p5560_p9), %s420_s12, 64  }
  0xb5   : > { %4604 = vsyncadd (%p5560_p9), %s420_s12, 4294967232  ;;  %s428_s24 = sand.u32 1, %s4742_s21   ;;  %s4949_s25 = scalar_lea.vmem [#allocation5], %s3661_s8 }
  0xb6   : > { %s429_s10 = scalar_lea.sflag [#allocation6], %s428_s24 }
  0xb7   : > { %4606 = dma.done.wait (%p5560_p9), %s429_s10, 64  }
  0xb8   : > { %4608 = vsyncadd (%p5560_p9), %s429_s10, 4294967232  ;;  %p5561_p5 = scmp.eq.s32.totalorder %s4742_s21, 0 }
  0xba   : > { %4610 = dma.done.wait (%p5561_p5), [#allocation6], 768   ;;  %p5562_p11 = pmov %p5561_p5 }
  0xbb   : > { %p5563_p3 = pmov %p5561_p5 }
  0xbc   : > { %4612 = vsyncadd (%p5562_p11), [#allocation6], 4294966528 }
  0xbd   : > { %4614 = dma.done.wait (%p5563_p3), [#allocation9], 1024   ;;  %p5564_p7 = pmov %p5563_p3 }
  0xbe   : > { %v4650_v0 = vmov 0.0   ;;  %vm4651_vm0 = vmmov 0   ;;  %v4309_v1 = vld [vmem:[#allocation7] sm:$0xff]   ;;  %v4310_v2 = vld [vmem:[#allocation7 + $0x8] sm:$0xff]   ;;  %v4311_v3 = vld [vmem:[#allocation7 + $0x10] sm:$0xff]   ;;  %vm519_vm1 = vcmask 261120  }
  0xbf   : > { %4616 = vsyncadd (%p5564_p7), [#allocation9], 4294966272  ;;  %3873 = vmatprep.subr.bf16.mxu0 %v4650_v0  ;;  %3877 = vmatprep.mubr.msk.bf16.mxu0 %vm4651_vm0, %v4650_v0  ;;  %v494_v4 = vld [vmem:[%s423_s27] sm:$0xf]  ;;  %v4313_v5 = vld [vmem:[#allocation7 + $0x18] sm:$0xff]   ;;  %vm895_vm2 = vcmask 31744  }
  0xc0   : > { %3881 = vmatprep.subr.bf16.mxu1 %v4650_v0  ;;  %3885 = vmatprep.mubr.msk.bf16.mxu1 %vm4651_vm0, %v4650_v0  ;;  %v4312_v6 = vld [vmem:[#allocation7 + $0x20] sm:$0xff]   ;;  %v4315_v7 = vld [vmem:[#allocation8] sm:$0xff]   ;;  %v4314_v8 = vld [vmem:[#allocation7 + $0x28] sm:$0xff]   ;;  %s4652_s4 = smov 124   ;;  %s4653_s13 = smov 120   ;;  %vm942_vm3 = vcmask 64512  }
  0xc1   : > { %3874 = vmatpush3.bf16.msra.mxu0 %v4309_v1  ;;  %3882 = vmatpush3.bf16.msra.mxu1 %v4311_v3  ;;  %v4317_v9 = vld [vmem:[#allocation8 + $0x8] sm:$0xff]   ;;  %v4316_v10 = vld [vmem:[#allocation8 + $0x10] sm:$0xff]   ;;  %v4319_v12 = vld [vmem:[#allocation8 + $0x20] sm:$0xff]   ;;  %vm957_vm4 = vcmask 1043456   ;;  %s4654_s14 = smov 116   ;;  %vm1123_vm5 = vcmask 1041408  }
  0xc2   : > { %3875 = vmatprep.subr.bf16.mxu0 %v4650_v0  ;;  %3883 = vmatprep.subr.bf16.mxu1 %v4650_v0  ;;  %v495_v11 = vld [vmem:[%s4949_s25] sm:$0xf]  ;;  %v4318_v13 = vld [vmem:[#allocation8 + $0x18] sm:$0xff]   ;;  %v3687_v30 = vld [vmem:[%s5525_s5 + $0x1] ss:$0 sm:$0xff]  ;;  %s4655_s27 = smov 112  }
  0xc3   : > { %v4320_v14 = vld [vmem:[#allocation8 + $0x28] sm:$0xff]   ;;  %v3668_v32 = vld [vmem:[%s5523_s3] ss:$0 sm:$0xff]  ;;  %v3692_v37 = vld [vmem:[%s5525_s5 + $0x2] ss:$0 sm:$0xff]  ;;  %s4656_s25 = smov 108  }
  0xc4   : > { %s4657_s29 = smov 104   ;;  %s4658_s15 = smov 100  }
  0xc5   : > { %3876 = vmatpush3.bf16.msra.mxu0 %v4310_v2  ;;  %3884 = vmatpush3.bf16.msra.mxu1 %v4313_v5  ;;  %s3466_s10 = scalar_lea.sflag [#allocation4], %s4940_s2  ;;  %p5566_p2 = scmp.ne.s32.totalorder %s5557_s22, 0 }
  0xc6   : > { %3889 = vmatprep.subr.bf16.mxu0 %v4650_v0  ;;  %3897 = vmatprep.subr.bf16.mxu1 %v4650_v0  ;;  %s4659_s16 = smov [#allocation11]  }
  0xc7   : > { %s4533_s28 = sshll.u32 %s4659_s16, 4  ;;  %s4534_s28 = int_to_ptr.vmem [resolvable:$false] %s4533_s28 }
  0xc8   : > { %3878 = vmatmul.mubr.msk.bf16.vlgmr.msra.gmra.mrb[0].mxu0 %vm519_vm1, %v494_v4  ;;  %3886 = vmatmul.mubr.msk.bf16.vlgmr.msra.gmra.mrb[0].mxu1 %vm519_vm1, %v494_v4  ;;  %s4535_s26 = scalar_lea.vmem %s4534_s28, 256 }
  0xc9   : > { %3890 = vmatpush3.bf16.msra.mxu0 %v4312_v6  ;;  %3893 = vmatprep.mubr.msk.bf16.mxu0 %vm4651_vm0, %v4650_v0 }
  0xca   : > { %3891 = vmatprep.subr.bf16.mxu0 %v4650_v0  ;;  %3898 = vmatpush3.bf16.msra.mxu1 %v4315_v7 }
  0xcb   : > { %3901 = vmatprep.mubr.msk.bf16.mxu1 %vm4651_vm0, %v4650_v0  ;;  %3899 = vmatprep.subr.bf16.mxu1 %v4650_v0 }
  0xcd   : > { %3892 = vmatpush3.bf16.msra.mxu0 %v4314_v8 }
  0xce   : > { %3905 = vmatprep.subr.bf16.mxu0 %v4650_v0  ;;  %3900 = vmatpush3.bf16.msra.mxu1 %v4317_v9 }
  0xcf   : > { %3913 = vmatprep.subr.bf16.mxu1 %v4650_v0 }
  0xd0   : > { %3894 = vmatmul.mubr.msk.bf16.vlgmr.msra.gmra.mrb[4].mxu0 %vm519_vm1, %v494_v4 }
  0xd1   : > { %3906 = vmatpush3.bf16.msra.mxu0 %v4316_v10  ;;  %3909 = vmatprep.mubr.msk.bf16.mxu0 %vm4651_vm0, %v4650_v0 }
  0xd2   : > { %3907 = vmatprep.subr.bf16.mxu0 %v4650_v0  ;;  %3902 = vmatmul.mubr.msk.bf16.vlgmr.msra.gmra.mrb[4].mxu1 %vm519_vm1, %v495_v11 }
  0xd3   : > { %3914 = vmatpush3.bf16.msra.mxu1 %v4319_v12  ;;  %3917 = vmatprep.mubr.msk.bf16.mxu1 %vm4651_vm0, %v4650_v0 }
  0xd4   : > { %3915 = vmatprep.subr.bf16.mxu1 %v4650_v0 }
  0xd5   : > { %3908 = vmatpush3.bf16.msra.mxu0 %v4318_v13 }
  0xd6   : > { %3921 = vmatprep.subr.bf16.mxu0 %v4650_v0 }
  0xd7   : > { %3916 = vmatpush3.bf16.msra.mxu1 %v4320_v14 }
  0xd8   : > { %3910 = vmatmul.mubr.msk.bf16.vlgmr.msra.gmra.mrb[8].mxu0 %vm519_vm1, %v495_v11  ;;  %3927 = vmatprep.subr.bf16.mxu1 %v4650_v0 }
  0xd9   : > { %3923 = vmatprep.mubr.msk.bf16.mxu0 %vm4651_vm0, %v4650_v0 }
  0xda   : > { %3918 = vmatmul.mubr.msk.bf16.vlgmr.msra.gmra.mrb[8].mxu1 %vm519_vm1, %v495_v11  ;;  %v1003_v11 = vld [vmem:[%s5526_s6] sm:$0x3] }
  0xdb   : > { %3929 = vmatprep.mubr.msk.bf16.mxu1 %vm4651_vm0, %v4650_v0 }
 0x19b   : > { %v557_v15 = vpop.f32.mrb[0].mxu0  ;;  %v5000_v19 = vpop.f32.mrb[0].mxu1 }
 0x19c   : > { %v3879_v16 = vpop.f32.mrb[1].mxu0  ;;  %v3887_v20 = vpop.f32.mrb[1].mxu1  ;;  %v558_v38 = vadd.f32 %v3668_v32, %v557_v15  ;;  %v1171_v15 = vsel %vm1123_vm5, %v1003_v11, 0 }
 0x19d   : > { %v560_v17 = vpop.f32.mrb[2].mxu0  ;;  %v626_v21 = vpop.f32.mrb[2].mxu1  ;;  %v3700_v16 = vld [vmem:[%s5526_s6 + $0x2] sm:$0x3] }
 0x19e   : > { %v3880_v18 = vpop.f32.mrb[3].mxu0  ;;  %v3888_v22 = vpop.f32.mrb[3].mxu1  ;;  %v5021_v47 = vpack.c.bf16 %v558_v38, %v558_v38  ;;  %v1125_v17 = vsel %vm1123_vm5, %v3700_v16, 0 }
 0x1a3   : > { %v5002_v23 = vpop.f32.mrb[4].mxu0 }
 0x1a4   : > { %v3895_v24 = vpop.f32.mrb[5].mxu0 }
 0x1a5   : > { %v692_v25 = vpop.f32.mrb[6].mxu0  ;;  %v5004_v27 = vpop.f32.mrb[4].mxu1 }
 0x1a6   : > { %v3896_v26 = vpop.f32.mrb[7].mxu0  ;;  %v3903_v28 = vpop.f32.mrb[5].mxu1 }
 0x1a7   : > { %v759_v29 = vpop.f32.mrb[6].mxu1 }
 0x1a8   : > { %v3904_v31 = vpop.f32.mrb[7].mxu1 }
 0x1ab   : > { %v822_v33 = vpop.f32.mrb[8].mxu0 }
 0x1ac   : > { %v823_v34 = vadd.f32 %v3687_v30, %v822_v33  ;;  %v3911_v35 = vpop.f32.mrb[9].mxu0 }
 0x1ad   : > { %v825_v36 = vpop.f32.mrb[10].mxu0  ;;  %v888_v41 = vpop.f32.mrb[8].mxu1 }
 0x1ae   : > { %v5015_v39 = vpack.c.bf16 %v823_v34, %v823_v34  ;;  %v3912_v40 = vpop.f32.mrb[11].mxu0  ;;  %v3919_v42 = vpop.f32.mrb[9].mxu1  ;;  %v889_v44 = vadd.f32 %v3692_v37, %v888_v41 }
 0x1af   : > { %v891_v45 = vpop.f32.mrb[10].mxu1 }
 0x1b0   : > { %1008 = vrot.lane.b32.xlu0 %v5015_v39, %s4652_s4  ;;  %v900_v43 = vsel %vm895_vm2, %v5015_v39, 0  ;;  %v3920_v46 = vpop.f32.mrb[11].mxu1  ;;  %v5024_v48 = vpack.c.bf16 %v889_v44, %v889_v44 }
 0x1b1   : > { %3922 = vmatpush3.bf16.xpose.msra.mxu0 %v900_v43 }
 0x1b2   : > { %3933 = vmatprep.subr.bf16.mxu0 %v4650_v0  ;;  %v959_v57 = vsel %vm957_vm4, %v5024_v48, 0 }
 0x1b3   : > { %3928 = vmatpush3.bf16.msra.mxu1 %v959_v57 }
 0x1b4   : > { %1005 = vrot.lane.b32.xlu0 %v5021_v47, %s4652_s4  ;;  %3939 = vmatprep.subr.bf16.mxu1 %v4650_v0 }
 0x1b8   : > { %1068 = vrot.lane.b32.xlu0 %v5024_v48, %s4652_s4  ;;  %3924 = vmatmul.mubr.msk.bf16.vlgmr.msra.gmra.mrb[12].mxu0 %vm895_vm2, %v5021_v47 }
 0x1b9   : > { %3935 = vmatprep.mubr.msk.bf16.mxu0 %vm4651_vm0, %v4650_v0 }
 0x1bc   : > { %1215 = vrot.lane.b32.xlu0 %v5015_v39, %s4653_s13 }
 0x222   : > { %v1009_v49 = vpop.permute.xlu0 %1008 }
 0x223   : > { %v1014_v50 = vsel %vm895_vm2, %v1009_v49, 0 }
 0x224   : > { %3934 = vmatpush3.bf16.xpose.msra.mxu0 %v1014_v50 }
 0x225   : > { %3945 = vmatprep.subr.bf16.mxu0 %v4650_v0 }
 0x226   : > { %v1006_v51 = vpop.permute.xlu0 %1005 }
 0x22a   : > { %v1069_v4 = vpop.permute.xlu0 %1068 }
 0x22b   : > { %3936 = vmatmul.mubr.msk.bf16.vlgmr.msra.gmra.mrb[16].mxu0 %vm895_vm2, %v1006_v51  ;;  %v1074_v5 = vsel %vm957_vm4, %v1069_v4, 0 }
 0x22c   : > { %3947 = vmatprep.mubr.msk.bf16.mxu0 %vm4651_vm0, %v4650_v0  ;;  %3946 = vmatpush3.bf16.msra.mxu0 %v1125_v17 }
 0x22d   : > { %3957 = vmatprep.subr.bf16.mxu0 %v4650_v0 }
 0x22e   : > { %v1216_v18 = vpop.permute.xlu0 %1215 }
 0x22f   : > { %v1221_v41 = vsel %vm895_vm2, %v1216_v18, 0 }
 0x28b   : > { %v936_v52 = vpop.f32.mrb[12].mxu0 }
 0x28c   : > { %v3925_v53 = vpop.f32.mrb[13].mxu0  ;;  %v943_v54 = vsel %vm942_vm3, %v936_v52, -inf }
 0x28d   : > { %944 = vmax.xlane.f32.xlu1 %v943_v54  ;;  %v939_v55 = vpop.f32.mrb[14].mxu0 }
 0x28e   : > { %v3926_v56 = vpop.f32.mrb[15].mxu0 }
 0x2fe   : > { %v1050_v58 = vpop.f32.mrb[16].mxu0 }
 0x2ff   : > { %v3937_v59 = vpop.f32.mrb[17].mxu0  ;;  %v1056_v60 = vsel %vm942_vm3, %v1050_v58, -inf }
 0x300   : > { %1057 = vmax.xlane.f32.xlu1 %v1056_v60  ;;  %v1053_v61 = vpop.f32.mrb[18].mxu0 }
 0x301   : > { %v3938_v62 = vpop.f32.mrb[19].mxu0 }
 0x31a   : > { %v945_v63 = vpop.xlane.xlu1 %944 }
 0x31b   : > { %v946_v1 = vsub.f32 %v936_v52, %v945_v63 }
 0x31d   : > { %v947_v2 = vmul.f32 1.442695, %v946_v1 }
 0x31f   : > { %4321 = vpow2.f32 %v947_v2 }
 0x329   : > { %v4322_v3 = vpop.eup %4321 }
 0x32a   : > { %v949_v6 = vsel %vm942_vm3, %v4322_v3, 0.0  ;;  %v953_v7 = vpack.c.bf16 %v4322_v3, %v4322_v3 }
 0x32b   : > { %950 = vadd.xlane.f32.xlu0 %v949_v6 }
 0x32c   : > { %3930 = vmatmul.mubr.msk.bf16.vlgmr.msra.gmra.mrb[12].mxu1 %vm942_vm3, %v953_v7 }
 0x32d   : > { %3940 = vmatpush3.bf16.msra.mxu1 %v1074_v5  ;;  %3941 = vmatprep.mubr.msk.bf16.mxu1 %vm4651_vm0, %v4650_v0  ;;  %v3705_v5 = vld [vmem:[%s5526_s6 + $0x4] sm:$0x3] }
 0x32e   : > { %3951 = vmatprep.subr.bf16.mxu1 %v4650_v0  ;;  %v1330_v6 = vsel %vm1123_vm5, %v3705_v5, 0 }
 0x341   : > { %1274 = vrot.lane.b32.xlu0 %v5024_v48, %s4653_s13 }
 0x345   : > { %1373 = vrot.lane.b32.xlu0 %v5021_v47, %s4654_s14 }
 0x38d   : > { %v1058_v8 = vpop.xlane.xlu1 %1057 }
 0x38e   : > { %v1059_v9 = vsub.f32 %v1050_v58, %v1058_v8 }
 0x390   : > { %v1060_v10 = vmul.f32 1.442695, %v1059_v9 }
 0x392   : > { %4323 = vpow2.f32 %v1060_v10 }
 0x39c   : > { %v4324_v12 = vpop.eup %4323 }
 0x39d   : > { %v1062_v13 = vsel %vm942_vm3, %v4324_v12, 0.0  ;;  %v1066_v14 = vpack.c.bf16 %v4324_v12, %v4324_v12 }
 0x39e   : > { %1063 = vadd.xlane.f32.xlu1 %v1062_v13 }
 0x39f   : > { %3942 = vmatmul.mubr.msk.bf16.vlgmr.msra.gmra.mrb[16].mxu1 %vm942_vm3, %v1066_v14 }
 0x3a0   : > { %3952 = vmatpush3.bf16.msra.mxu1 %v1171_v15  ;;  %3953 = vmatprep.mubr.msk.bf16.mxu1 %vm4651_vm0, %v4650_v0 }
 0x3a1   : > { %3963 = vmatprep.subr.bf16.mxu1 %v4650_v0 }
 0x3af   : > { %1213 = vrot.lane.b32.xlu1 %v5021_v47, %s4653_s13 }
 0x3b8   : > { %v951_v20 = vpop.xlane.xlu0 %950 }
 0x3b9   : > { %4325 = vrcp.f32 %v951_v20 }
 0x3bc   : > { %v1275_v26 = vpop.permute.xlu0 %1274 }
 0x3bd   : > { %v1280_v31 = vsel %vm957_vm4, %v1275_v26, 0 }
 0x3c0   : > { %v1374_v4 = vpop.permute.xlu0 %1373 }
 0x3c3   : > { %v4326_v21 = vpop.eup %4325 }
 0x3ff   : > { %v995_v22 = vpop.f32.mrb[12].mxu1 }
 0x400   : > { %v1001_v24 = vmul.f32 %v4326_v21, %v995_v22  ;;  %v3931_v25 = vpop.f32.mrb[13].mxu1 }
 0x401   : > { %v998_v28 = vpop.f32.mrb[14].mxu1 }
 0x402   : > { %v1002_v29 = vpack.c.bf16 %v1001_v24, %v1001_v24  ;;  %v3932_v30 = vpop.f32.mrb[15].mxu1 }
 0x404   : > { %3954 = vmatmul.mubr.msk.bf16.vlgmr.msra.gmra.mrb[20].mxu1 %vm895_vm2, %v1002_v29 }
 0x405   : > { %3964 = vmatpush3.bf16.msra.mxu1 %v1280_v31  ;;  %3965 = vmatprep.mubr.msk.bf16.mxu1 %vm4651_vm0, %v4650_v0 }
 0x406   : > { %3975 = vmatprep.subr.bf16.mxu1 %v4650_v0 }
 0x42b   : > { %v1064_v32 = vpop.xlane.xlu1 %1063 }
 0x42c   : > { %4327 = vrcp.f32 %v1064_v32 }
 0x42f   : > { %v1214_v42 = vpop.permute.xlu1 %1213 }
 0x436   : > { %v4328_v33 = vpop.eup %4327 }
 0x472   : > { %v1110_v34 = vpop.f32.mrb[16].mxu1 }
 0x473   : > { %v1116_v35 = vmul.f32 %v4328_v33, %v1110_v34  ;;  %v3943_v36 = vpop.f32.mrb[17].mxu1 }
 0x474   : > { %v1113_v37 = vpop.f32.mrb[18].mxu1 }
 0x475   : > { %v1117_v38 = vpack.c.bf16 %v1116_v35, %v1116_v35  ;;  %v3944_v40 = vpop.f32.mrb[19].mxu1 }
 0x476   : > { %v3709_v40 = vld [vmem:[%s5526_s6 + $0x6] sm:$0x3] }
 0x477   : > { %3948 = vmatmul.mubr.msk.bf16.vlgmr.msra.gmra.mrb[20].mxu0 %vm895_vm2, %v1117_v38 }
 0x478   : > { %3958 = vmatpush3.bf16.xpose.msra.mxu0 %v1221_v41  ;;  %3959 = vmatprep.mubr.msk.bf16.mxu0 %vm4651_vm0, %v4650_v0  ;;  %v1490_v41 = vsel %vm1123_vm5, %v3709_v40, 0 }
 0x479   : > { %3969 = vmatprep.subr.bf16.mxu0 %v4650_v0 }
 0x47f   : > { %3960 = vmatmul.mubr.msk.bf16.vlgmr.msra.gmra.mrb[24].mxu0 %vm895_vm2, %v1214_v42 }
 0x480   : > { %3971 = vmatprep.mubr.msk.bf16.mxu0 %vm4651_vm0, %v4650_v0  ;;  %3970 = vmatpush3.bf16.msra.mxu0 %v1330_v6 }
 0x481   : > { %3981 = vmatprep.subr.bf16.mxu0 %v4650_v0 }
 0x4d7   : > { %v1207_v43 = vpop.f32.mrb[20].mxu1 }
 0x4d8   : > { %v3955_v44 = vpop.f32.mrb[21].mxu1 }
 0x4d9   : > { %v1210_v45 = vpop.f32.mrb[22].mxu1 }
 0x4da   : > { %v3956_v46 = vpop.f32.mrb[23].mxu1 }
 0x54a   : > { %v1161_v49 = vpop.f32.mrb[20].mxu0 }
 0x54b   : > { %v5085_v50 = vadd.f32 %v1207_v43, %v1161_v49  ;;  %v3949_v51 = vpop.f32.mrb[21].mxu0 }
 0x54c   : > { %v1164_v52 = vpop.f32.mrb[22].mxu0 }
 0x54d   : > { %v3950_v53 = vpop.f32.mrb[23].mxu0 }
 0x552   : > { %v1257_v54 = vpop.f32.mrb[24].mxu0 }
 0x553   : > { %v3961_v55 = vpop.f32.mrb[25].mxu0  ;;  %v1263_v56 = vsel %vm942_vm3, %v1257_v54, -inf }
 0x554   : > { %1264 = vmax.xlane.f32.xlu1 %v1263_v56  ;;  %v1260_v57 = vpop.f32.mrb[26].mxu0 }
 0x555   : > { %v3962_v58 = vpop.f32.mrb[27].mxu0 }
 0x565   : > { %1375 = vrot.lane.b32.xlu1 %v5015_v39, %s4654_s14 }
 0x5e1   : > { %v1265_v59 = vpop.xlane.xlu1 %1264 }
 0x5e2   : > { %v1266_v60 = vsub.f32 %v1257_v54, %v1265_v59 }
 0x5e4   : > { %v1267_v61 = vmul.f32 1.442695, %v1266_v60 }
 0x5e5   : > { %v1376_v63 = vpop.permute.xlu1 %1375 }
 0x5e6   : > { %4329 = vpow2.f32 %v1267_v61  ;;  %v1381_v3 = vsel %vm895_vm2, %v1376_v63, 0 }
 0x5f0   : > { %v4330_v62 = vpop.eup %4329 }
 0x5f1   : > { %v1269_v1 = vsel %vm942_vm3, %v4330_v62, 0.0  ;;  %v1273_v2 = vpack.c.bf16 %v4330_v62, %v4330_v62 }
 0x5f2   : > { %1270 = vadd.xlane.f32.xlu0 %v1269_v1 }
 0x5f3   : > { %3966 = vmatmul.mubr.msk.bf16.vlgmr.msra.gmra.mrb[24].mxu1 %vm942_vm3, %v1273_v2 }
 0x5f4   : > { %3976 = vmatpush3.bf16.xpose.msra.mxu1 %v1381_v3  ;;  %3977 = vmatprep.mubr.msk.bf16.mxu1 %vm4651_vm0, %v4650_v0 }
 0x5f5   : > { %3987 = vmatprep.subr.bf16.mxu1 %v4650_v0 }
 0x5fb   : > { %3978 = vmatmul.mubr.msk.bf16.vlgmr.msra.gmra.mrb[28].mxu1 %vm895_vm2, %v1374_v4 }
 0x5fc   : > { %3989 = vmatprep.mubr.msk.bf16.mxu1 %vm4651_vm0, %v4650_v0  ;;  %3988 = vmatpush3.bf16.msra.mxu1 %v1490_v41 }
 0x5fd   : > { %3999 = vmatprep.subr.bf16.mxu1 %v4650_v0 }
 0x608   : > { %1434 = vrot.lane.b32.xlu0 %v5024_v48, %s4654_s14 }
 0x60c   : > { %1533 = vrot.lane.b32.xlu0 %v5021_v47, %s4655_s27 }
 0x67f   : > { %v1271_v7 = vpop.xlane.xlu0 %1270 }
 0x680   : > { %4331 = vrcp.f32 %v1271_v7 }
 0x683   : > { %v1435_v12 = vpop.permute.xlu0 %1434 }
 0x684   : > { %v1440_v16 = vsel %vm957_vm4, %v1435_v12, 0 }
 0x687   : > { %v1534_v33 = vpop.permute.xlu0 %1533 }
 0x68a   : > { %v4332_v8 = vpop.eup %4331 }
 0x6c6   : > { %v1316_v9 = vpop.f32.mrb[24].mxu1 }
 0x6c7   : > { %v1322_v10 = vmul.f32 %v4332_v8, %v1316_v9  ;;  %v3967_v11 = vpop.f32.mrb[25].mxu1 }
 0x6c8   : > { %v1319_v13 = vpop.f32.mrb[26].mxu1 }
 0x6c9   : > { %v1323_v14 = vpack.c.bf16 %v1322_v10, %v1322_v10  ;;  %v3968_v15 = vpop.f32.mrb[27].mxu1  ;;  %v3713_v10 = vld [vmem:[%s5526_s6 + $0x8] sm:$0x3] }
 0x6ca   : > { %v1650_v11 = vsel %vm1123_vm5, %v3713_v10, 0 }
 0x6cb   : > { %3972 = vmatmul.mubr.msk.bf16.vlgmr.msra.gmra.mrb[28].mxu0 %vm895_vm2, %v1323_v14 }
 0x6cc   : > { %3982 = vmatpush3.bf16.msra.mxu0 %v1440_v16  ;;  %3983 = vmatprep.mubr.msk.bf16.mxu0 %vm4651_vm0, %v4650_v0 }
 0x6cd   : > { %3993 = vmatprep.subr.bf16.mxu0 %v4650_v0 }
 0x6ce   : > { %v1417_v17 = vpop.f32.mrb[28].mxu1 }
 0x6cf   : > { %v3979_v18 = vpop.f32.mrb[29].mxu1  ;;  %v1423_v20 = vsel %vm942_vm3, %v1417_v17, -inf }
 0x6d0   : > { %1424 = vmax.xlane.f32.xlu1 %v1423_v20  ;;  %v1420_v21 = vpop.f32.mrb[30].mxu1 }
 0x6d1   : > { %v3980_v22 = vpop.f32.mrb[31].mxu1 }
 0x6e1   : > { %1535 = vrot.lane.b32.xlu1 %v5015_v39, %s4655_s27 }
 0x75d   : > { %v1425_v24 = vpop.xlane.xlu1 %1424 }
 0x75e   : > { %v1426_v25 = vsub.f32 %v1417_v17, %v1425_v24 }
 0x760   : > { %v1427_v26 = vmul.f32 1.442695, %v1426_v25 }
 0x761   : > { %v1536_v29 = vpop.permute.xlu1 %1535 }
 0x762   : > { %4333 = vpow2.f32 %v1427_v26  ;;  %v1541_v32 = vsel %vm895_vm2, %v1536_v29, 0 }
 0x76c   : > { %v4334_v28 = vpop.eup %4333 }
 0x76d   : > { %v1429_v30 = vsel %vm942_vm3, %v4334_v28, 0.0  ;;  %v1433_v31 = vpack.c.bf16 %v4334_v28, %v4334_v28 }
 0x76e   : > { %1430 = vadd.xlane.f32.xlu0 %v1429_v30 }
 0x76f   : > { %3984 = vmatmul.mubr.msk.bf16.vlgmr.msra.gmra.mrb[32].mxu0 %vm942_vm3, %v1433_v31 }
 0x770   : > { %3994 = vmatpush3.bf16.xpose.msra.mxu0 %v1541_v32  ;;  %3995 = vmatprep.mubr.msk.bf16.mxu0 %vm4651_vm0, %v4650_v0 }
 0x771   : > { %4005 = vmatprep.subr.bf16.mxu0 %v4650_v0 }
 0x777   : > { %3996 = vmatmul.mubr.msk.bf16.vlgmr.msra.gmra.mrb[36].mxu0 %vm895_vm2, %v1534_v33 }
 0x778   : > { %4007 = vmatprep.mubr.msk.bf16.mxu0 %vm4651_vm0, %v4650_v0  ;;  %4006 = vmatpush3.bf16.msra.mxu0 %v1650_v11 }
 0x779   : > { %4017 = vmatprep.subr.bf16.mxu0 %v4650_v0 }
 0x784   : > { %1594 = vrot.lane.b32.xlu0 %v5024_v48, %s4655_s27 }
 0x788   : > { %1693 = vrot.lane.b32.xlu0 %v5021_v47, %s4656_s25 }
 0x79e   : > { %v1366_v34 = vpop.f32.mrb[28].mxu0 }
 0x79f   : > { %v1372_v35 = vadd.f32 %v1366_v34, %v5085_v50  ;;  %v3973_v36 = vpop.f32.mrb[29].mxu0 }
 0x7a0   : > { %v1369_v37 = vpop.f32.mrb[30].mxu0 }
 0x7a1   : > { %v3974_v38 = vpop.f32.mrb[31].mxu0 }
 0x7fb   : > { %v1431_v42 = vpop.xlane.xlu0 %1430 }
 0x7fc   : > { %4335 = vrcp.f32 %v1431_v42 }
 0x7ff   : > { %v1595_v49 = vpop.permute.xlu0 %1594 }
 0x800   : > { %v1600_v53 = vsel %vm957_vm4, %v1595_v49, 0 }
 0x803   : > { %v1694_v4 = vpop.permute.xlu0 %1693 }
 0x806   : > { %v4336_v43 = vpop.eup %4335 }
 0x842   : > { %v1476_v44 = vpop.f32.mrb[32].mxu0 }
 0x843   : > { %v1482_v45 = vmul.f32 %v4336_v43, %v1476_v44  ;;  %v3985_v46 = vpop.f32.mrb[33].mxu0 }
 0x844   : > { %v1479_v50 = vpop.f32.mrb[34].mxu0 }
 0x845   : > { %v1483_v51 = vpack.c.bf16 %v1482_v45, %v1482_v45  ;;  %v3986_v52 = vpop.f32.mrb[35].mxu0  ;;  %v3717_v45 = vld [vmem:[%s5526_s6 + $0xa] sm:$0x3] }
 0x846   : > { %v1810_v46 = vsel %vm1123_vm5, %v3717_v45, 0  ;;  %v3678_v45 = vld [vmem:[%s5523_s3 + $0x2] ss:$0 sm:$0xff] }
 0x847   : > { %3990 = vmatmul.mubr.msk.bf16.vlgmr.msra.gmra.mrb[32].mxu1 %vm895_vm2, %v1483_v51 }
 0x848   : > { %4000 = vmatpush3.bf16.msra.mxu1 %v1600_v53  ;;  %4001 = vmatprep.mubr.msk.bf16.mxu1 %vm4651_vm0, %v4650_v0 }
 0x849   : > { %4011 = vmatprep.subr.bf16.mxu1 %v4650_v0 }
 0x84a   : > { %v1577_v54 = vpop.f32.mrb[36].mxu0 }
 0x84b   : > { %v3997_v55 = vpop.f32.mrb[37].mxu0  ;;  %v1583_v56 = vsel %vm942_vm3, %v1577_v54, -inf }
 0x84c   : > { %1584 = vmax.xlane.f32.xlu1 %v1583_v56  ;;  %v1580_v57 = vpop.f32.mrb[38].mxu0 }
 0x84d   : > { %v3998_v58 = vpop.f32.mrb[39].mxu0 }
 0x85d   : > { %1695 = vrot.lane.b32.xlu1 %v5015_v39, %s4656_s25 }
 0x8d9   : > { %v1585_v59 = vpop.xlane.xlu1 %1584 }
 0x8da   : > { %v1586_v60 = vsub.f32 %v1577_v54, %v1585_v59 }
 0x8dc   : > { %v1587_v61 = vmul.f32 1.442695, %v1586_v60 }
 0x8dd   : > { %v1696_v63 = vpop.permute.xlu1 %1695 }
 0x8de   : > { %4337 = vpow2.f32 %v1587_v61  ;;  %v1701_v3 = vsel %vm895_vm2, %v1696_v63, 0 }
 0x8e8   : > { %v4338_v62 = vpop.eup %4337 }
 0x8e9   : > { %v1589_v1 = vsel %vm942_vm3, %v4338_v62, 0.0  ;;  %v1593_v2 = vpack.c.bf16 %v4338_v62, %v4338_v62 }
 0x8ea   : > { %1590 = vadd.xlane.f32.xlu0 %v1589_v1 }
 0x8eb   : > { %4002 = vmatmul.mubr.msk.bf16.vlgmr.msra.gmra.mrb[36].mxu1 %vm942_vm3, %v1593_v2 }
 0x8ec   : > { %4012 = vmatpush3.bf16.xpose.msra.mxu1 %v1701_v3  ;;  %4013 = vmatprep.mubr.msk.bf16.mxu1 %vm4651_vm0, %v4650_v0 }
 0x8ed   : > { %4023 = vmatprep.subr.bf16.mxu1 %v4650_v0 }
 0x8f3   : > { %4014 = vmatmul.mubr.msk.bf16.vlgmr.msra.gmra.mrb[40].mxu1 %vm895_vm2, %v1694_v4 }
 0x8f4   : > { %4025 = vmatprep.mubr.msk.bf16.mxu1 %vm4651_vm0, %v4650_v0  ;;  %4024 = vmatpush3.bf16.msra.mxu1 %v1810_v46 }
 0x8f5   : > { %4035 = vmatprep.subr.bf16.mxu1 %v4650_v0 }
 0x900   : > { %1754 = vrot.lane.b32.xlu0 %v5024_v48, %s4656_s25 }
 0x904   : > { %1853 = vrot.lane.b32.xlu0 %v5021_v47, %s4657_s29 }
 0x91a   : > { %v1526_v5 = vpop.f32.mrb[32].mxu1 }
 0x91b   : > { %v1532_v6 = vadd.f32 %v1526_v5, %v1372_v35  ;;  %v3991_v7 = vpop.f32.mrb[33].mxu1 }
 0x91c   : > { %v1529_v8 = vpop.f32.mrb[34].mxu1 }
 0x91d   : > { %v3992_v9 = vpop.f32.mrb[35].mxu1  ;;  %v3682_v8 = vld [vmem:[%s5525_s5] ss:$0 sm:$0xff] }
 0x91e   : > { %v757_v9 = vadd.f32 %v3682_v8, %v5004_v27 }
 0x920   : > { %v5210_v10 = vpack.c.bf16 %v757_v9, %v757_v9 }
 0x977   : > { %v1591_v12 = vpop.xlane.xlu0 %1590 }
 0x978   : > { %4339 = vrcp.f32 %v1591_v12 }
 0x97b   : > { %v1755_v17 = vpop.permute.xlu0 %1754 }
 0x97c   : > { %v1760_v22 = vsel %vm957_vm4, %v1755_v17, 0 }
 0x97f   : > { %v1854_v38 = vpop.permute.xlu0 %1853 }
 0x982   : > { %v4340_v13 = vpop.eup %4339 }
 0x9be   : > { %v1636_v14 = vpop.f32.mrb[36].mxu1 }
 0x9bf   : > { %v1642_v15 = vmul.f32 %v4340_v13, %v1636_v14  ;;  %v4003_v16 = vpop.f32.mrb[37].mxu1 }
 0x9c0   : > { %v1639_v18 = vpop.f32.mrb[38].mxu1  ;;  %v3721_v16 = vld [vmem:[%s5526_s6 + $0xc] sm:$0x3] }
 0x9c1   : > { %v1643_v20 = vpack.c.bf16 %v1642_v15, %v1642_v15  ;;  %v4004_v21 = vpop.f32.mrb[39].mxu1  ;;  %v1970_v17 = vsel %vm1123_vm5, %v3721_v16, 0 }
 0x9c3   : > { %4008 = vmatmul.mubr.msk.bf16.vlgmr.msra.gmra.mrb[40].mxu0 %vm895_vm2, %v1643_v20 }
 0x9c4   : > { %4018 = vmatpush3.bf16.msra.mxu0 %v1760_v22  ;;  %4019 = vmatprep.mubr.msk.bf16.mxu0 %vm4651_vm0, %v4650_v0 }
 0x9c5   : > { %4029 = vmatprep.subr.bf16.mxu0 %v4650_v0 }
 0x9c6   : > { %v1737_v24 = vpop.f32.mrb[40].mxu1 }
 0x9c7   : > { %v4015_v25 = vpop.f32.mrb[41].mxu1  ;;  %v1743_v26 = vsel %vm942_vm3, %v1737_v24, -inf }
 0x9c8   : > { %1744 = vmax.xlane.f32.xlu1 %v1743_v26  ;;  %v1740_v28 = vpop.f32.mrb[42].mxu1 }
 0x9c9   : > { %v4016_v29 = vpop.f32.mrb[43].mxu1 }
 0x9d9   : > { %1855 = vrot.lane.b32.xlu1 %v5015_v39, %s4657_s29 }
 0xa55   : > { %v1745_v30 = vpop.xlane.xlu1 %1744 }
 0xa56   : > { %v1746_v31 = vsub.f32 %v1737_v24, %v1745_v30 }
 0xa58   : > { %v1747_v32 = vmul.f32 1.442695, %v1746_v31 }
 0xa59   : > { %v1856_v34 = vpop.permute.xlu1 %1855 }
 0xa5a   : > { %4341 = vpow2.f32 %v1747_v32  ;;  %v1861_v37 = vsel %vm895_vm2, %v1856_v34, 0  ;;  %v3673_v34 = vld [vmem:[%s5523_s3 + $0x1] ss:$0 sm:$0xff] }
 0xa64   : > { %v4342_v33 = vpop.eup %4341 }
 0xa65   : > { %v1749_v35 = vsel %vm942_vm3, %v4342_v33, 0.0  ;;  %v1753_v36 = vpack.c.bf16 %v4342_v33, %v4342_v33 }
 0xa66   : > { %1750 = vadd.xlane.f32.xlu1 %v1749_v35  ;;  %v624_v35 = vadd.f32 %v3673_v34, %v5000_v19 }
 0xa67   : > { %4020 = vmatmul.mubr.msk.bf16.vlgmr.msra.gmra.mrb[44].mxu0 %vm942_vm3, %v1753_v36 }
 0xa68   : > { %4030 = vmatpush3.bf16.xpose.msra.mxu0 %v1861_v37  ;;  %4031 = vmatprep.mubr.msk.bf16.mxu0 %vm4651_vm0, %v4650_v0  ;;  %v5229_v36 = vpack.c.bf16 %v624_v35, %v624_v35  ;;  %v2287_v35 = vld [vmem:[#allocation10] sm:$0x3] }
 0xa69   : > { %4041 = vmatprep.subr.bf16.mxu0 %v4650_v0 }
 0xa6f   : > { %4032 = vmatmul.mubr.msk.bf16.vlgmr.msra.gmra.mrb[48].mxu0 %vm895_vm2, %v1854_v38 }
 0xa70   : > { %4043 = vmatprep.mubr.msk.bf16.mxu0 %vm4651_vm0, %v4650_v0  ;;  %4042 = vmatpush3.bf16.msra.mxu0 %v1970_v17 }
 0xa71   : > { %4053 = vmatprep.subr.bf16.mxu0 %v4650_v0 }
 0xa77   : > { %2015 = vrot.lane.b32.xlu1 %v5015_v39, %s4658_s15 }
 0xa7b   : > { %2013 = vrot.lane.b32.xlu1 %v5021_v47, %s4658_s15 }
 0xa96   : > { %v1686_v40 = vpop.f32.mrb[40].mxu0 }
 0xa97   : > { %v1692_v41 = vadd.f32 %v1686_v40, %v1532_v6  ;;  %v4009_v42 = vpop.f32.mrb[41].mxu0 }
 0xa98   : > { %v1689_v43 = vpop.f32.mrb[42].mxu0 }
 0xa99   : > { %v4010_v44 = vpop.f32.mrb[43].mxu0 }
 0xa9a   : > { %v2186_v44 = vsel %vm895_vm2, %v5229_v36, 0 }
 0xaf3   : > { %v1751_v49 = vpop.xlane.xlu1 %1750 }
 0xaf4   : > { %4343 = vrcp.f32 %v1751_v49  ;;  %v690_v49 = vadd.f32 %v3678_v45, %v5002_v23 }
 0xaf7   : > { %v2016_v3 = vpop.permute.xlu1 %2015 }
 0xaf8   : > { %v2021_v6 = vsel %vm895_vm2, %v2016_v3, 0 }
 0xafb   : > { %v2014_v7 = vpop.permute.xlu1 %2013 }
 0xafe   : > { %v4344_v39 = vpop.eup %4343 }
 0xb3a   : > { %v1796_v50 = vpop.f32.mrb[44].mxu0 }
 0xb3b   : > { %v1802_v51 = vmul.f32 %v4344_v39, %v1796_v50  ;;  %v4021_v47 = vpop.f32.mrb[45].mxu0  ;;  %v5250_v39 = vpack.c.bf16 %v690_v49, %v690_v49 }
 0xb3c   : > { %v1799_v52 = vpop.f32.mrb[46].mxu0 }
 0xb3d   : > { %v1803_v53 = vpack.c.bf16 %v1802_v51, %v1802_v51  ;;  %v4022_v54 = vpop.f32.mrb[47].mxu0 }
 0xb3e   : > { %v3725_v54 = vld [vmem:[%s5526_s6 + $0xe] sm:$0x3] }
 0xb3f   : > { %4026 = vmatmul.mubr.msk.bf16.vlgmr.msra.gmra.mrb[44].mxu1 %vm895_vm2, %v1803_v53 }
 0xb40   : > { %4037 = vmatprep.mubr.msk.bf16.mxu1 %vm4651_vm0, %v4650_v0 }
 0xb42   : > { %v1897_v55 = vpop.f32.mrb[48].mxu0 }
 0xb43   : > { %v4033_v56 = vpop.f32.mrb[49].mxu0  ;;  %v1903_v57 = vsel %vm942_vm3, %v1897_v55, -inf }
 0xb44   : > { %1904 = vmax.xlane.f32.xlu0 %v1903_v57  ;;  %v1900_v58 = vpop.f32.mrb[50].mxu0 }
 0xb45   : > { %v4034_v59 = vpop.f32.mrb[51].mxu0 }
 0xb5a   : > { %1914 = vrot.lane.b32.xlu0 %v5024_v48, %s4657_s29 }
 0xbd1   : > { %v1905_v60 = vpop.xlane.xlu0 %1904 }
 0xbd2   : > { %v1906_v61 = vsub.f32 %v1897_v55, %v1905_v60  ;;  %v2130_v55 = vsel %vm1123_vm5, %v3725_v54, 0 }
 0xbd4   : > { %v1907_v62 = vmul.f32 1.442695, %v1906_v61 }
 0xbd5   : > { %v1915_v63 = vpop.permute.xlu0 %1914 }
 0xbd6   : > { %4345 = vpow2.f32 %v1907_v62  ;;  %v1920_v1 = vsel %vm957_vm4, %v1915_v63, 0 }
 0xbd7   : > { %4036 = vmatpush3.bf16.msra.mxu1 %v1920_v1  ;;  %v2243_v1 = vsel %vm957_vm4, %v5250_v39, 0 }
 0xbd8   : > { %4047 = vmatprep.subr.bf16.mxu1 %v4650_v0 }
 0xbe0   : > { %v4346_v2 = vpop.eup %4345 }
 0xbe1   : > { %v1909_v4 = vsel %vm942_vm3, %v4346_v2, 0.0  ;;  %v1913_v5 = vpack.c.bf16 %v4346_v2, %v4346_v2 }
 0xbe2   : > { %1910 = vadd.xlane.f32.xlu0 %v1909_v4 }
 0xbe3   : > { %4038 = vmatmul.mubr.msk.bf16.vlgmr.msra.gmra.mrb[48].mxu1 %vm942_vm3, %v1913_v5 }
 0xbe4   : > { %4048 = vmatpush3.bf16.xpose.msra.mxu1 %v2021_v6  ;;  %4049 = vmatprep.mubr.msk.bf16.mxu1 %vm4651_vm0, %v4650_v0 }
 0xbe5   : > { %4059 = vmatprep.subr.bf16.mxu1 %v4650_v0 }
 0xbeb   : > { %4050 = vmatmul.mubr.msk.bf16.vlgmr.msra.gmra.mrb[52].mxu1 %vm895_vm2, %v2014_v7 }
 0xbec   : > { %4061 = vmatprep.mubr.msk.bf16.mxu1 %vm4651_vm0, %v4650_v0  ;;  %4060 = vmatpush3.bf16.msra.mxu1 %v2130_v55 }
 0xbed   : > { %4071 = vmatprep.subr.bf16.mxu1 %v4650_v0 }
 0xbf8   : > { %2074 = vrot.lane.b32.xlu0 %v5024_v48, %s4658_s15 }
 0xbfc   : > { %2289 = vrot.lane.b32.xlu0 %v5210_v10, %s4652_s4 }
 0xc12   : > { %v1846_v11 = vpop.f32.mrb[44].mxu1 }
 0xc13   : > { %v1852_v12 = vadd.f32 %v1846_v11, %v1692_v41  ;;  %v4027_v13 = vpop.f32.mrb[45].mxu1 }
 0xc14   : > { %v1849_v14 = vpop.f32.mrb[46].mxu1 }
 0xc15   : > { %v4028_v15 = vpop.f32.mrb[47].mxu1 }
 0xc6f   : > { %v1911_v27 = vpop.xlane.xlu0 %1910 }
 0xc70   : > { %4347 = vrcp.f32 %v1911_v27 }
 0xc73   : > { %v2075_v22 = vpop.permute.xlu0 %2074 }
 0xc74   : > { %v2080_v28 = vsel %vm957_vm4, %v2075_v22, 0 }
 0xc77   : > { %v2290_v50 = vpop.permute.xlu0 %2289 }
 0xc7a   : > { %v4348_v48 = vpop.eup %4347 }
 0xcb6   : > { %v1956_v18 = vpop.f32.mrb[48].mxu1 }
 0xcb7   : > { %v1962_v20 = vmul.f32 %v4348_v48, %v1956_v18  ;;  %v4039_v21 = vpop.f32.mrb[49].mxu1 }
 0xcb8   : > { %v1959_v24 = vpop.f32.mrb[50].mxu1 }
 0xcb9   : > { %v1963_v25 = vpack.c.bf16 %v1962_v20, %v1962_v20  ;;  %v4040_v26 = vpop.f32.mrb[51].mxu1 }
 0xcbb   : > { %4044 = vmatmul.mubr.msk.bf16.vlgmr.msra.gmra.mrb[52].mxu0 %vm895_vm2, %v1963_v25 }
 0xcbc   : > { %4054 = vmatpush3.bf16.msra.mxu0 %v2080_v28  ;;  %4055 = vmatprep.mubr.msk.bf16.mxu0 %vm4651_vm0, %v4650_v0 }
 0xcbd   : > { %4065 = vmatprep.subr.bf16.mxu0 %v4650_v0 }
 0xcbe   : > { %v2057_v29 = vpop.f32.mrb[52].mxu1 }
 0xcbf   : > { %v4051_v30 = vpop.f32.mrb[53].mxu1  ;;  %v2063_v31 = vsel %vm942_vm3, %v2057_v29, -inf }
 0xcc0   : > { %2064 = vmax.xlane.f32.xlu1 %v2063_v31  ;;  %v2060_v32 = vpop.f32.mrb[54].mxu1 }
 0xcc1   : > { %v4052_v33 = vpop.f32.mrb[55].mxu1 }
 0xcd1   : > { %2292 = vrot.lane.b32.xlu1 %v5229_v36, %s4652_s4 }
 0xd4d   : > { %v2065_v37 = vpop.xlane.xlu1 %2064 }
 0xd4e   : > { %v2066_v38 = vsub.f32 %v2057_v29, %v2065_v37  ;;  %v3727_v29 = vld [vmem:[%s5527_s7] ss:$0 sm:$0xff]  ;;  %v2454_v37 = vsel %vm1123_vm5, %v2287_v35, 0 }
 0xd50   : > { %v2067_v40 = vmul.f32 1.442695, %v2066_v38  ;;  %v2403_v38 = vld [vmem:[#allocation10 + $0x2] sm:$0x3] }
 0xd51   : > { %v2293_v19 = vpop.permute.xlu1 %2292 }
 0xd52   : > { %4349 = vpow2.f32 %v2067_v40  ;;  %v2298_v46 = vsel %vm895_vm2, %v2293_v19, 0  ;;  %v2408_v40 = vsel %vm1123_vm5, %v2403_v38, 0 }
 0xd5c   : > { %v4350_v41 = vpop.eup %4349 }
 0xd5d   : > { %v2069_v42 = vsel %vm942_vm3, %v4350_v41, 0.0  ;;  %v2073_v43 = vpack.c.bf16 %v4350_v41, %v4350_v41 }
 0xd5e   : > { %2070 = vadd.xlane.f32.xlu1 %v2069_v42 }
 0xd5f   : > { %4056 = vmatmul.mubr.msk.bf16.vlgmr.msra.gmra.mrb[56].mxu0 %vm942_vm3, %v2073_v43 }
 0xd60   : > { %4066 = vmatpush3.bf16.xpose.msra.mxu0 %v2186_v44  ;;  %4067 = vmatprep.mubr.msk.bf16.mxu0 %vm4651_vm0, %v4650_v0 }
 0xd61   : > { %4077 = vmatprep.subr.bf16.mxu0 %v4650_v0 }
 0xd67   : > { %4068 = vmatmul.mubr.msk.bf16.vlgmr.msra.gmra.mrb[60].mxu0 %vm895_vm2, %v5210_v10 }
 0xd68   : > { %4078 = vmatpush3.bf16.xpose.msra.mxu0 %v2298_v46  ;;  %4079 = vmatprep.mubr.msk.bf16.mxu0 %vm4651_vm0, %v4650_v0 }
 0xd69   : > { %4089 = vmatprep.subr.bf16.mxu0 %v4650_v0 }
 0xd6f   : > { %2352 = vrot.lane.b32.xlu1 %v5250_v39, %s4652_s4  ;;  %4080 = vmatmul.mubr.msk.bf16.vlgmr.msra.gmra.mrb[64].mxu0 %vm895_vm2, %v2290_v50  ;;  %s3666_s4 = sshll.u32 %s4940_s2, 3 }
 0xd70   : > { %4091 = vmatprep.mubr.msk.bf16.mxu0 %vm4651_vm0, %v4650_v0  ;;  %s5297_s24 = scalar_lea.vmem [#allocation11], %s3666_s4  ;;  %4090 = vmatpush3.bf16.msra.mxu0 %v2408_v40 }
 0xd71   : > { %4101 = vmatprep.subr.bf16.mxu0 %v4650_v0 }
 0xd73   : > { %2496 = vrot.lane.b32.xlu1 %v5210_v10, %s4653_s13 }
 0xd8e   : > { %v2006_v51 = vpop.f32.mrb[52].mxu0 }
 0xd8f   : > { %v5259_v47 = vadd.f32 %v2006_v51, %v1852_v12  ;;  %v4045_v23 = vpop.f32.mrb[53].mxu0 }
 0xd90   : > { %v2009_v52 = vpop.f32.mrb[54].mxu0 }
 0xd91   : > { %v4046_v53 = vpop.f32.mrb[55].mxu0 }
 0xdeb   : > { %v2071_v56 = vpop.xlane.xlu1 %2070 }
 0xdec   : > { %4351 = vrcp.f32 %v2071_v56 }
 0xdef   : > { %v2353_v18 = vpop.permute.xlu1 %2352 }
 0xdf0   : > { %v2358_v22 = vsel %vm957_vm4, %v2353_v18, 0 }
 0xdf3   : > { %v2497_v41 = vpop.permute.xlu1 %2496 }
 0xdf6   : > { %v4352_v57 = vpop.eup %4351 }
 0xe32   : > { %v2116_v58 = vpop.f32.mrb[56].mxu0 }
 0xe33   : > { %v2122_v59 = vmul.f32 %v4352_v57, %v2116_v58  ;;  %v4057_v60 = vpop.f32.mrb[57].mxu0 }
 0xe34   : > { %v2119_v61 = vpop.f32.mrb[58].mxu0 }
 0xe35   : > { %v2123_v62 = vpack.c.bf16 %v2122_v59, %v2122_v59  ;;  %v4058_v63 = vpop.f32.mrb[59].mxu0 }
 0xe37   : > { %4062 = vmatmul.mubr.msk.bf16.vlgmr.msra.gmra.mrb[56].mxu1 %vm895_vm2, %v2123_v62 }
 0xe38   : > { %4072 = vmatpush3.bf16.msra.mxu1 %v2243_v1  ;;  %4073 = vmatprep.mubr.msk.bf16.mxu1 %vm4651_vm0, %v4650_v0 }
 0xe39   : > { %4083 = vmatprep.subr.bf16.mxu1 %v4650_v0 }
 0xe3a   : > { %v2222_v2 = vpop.f32.mrb[60].mxu0 }
 0xe3b   : > { %v4069_v3 = vpop.f32.mrb[61].mxu0  ;;  %v2228_v4 = vsel %vm942_vm3, %v2222_v2, -inf }
 0xe3c   : > { %2229 = vmax.xlane.f32.xlu0 %v2228_v4  ;;  %v2225_v5 = vpop.f32.mrb[62].mxu0 }
 0xe3d   : > { %v4070_v6 = vpop.f32.mrb[63].mxu0 }
 0xe42   : > { %v2334_v7 = vpop.f32.mrb[64].mxu0 }
 0xe43   : > { %v4081_v8 = vpop.f32.mrb[65].mxu0  ;;  %v2340_v9 = vsel %vm942_vm3, %v2334_v7, -inf }
 0xe44   : > { %2341 = vmax.xlane.f32.xlu0 %v2340_v9  ;;  %v2337_v11 = vpop.f32.mrb[66].mxu0 }
 0xe45   : > { %v4082_v12 = vpop.f32.mrb[67].mxu0 }
 0xec9   : > { %v2230_v13 = vpop.xlane.xlu0 %2229 }
 0xeca   : > { %v2231_v14 = vsub.f32 %v2222_v2, %v2230_v13 }
 0xecc   : > { %v2232_v15 = vmul.f32 1.442695, %v2231_v14 }
 0xece   : > { %4353 = vpow2.f32 %v2232_v15 }
 0xed1   : > { %v2342_v16 = vpop.xlane.xlu0 %2341 }
 0xed2   : > { %v2343_v17 = vsub.f32 %v2334_v7, %v2342_v16 }
 0xed4   : > { %v2344_v27 = vmul.f32 1.442695, %v2343_v17 }
 0xed6   : > { %4355 = vpow2.f32 %v2344_v27 }
 0xed8   : > { %v4354_v48 = vpop.eup %4353 }
 0xed9   : > { %v2234_v20 = vsel %vm942_vm3, %v4354_v48, 0.0  ;;  %v2238_v21 = vpack.c.bf16 %v4354_v48, %v4354_v48 }
 0xeda   : > { %2235 = vadd.xlane.f32.xlu1 %v2234_v20 }
 0xedb   : > { %4074 = vmatmul.mubr.msk.bf16.vlgmr.msra.gmra.mrb[60].mxu1 %vm942_vm3, %v2238_v21  ;;  %v2608_v21 = vld [vmem:[#allocation10 + $0x4] sm:$0x3] }
 0xedc   : > { %4084 = vmatpush3.bf16.msra.mxu1 %v2358_v22  ;;  %4085 = vmatprep.mubr.msk.bf16.mxu1 %vm4651_vm0, %v4650_v0  ;;  %v2613_v22 = vsel %vm1123_vm5, %v2608_v21, 0 }
 0xedd   : > { %4095 = vmatprep.subr.bf16.mxu1 %v4650_v0 }
 0xee0   : > { %v4356_v24 = vpop.eup %4355 }
 0xee1   : > { %v2346_v25 = vsel %vm942_vm3, %v4356_v24, 0.0  ;;  %v2350_v26 = vpack.c.bf16 %v4356_v24, %v4356_v24 }
 0xee2   : > { %2347 = vadd.xlane.f32.xlu0 %v2346_v25 }
 0xee3   : > { %4086 = vmatmul.mubr.msk.bf16.vlgmr.msra.gmra.mrb[64].mxu1 %vm942_vm3, %v2350_v26 }
 0xee4   : > { %4097 = vmatprep.mubr.msk.bf16.mxu1 %vm4651_vm0, %v4650_v0  ;;  %4096 = vmatpush3.bf16.msra.mxu1 %v2454_v37 }
 0xee5   : > { %4107 = vmatprep.subr.bf16.mxu1 %v4650_v0 }
 0xeeb   : > { %2557 = vrot.lane.b32.xlu1 %v5250_v39, %s4653_s13 }
 0xeef   : > { %2656 = vrot.lane.b32.xlu1 %v5210_v10, %s4654_s14 }
 0xef8   : > { %2498 = vrot.lane.b32.xlu0 %v5229_v36, %s4653_s13  ;;  %s3755_s13 = sshll.u32 %s4742_s21, 7 }
 0xf0a   : > { %v2166_v28 = vpop.f32.mrb[56].mxu1 }
 0xf0b   : > { %v2172_v30 = vadd.f32 %v2166_v28, %v5259_v47  ;;  %v4063_v31 = vpop.f32.mrb[57].mxu1 }
 0xf0c   : > { %v2169_v32 = vpop.f32.mrb[58].mxu1 }
 0xf0d   : > { %v2180_v33 = vadd.f32 %v3727_v29, %v2172_v30  ;;  %v4064_v34 = vpop.f32.mrb[59].mxu1 }
 0xf0f   : > { %2181 = vst.msk [vmem:[%s5297_s24] sm:$0xff] %vm519_vm1, %v2180_v33 }
 0xf67   : > { %v2236_v42 = vpop.xlane.xlu1 %2235 }
 0xf68   : > { %4357 = vrcp.f32 %v2236_v42 }
 0xf6b   : > { %v2558_v49 = vpop.permute.xlu1 %2557 }
 0xf6c   : > { %v2563_v23 = vsel %vm957_vm4, %v2558_v49, 0 }
 0xf6f   : > { %v2348_v43 = vpop.xlane.xlu0 %2347  ;;  %v2657_v20 = vpop.permute.xlu1 %2656 }
 0xf70   : > { %4359 = vrcp.f32 %v2348_v43 }
 0xf72   : > { %v4358_v44 = vpop.eup %4357 }
 0xf73   : > { %v2499_v56 = vpop.permute.xlu0 %2498 }
 0xf74   : > { %v2504_v60 = vsel %vm895_vm2, %v2499_v56, 0 }
 0xf7a   : > { %v4360_v52 = vpop.eup %4359 }
 0xfae   : > { %v2279_v19 = vpop.f32.mrb[60].mxu1 }
 0xfaf   : > { %v2285_v45 = vmul.f32 %v4358_v44, %v2279_v19  ;;  %v4075_v46 = vpop.f32.mrb[61].mxu1 }
 0xfb0   : > { %v2282_v50 = vpop.f32.mrb[62].mxu1 }
 0xfb1   : > { %v2286_v51 = vpack.c.bf16 %v2285_v45, %v2285_v45  ;;  %v4076_v47 = vpop.f32.mrb[63].mxu1 }
 0xfb3   : > { %4098 = vmatmul.mubr.msk.bf16.vlgmr.msra.gmra.mrb[68].mxu1 %vm895_vm2, %v2286_v51 }
 0xfb4   : > { %4108 = vmatpush3.bf16.msra.mxu1 %v2563_v23  ;;  %4109 = vmatprep.mubr.msk.bf16.mxu1 %vm4651_vm0, %v4650_v0 }
 0xfb5   : > { %4119 = vmatprep.subr.bf16.mxu1 %v4650_v0 }
 0xfb6   : > { %v2394_v53 = vpop.f32.mrb[64].mxu1 }
 0xfb7   : > { %v2400_v54 = vmul.f32 %v4360_v52, %v2394_v53  ;;  %v4087_v55 = vpop.f32.mrb[65].mxu1 }
 0xfb8   : > { %v2397_v57 = vpop.f32.mrb[66].mxu1  ;;  %v2768_v55 = vld [vmem:[#allocation10 + $0x6] sm:$0x3] }
 0xfb9   : > { %v2401_v58 = vpack.c.bf16 %v2400_v54, %v2400_v54  ;;  %v4088_v59 = vpop.f32.mrb[67].mxu1  ;;  %v2773_v56 = vsel %vm1123_vm5, %v2768_v55, 0 }
 0xfbb   : > { %4092 = vmatmul.mubr.msk.bf16.vlgmr.msra.gmra.mrb[68].mxu0 %vm895_vm2, %v2401_v58 }
 0xfbc   : > { %4102 = vmatpush3.bf16.xpose.msra.mxu0 %v2504_v60  ;;  %4103 = vmatprep.mubr.msk.bf16.mxu0 %vm4651_vm0, %v4650_v0 }
 0xfbd   : > { %4113 = vmatprep.subr.bf16.mxu0 %v4650_v0 }
 0xfc3   : > { %4104 = vmatmul.mubr.msk.bf16.vlgmr.msra.gmra.mrb[72].mxu0 %vm895_vm2, %v2497_v41 }
 0xfc4   : > { %4115 = vmatprep.mubr.msk.bf16.mxu0 %vm4651_vm0, %v4650_v0  ;;  %4114 = vmatpush3.bf16.msra.mxu0 %v2613_v22 }
 0xfc5   : > { %4125 = vmatprep.subr.bf16.mxu0 %v4650_v0 }
0x1086   : > { %v2490_v61 = vpop.f32.mrb[68].mxu1 }
0x1087   : > { %v4099_v62 = vpop.f32.mrb[69].mxu1 }
0x1088   : > { %v2493_v63 = vpop.f32.mrb[70].mxu1 }
0x1089   : > { %v4100_v1 = vpop.f32.mrb[71].mxu1 }
0x108e   : > { %v2444_v2 = vpop.f32.mrb[68].mxu0 }
0x108f   : > { %v5318_v3 = vadd.f32 %v2490_v61, %v2444_v2  ;;  %v4093_v4 = vpop.f32.mrb[69].mxu0 }
0x1090   : > { %v2447_v5 = vpop.f32.mrb[70].mxu0 }
0x1091   : > { %v4094_v6 = vpop.f32.mrb[71].mxu0 }
0x1096   : > { %v2540_v7 = vpop.f32.mrb[72].mxu0 }
0x1097   : > { %v4105_v8 = vpop.f32.mrb[73].mxu0  ;;  %v2546_v9 = vsel %vm942_vm3, %v2540_v7, -inf }
0x1098   : > { %2547 = vmax.xlane.f32.xlu0 %v2546_v9  ;;  %v2543_v11 = vpop.f32.mrb[74].mxu0 }
0x1099   : > { %v4106_v12 = vpop.f32.mrb[75].mxu0 }
0x10ae   : > { %2658 = vrot.lane.b32.xlu0 %v5229_v36, %s4654_s14 }
0x1125   : > { %v2548_v13 = vpop.xlane.xlu0 %2547 }
0x1126   : > { %v2549_v14 = vsub.f32 %v2540_v7, %v2548_v13 }
0x1128   : > { %v2550_v15 = vmul.f32 1.442695, %v2549_v14 }
0x1129   : > { %v2659_v17 = vpop.permute.xlu0 %2658 }
0x112a   : > { %4361 = vpow2.f32 %v2550_v15  ;;  %v2664_v18 = vsel %vm895_vm2, %v2659_v17, 0 }
0x1134   : > { %v4362_v16 = vpop.eup %4361 }
0x1135   : > { %v2552_v27 = vsel %vm942_vm3, %v4362_v16, 0.0  ;;  %v2556_v48 = vpack.c.bf16 %v4362_v16, %v4362_v16 }
0x1136   : > { %2553 = vadd.xlane.f32.xlu1 %v2552_v27 }
0x1137   : > { %4110 = vmatmul.mubr.msk.bf16.vlgmr.msra.gmra.mrb[72].mxu1 %vm942_vm3, %v2556_v48 }
0x1138   : > { %4120 = vmatpush3.bf16.xpose.msra.mxu1 %v2664_v18  ;;  %4121 = vmatprep.mubr.msk.bf16.mxu1 %vm4651_vm0, %v4650_v0 }
0x1139   : > { %4131 = vmatprep.subr.bf16.mxu1 %v4650_v0 }
0x113f   : > { %4122 = vmatmul.mubr.msk.bf16.vlgmr.msra.gmra.mrb[76].mxu1 %vm895_vm2, %v2657_v20 }
0x1140   : > { %4133 = vmatprep.mubr.msk.bf16.mxu1 %vm4651_vm0, %v4650_v0  ;;  %4132 = vmatpush3.bf16.msra.mxu1 %v2773_v56 }
0x1141   : > { %4143 = vmatprep.subr.bf16.mxu1 %v4650_v0 }
0x1147   : > { %2818 = vrot.lane.b32.xlu1 %v5229_v36, %s4655_s27 }
0x114b   : > { %2816 = vrot.lane.b32.xlu1 %v5210_v10, %s4655_s27 }
0x11c3   : > { %v2554_v24 = vpop.xlane.xlu1 %2553 }
0x11c4   : > { %4363 = vrcp.f32 %v2554_v24  ;;  %v2928_v24 = vld [vmem:[#allocation10 + $0x8] sm:$0x3] }
0x11c7   : > { %v2819_v45 = vpop.permute.xlu1 %2818 }
0x11c8   : > { %v2824_v50 = vsel %vm895_vm2, %v2819_v45, 0 }
0x11cb   : > { %v2817_v51 = vpop.permute.xlu1 %2816 }
0x11ce   : > { %v4364_v25 = vpop.eup %4363 }
0x120a   : > { %v2599_v26 = vpop.f32.mrb[72].mxu1 }
0x120b   : > { %v2605_v28 = vmul.f32 %v4364_v25, %v2599_v26  ;;  %v4111_v29 = vpop.f32.mrb[73].mxu1  ;;  %v2933_v25 = vsel %vm1123_vm5, %v2928_v24, 0  ;;  %v3248_v24 = vld [vmem:[#allocation10 + $0xc] sm:$0x3] }
0x120c   : > { %v2602_v30 = vpop.f32.mrb[74].mxu1 }
0x120d   : > { %v2606_v31 = vpack.c.bf16 %v2605_v28, %v2605_v28  ;;  %v4112_v32 = vpop.f32.mrb[75].mxu1 }
0x120f   : > { %4116 = vmatmul.mubr.msk.bf16.vlgmr.msra.gmra.mrb[76].mxu0 %vm895_vm2, %v2606_v31 }
0x1210   : > { %4127 = vmatprep.mubr.msk.bf16.mxu0 %vm4651_vm0, %v4650_v0 }
0x1212   : > { %v2700_v33 = vpop.f32.mrb[76].mxu1 }
0x1213   : > { %v4123_v34 = vpop.f32.mrb[77].mxu1  ;;  %v2706_v35 = vsel %vm942_vm3, %v2700_v33, -inf }
0x1214   : > { %2707 = vmax.xlane.f32.xlu0 %v2706_v35  ;;  %v2703_v37 = vpop.f32.mrb[78].mxu1 }
0x1215   : > { %v4124_v38 = vpop.f32.mrb[79].mxu1 }
0x122a   : > { %2717 = vrot.lane.b32.xlu0 %v5250_v39, %s4654_s14 }
0x12a1   : > { %v2708_v40 = vpop.xlane.xlu0 %2707 }
0x12a2   : > { %v2709_v41 = vsub.f32 %v2700_v33, %v2708_v40 }
0x12a4   : > { %v2710_v42 = vmul.f32 1.442695, %v2709_v41 }
0x12a5   : > { %v2718_v43 = vpop.permute.xlu0 %2717 }
0x12a6   : > { %4365 = vpow2.f32 %v2710_v42  ;;  %v2723_v44 = vsel %vm957_vm4, %v2718_v43, 0 }
0x12a7   : > { %4126 = vmatpush3.bf16.msra.mxu0 %v2723_v44 }
0x12a8   : > { %4137 = vmatprep.subr.bf16.mxu0 %v4650_v0 }
0x12b0   : > { %v4366_v19 = vpop.eup %4365 }
0x12b1   : > { %v2712_v46 = vsel %vm942_vm3, %v4366_v19, 0.0  ;;  %v2716_v49 = vpack.c.bf16 %v4366_v19, %v4366_v19 }
0x12b2   : > { %2713 = vadd.xlane.f32.xlu0 %v2712_v46 }
0x12b3   : > { %4128 = vmatmul.mubr.msk.bf16.vlgmr.msra.gmra.mrb[80].mxu0 %vm942_vm3, %v2716_v49 }
0x12b4   : > { %4138 = vmatpush3.bf16.xpose.msra.mxu0 %v2824_v50  ;;  %4139 = vmatprep.mubr.msk.bf16.mxu0 %vm4651_vm0, %v4650_v0 }
0x12b5   : > { %4149 = vmatprep.subr.bf16.mxu0 %v4650_v0 }
0x12bb   : > { %4140 = vmatmul.mubr.msk.bf16.vlgmr.msra.gmra.mrb[84].mxu0 %vm895_vm2, %v2817_v51 }
0x12bc   : > { %4151 = vmatprep.mubr.msk.bf16.mxu0 %vm4651_vm0, %v4650_v0  ;;  %4150 = vmatpush3.bf16.msra.mxu0 %v2933_v25  ;;  %v3253_v25 = vsel %vm1123_vm5, %v3248_v24, 0 }
0x12bd   : > { %4161 = vmatprep.subr.bf16.mxu0 %v4650_v0 }
0x12c8   : > { %2877 = vrot.lane.b32.xlu0 %v5250_v39, %s4655_s27 }
0x12cc   : > { %2976 = vrot.lane.b32.xlu0 %v5210_v10, %s4656_s25 }
0x12e2   : > { %v2649_v47 = vpop.f32.mrb[76].mxu0 }
0x12e3   : > { %v2655_v23 = vadd.f32 %v2649_v47, %v5318_v3  ;;  %v4117_v52 = vpop.f32.mrb[77].mxu0 }
0x12e4   : > { %v2652_v53 = vpop.f32.mrb[78].mxu0 }
0x12e5   : > { %v4118_v54 = vpop.f32.mrb[79].mxu0 }
0x133f   : > { %v2714_v57 = vpop.xlane.xlu0 %2713 }
0x1340   : > { %4367 = vrcp.f32 %v2714_v57  ;;  %v3088_v57 = vld [vmem:[#allocation10 + $0xa] sm:$0x3] }
0x1343   : > { %v2878_v62 = vpop.permute.xlu0 %2877 }
0x1344   : > { %v2883_v3 = vsel %vm957_vm4, %v2878_v62, 0 }
0x1347   : > { %v2977_v27 = vpop.permute.xlu0 %2976 }
0x134a   : > { %v4368_v58 = vpop.eup %4367 }
0x1386   : > { %v2759_v59 = vpop.f32.mrb[80].mxu0 }
0x1387   : > { %v2765_v60 = vmul.f32 %v4368_v58, %v2759_v59  ;;  %v4129_v61 = vpop.f32.mrb[81].mxu0  ;;  %v3093_v58 = vsel %vm1123_vm5, %v3088_v57, 0 }
0x1388   : > { %v2762_v63 = vpop.f32.mrb[82].mxu0 }
0x1389   : > { %v2766_v1 = vpack.c.bf16 %v2765_v60, %v2765_v60  ;;  %v4130_v2 = vpop.f32.mrb[83].mxu0 }
0x138b   : > { %4134 = vmatmul.mubr.msk.bf16.vlgmr.msra.gmra.mrb[80].mxu1 %vm895_vm2, %v2766_v1 }
0x138c   : > { %4144 = vmatpush3.bf16.msra.mxu1 %v2883_v3  ;;  %4145 = vmatprep.mubr.msk.bf16.mxu1 %vm4651_vm0, %v4650_v0 }
0x138d   : > { %4155 = vmatprep.subr.bf16.mxu1 %v4650_v0 }
0x138e   : > { %v2860_v4 = vpop.f32.mrb[84].mxu0 }
0x138f   : > { %v4141_v5 = vpop.f32.mrb[85].mxu0  ;;  %v2866_v6 = vsel %vm942_vm3, %v2860_v4, -inf }
0x1390   : > { %2867 = vmax.xlane.f32.xlu1 %v2866_v6  ;;  %v2863_v7 = vpop.f32.mrb[86].mxu0 }
0x1391   : > { %v4142_v8 = vpop.f32.mrb[87].mxu0 }
0x13a1   : > { %2978 = vrot.lane.b32.xlu1 %v5229_v36, %s4656_s25 }
0x141d   : > { %v2868_v9 = vpop.xlane.xlu1 %2867 }
0x141e   : > { %v2869_v11 = vsub.f32 %v2860_v4, %v2868_v9 }
0x1420   : > { %v2870_v12 = vmul.f32 1.442695, %v2869_v11 }
0x1421   : > { %v2979_v14 = vpop.permute.xlu1 %2978 }
0x1422   : > { %4369 = vpow2.f32 %v2870_v12  ;;  %v2984_v17 = vsel %vm895_vm2, %v2979_v14, 0 }
0x142c   : > { %v4370_v13 = vpop.eup %4369 }
0x142d   : > { %v2872_v15 = vsel %vm942_vm3, %v4370_v13, 0.0  ;;  %v2876_v16 = vpack.c.bf16 %v4370_v13, %v4370_v13 }
0x142e   : > { %2873 = vadd.xlane.f32.xlu1 %v2872_v15 }
0x142f   : > { %4146 = vmatmul.mubr.msk.bf16.vlgmr.msra.gmra.mrb[84].mxu1 %vm942_vm3, %v2876_v16 }
0x1430   : > { %4156 = vmatpush3.bf16.xpose.msra.mxu1 %v2984_v17  ;;  %4157 = vmatprep.mubr.msk.bf16.mxu1 %vm4651_vm0, %v4650_v0 }
0x1431   : > { %4167 = vmatprep.subr.bf16.mxu1 %v4650_v0 }
0x1437   : > { %4158 = vmatmul.mubr.msk.bf16.vlgmr.msra.gmra.mrb[88].mxu1 %vm895_vm2, %v2977_v27 }
0x1438   : > { %4169 = vmatprep.mubr.msk.bf16.mxu1 %vm4651_vm0, %v4650_v0  ;;  %4168 = vmatpush3.bf16.msra.mxu1 %v3093_v58 }
0x1439   : > { %4179 = vmatprep.subr.bf16.mxu1 %v4650_v0 }
0x143f   : > { %3138 = vrot.lane.b32.xlu1 %v5229_v36, %s4657_s29 }
0x1443   : > { %3136 = vrot.lane.b32.xlu1 %v5210_v10, %s4657_s29 }
0x145e   : > { %v2809_v48 = vpop.f32.mrb[80].mxu1 }
0x145f   : > { %v2815_v18 = vadd.f32 %v2809_v48, %v2655_v23  ;;  %v4135_v20 = vpop.f32.mrb[81].mxu1 }
0x1460   : > { %v2812_v21 = vpop.f32.mrb[82].mxu1 }
0x1461   : > { %v4136_v22 = vpop.f32.mrb[83].mxu1 }
0x14bb   : > { %v2874_v26 = vpop.xlane.xlu1 %2873 }
0x14bc   : > { %4371 = vrcp.f32 %v2874_v26 }
0x14bf   : > { %v3139_v49 = vpop.permute.xlu1 %3138 }
0x14c0   : > { %v3144_v47 = vsel %vm895_vm2, %v3139_v49, 0 }
0x14c3   : > { %v3137_v23 = vpop.permute.xlu1 %3136 }
0x14c6   : > { %v4372_v28 = vpop.eup %4371 }
0x1502   : > { %v2919_v29 = vpop.f32.mrb[84].mxu1 }
0x1503   : > { %v2925_v30 = vmul.f32 %v4372_v28, %v2919_v29  ;;  %v4147_v31 = vpop.f32.mrb[85].mxu1 }
0x1504   : > { %v2922_v32 = vpop.f32.mrb[86].mxu1 }
0x1505   : > { %v2926_v33 = vpack.c.bf16 %v2925_v30, %v2925_v30  ;;  %v4148_v34 = vpop.f32.mrb[87].mxu1 }
0x1507   : > { %4152 = vmatmul.mubr.msk.bf16.vlgmr.msra.gmra.mrb[88].mxu0 %vm895_vm2, %v2926_v33 }
0x1508   : > { %4163 = vmatprep.mubr.msk.bf16.mxu0 %vm4651_vm0, %v4650_v0 }
0x150a   : > { %v3020_v35 = vpop.f32.mrb[88].mxu1 }
0x150b   : > { %v4159_v37 = vpop.f32.mrb[89].mxu1  ;;  %v3026_v38 = vsel %vm942_vm3, %v3020_v35, -inf }
0x150c   : > { %3027 = vmax.xlane.f32.xlu0 %v3026_v38  ;;  %v3023_v40 = vpop.f32.mrb[90].mxu1 }
0x150d   : > { %v4160_v41 = vpop.f32.mrb[91].mxu1 }
0x1522   : > { %3037 = vrot.lane.b32.xlu0 %v5250_v39, %s4656_s25  ;;  %s5565_s25 = sld [smem:[#allocation26_spill]] }
0x1599   : > { %v3028_v42 = vpop.xlane.xlu0 %3027 }
0x159a   : > { %v3029_v43 = vsub.f32 %v3020_v35, %v3028_v42 }
0x159c   : > { %v3030_v44 = vmul.f32 1.442695, %v3029_v43 }
0x159d   : > { %v3038_v19 = vpop.permute.xlu0 %3037 }
0x159e   : > { %4373 = vpow2.f32 %v3030_v44  ;;  %v3043_v45 = vsel %vm957_vm4, %v3038_v19, 0 }
0x159f   : > { %4162 = vmatpush3.bf16.msra.mxu0 %v3043_v45 }
0x15a0   : > { %4173 = vmatprep.subr.bf16.mxu0 %v4650_v0 }
0x15a8   : > { %v4374_v46 = vpop.eup %4373 }
0x15a9   : > { %v3032_v50 = vsel %vm942_vm3, %v4374_v46, 0.0  ;;  %v3036_v51 = vpack.c.bf16 %v4374_v46, %v4374_v46 }
0x15aa   : > { %3033 = vadd.xlane.f32.xlu0 %v3032_v50  ;;  %v3408_v50 = vld [vmem:[#allocation10 + $0xe] sm:$0x3] }
0x15ab   : > { %4164 = vmatmul.mubr.msk.bf16.vlgmr.msra.gmra.mrb[92].mxu0 %vm942_vm3, %v3036_v51  ;;  %v3413_v51 = vsel %vm1123_vm5, %v3408_v50, 0 }
0x15ac   : > { %4174 = vmatpush3.bf16.xpose.msra.mxu0 %v3144_v47  ;;  %4175 = vmatprep.mubr.msk.bf16.mxu0 %vm4651_vm0, %v4650_v0 }
0x15ad   : > { %4185 = vmatprep.subr.bf16.mxu0 %v4650_v0 }
0x15b3   : > { %4176 = vmatmul.mubr.msk.bf16.vlgmr.msra.gmra.mrb[96].mxu0 %vm895_vm2, %v3137_v23 }
0x15b4   : > { %4187 = vmatprep.mubr.msk.bf16.mxu0 %vm4651_vm0, %v4650_v0  ;;  %4186 = vmatpush3.bf16.msra.mxu0 %v3253_v25 }
0x15b5   : > { %4197 = vmatprep.subr.bf16.mxu0 %v4650_v0 }
0x15c0   : > { %3197 = vrot.lane.b32.xlu0 %v5250_v39, %s4657_s29  ;;  %s5444_s29 = scalar_lea.hbm %s5565_s25, %s3755_s13 }
0x15c4   : > { %3296 = vrot.lane.b32.xlu0 %v5210_v10, %s4658_s15 }
0x15da   : > { %v2969_v52 = vpop.f32.mrb[88].mxu0 }
0x15db   : > { %v2975_v53 = vadd.f32 %v2969_v52, %v2815_v18  ;;  %v4153_v54 = vpop.f32.mrb[89].mxu0 }
0x15dc   : > { %v2972_v55 = vpop.f32.mrb[90].mxu0 }
0x15dd   : > { %v4154_v56 = vpop.f32.mrb[91].mxu0 }
0x1637   : > { %v3034_v59 = vpop.xlane.xlu0 %3033 }
0x1638   : > { %4375 = vrcp.f32 %v3034_v59 }
0x163b   : > { %v3198_v1 = vpop.permute.xlu0 %3197 }
0x163c   : > { %v3203_v4 = vsel %vm957_vm4, %v3198_v1, 0 }
0x1642   : > { %v4376_v60 = vpop.eup %4375 }
0x167e   : > { %v3079_v61 = vpop.f32.mrb[92].mxu0 }
0x167f   : > { %v3085_v62 = vmul.f32 %v4376_v60, %v3079_v61  ;;  %v4165_v63 = vpop.f32.mrb[93].mxu0 }
0x1680   : > { %v3082_v2 = vpop.f32.mrb[94].mxu0 }
0x1681   : > { %v3086_v10 = vpack.c.bf16 %v3085_v62, %v3085_v62  ;;  %v4166_v3 = vpop.f32.mrb[95].mxu0 }
0x1683   : > { %4170 = vmatmul.mubr.msk.bf16.vlgmr.msra.gmra.mrb[92].mxu1 %vm895_vm2, %v3086_v10 }
0x1684   : > { %4180 = vmatpush3.bf16.msra.mxu1 %v3203_v4  ;;  %4181 = vmatprep.mubr.msk.bf16.mxu1 %vm4651_vm0, %v4650_v0 }
0x1685   : > { %4191 = vmatprep.subr.bf16.mxu1 %v4650_v0 }
0x1686   : > { %v3180_v5 = vpop.f32.mrb[96].mxu0 }
0x1687   : > { %v4177_v6 = vpop.f32.mrb[97].mxu0  ;;  %v3186_v7 = vsel %vm942_vm3, %v3180_v5, -inf }
0x1688   : > { %3187 = vmax.xlane.f32.xlu1 %v3186_v7  ;;  %v3183_v8 = vpop.f32.mrb[98].mxu0 }
0x1689   : > { %v4178_v9 = vpop.f32.mrb[99].mxu0 }
0x1699   : > { %3298 = vrot.lane.b32.xlu1 %v5229_v36, %s4658_s15  ;;  %v3297_v36 = vpop.permute.xlu0 %3296 }
0x1715   : > { %v3188_v11 = vpop.xlane.xlu1 %3187 }
0x1716   : > { %v3189_v12 = vsub.f32 %v3180_v5, %v3188_v11 }
0x1718   : > { %v3190_v13 = vmul.f32 1.442695, %v3189_v12 }
0x1719   : > { %v3299_v15 = vpop.permute.xlu1 %3298 }
0x171a   : > { %4377 = vpow2.f32 %v3190_v13  ;;  %v3304_v27 = vsel %vm895_vm2, %v3299_v15, 0 }
0x1724   : > { %v4378_v14 = vpop.eup %4377 }
0x1725   : > { %v3192_v16 = vsel %vm942_vm3, %v4378_v14, 0.0  ;;  %v3196_v17 = vpack.c.bf16 %v4378_v14, %v4378_v14 }
0x1726   : > { %3193 = vadd.xlane.f32.xlu1 %v3192_v16 }
0x1727   : > { %4182 = vmatmul.mubr.msk.bf16.vlgmr.msra.gmra.mrb[96].mxu1 %vm942_vm3, %v3196_v17 }
0x1728   : > { %4192 = vmatpush3.bf16.xpose.msra.mxu1 %v3304_v27  ;;  %4193 = vmatprep.mubr.msk.bf16.mxu1 %vm4651_vm0, %v4650_v0 }
0x1729   : > { %4203 = vmatprep.subr.bf16.mxu1 %v4650_v0 }
0x172f   : > { %4194 = vmatmul.mubr.msk.bf16.vlgmr.msra.gmra.mrb[100].mxu1 %vm895_vm2, %v3297_v36 }
0x1730   : > { %4205 = vmatprep.mubr.msk.bf16.mxu1 %vm4651_vm0, %v4650_v0  ;;  %4204 = vmatpush3.bf16.msra.mxu1 %v3413_v51 }
0x1756   : > { %v3129_v48 = vpop.f32.mrb[92].mxu1 }
0x1757   : > { %v3135_v18 = vadd.f32 %v3129_v48, %v2975_v53  ;;  %v4171_v20 = vpop.f32.mrb[93].mxu1 }
0x1758   : > { %v3132_v21 = vpop.f32.mrb[94].mxu1 }
0x1759   : > { %v4172_v22 = vpop.f32.mrb[95].mxu1 }
0x17b3   : > { %v3194_v26 = vpop.xlane.xlu1 %3193 }
0x17b4   : > { %4379 = vrcp.f32 %v3194_v26 }
0x17be   : > { %v4380_v28 = vpop.eup %4379 }
0x17fa   : > { %v3239_v29 = vpop.f32.mrb[96].mxu1 }
0x17fb   : > { %v3245_v30 = vmul.f32 %v4380_v28, %v3239_v29  ;;  %v4183_v31 = vpop.f32.mrb[97].mxu1 }
0x17fc   : > { %v3242_v32 = vpop.f32.mrb[98].mxu1 }
0x17fd   : > { %v3246_v33 = vpack.c.bf16 %v3245_v30, %v3245_v30  ;;  %v4184_v34 = vpop.f32.mrb[99].mxu1 }
0x17ff   : > { %4188 = vmatmul.mubr.msk.bf16.vlgmr.msra.gmra.mrb[100].mxu0 %vm895_vm2, %v3246_v33 }
0x1800   : > { %4199 = vmatprep.mubr.msk.bf16.mxu0 %vm4651_vm0, %v4650_v0 }
0x1802   : > { %v3340_v35 = vpop.f32.mrb[100].mxu1 }
0x1803   : > { %v4195_v37 = vpop.f32.mrb[101].mxu1  ;;  %v3346_v38 = vsel %vm942_vm3, %v3340_v35, -inf }
0x1804   : > { %3347 = vmax.xlane.f32.xlu0 %v3346_v38  ;;  %v3343_v40 = vpop.f32.mrb[102].mxu1 }
0x1805   : > { %v4196_v41 = vpop.f32.mrb[103].mxu1 }
0x181a   : > { %3357 = vrot.lane.b32.xlu0 %v5250_v39, %s4658_s15  ;;  %s3484_s15 = sshll.u32 %s5297_s24, 4  ;;  %s3485_s15 = int_to_ptr.vmem [resolvable:$true] %s3484_s15 }
0x181b   : > { %s4529_s23 = scalar_lea.vmem %s3485_s15, 128  ;;  %p4536_p0 = scmp.lt.s32.totalorder %s3485_s15, %s4534_s28 }
0x181c   : > { %p4530_p12 = scmp.ne.s32.totalorder %s3485_s15, %s4529_s23  ;;  %p4537_p8 = scmp.lt.s32.totalorder %s4535_s26, %s4529_s23 }
0x181e   : > { %p4531_p1 = pnand %p4530_p12, %p5566_p2  ;;  %p4538_p6 = por %p4537_p8, %p4536_p0 }
0x1820   : > { %p4532_p4 = pneg %p4531_p1 }
0x1822   : > { %p4539_p10 = pnand %p4538_p6, %p4532_p4 }
0x1891   : > { %v3348_v42 = vpop.xlane.xlu0 %3347 }
0x1892   : > { %v3349_v43 = vsub.f32 %v3340_v35, %v3348_v42 }
0x1894   : > { %v3350_v44 = vmul.f32 1.442695, %v3349_v43 }
0x1895   : > { %v3358_v19 = vpop.permute.xlu0 %3357 }
0x1896   : > { %4381 = vpow2.f32 %v3350_v44  ;;  %v3363_v45 = vsel %vm957_vm4, %v3358_v19, 0 }
0x1897   : > { %4198 = vmatpush3.bf16.msra.mxu0 %v3363_v45 }
0x18a0   : > { %v4382_v46 = vpop.eup %4381 }
0x18a1   : > { %v3352_v0 = vsel %vm942_vm3, %v4382_v46, 0.0  ;;  %v3356_v49 = vpack.c.bf16 %v4382_v46, %v4382_v46 }
0x18a2   : > { %3353 = vadd.xlane.f32.xlu1 %v3352_v0 }
0x18a3   : > { %4200 = vmatmul.mubr.msk.bf16.vlgmr.msra.gmra.mrb[104].mxu0 %vm942_vm3, %v3356_v49 }
0x18d2   : > { %v3289_v39 = vpop.f32.mrb[100].mxu0 }
0x18d3   : > { %v3295_v47 = vadd.f32 %v3289_v39, %v3135_v18  ;;  %v4189_v23 = vpop.f32.mrb[101].mxu0 }
0x18d4   : > { %v3292_v52 = vpop.f32.mrb[102].mxu0 }
0x18d5   : > { %v4190_v53 = vpop.f32.mrb[103].mxu0 }
0x192f   : > { %v3354_v54 = vpop.xlane.xlu1 %3353 }
0x1930   : > { %4383 = vrcp.f32 %v3354_v54 }
0x193a   : > { %v4384_v55 = vpop.eup %4383 }
0x1976   : > { %v3399_v56 = vpop.f32.mrb[104].mxu0 }
0x1977   : > { %v3405_v57 = vmul.f32 %v4384_v55, %v3399_v56  ;;  %v4201_v58 = vpop.f32.mrb[105].mxu0 }
0x1978   : > { %v3402_v59 = vpop.f32.mrb[106].mxu0 }
0x1979   : > { %v3406_v60 = vpack.c.bf16 %v3405_v57, %v3405_v57  ;;  %v4202_v61 = vpop.f32.mrb[107].mxu0 }
0x197b   : > { %4206 = vmatmul.mubr.msk.bf16.vlgmr.msra.gmra.mrb[104].mxu1 %vm895_vm2, %v3406_v60 }
0x197c   : > { %4542 = shalt.err (!%p4539_p10)
}
0x197d   : > { %s4543_s30 = scalar_lea.hbm %s5444_s29, 128  ;;  %s4547_s12 = scalar_lea.hbm %s5565_s25, 256 }
0x197e   : > { %p4544_p13 = scmp.ne.s32.totalorder %s5444_s29, %s4543_s30  ;;  %p4548_p11 = scmp.lt.u32.totalorder %s5444_s29, %s5565_s25 }
0x197f   : > { %p4549_p3 = scmp.lt.u32.totalorder %s4547_s12, %s4543_s30  ;;  %p4551_p12 = scmp.lt.u32.totalorder %s4543_s30, %s5444_s29 }
0x1980   : > { %p4545_p9 = pnand %p4544_p13, %p5566_p2 }
0x1981   : > { %p4550_p7 = por %p4549_p3, %p4548_p11 }
0x1982   : > { %p4546_p5 = pneg %p4545_p9 }
0x1983   : > { %p4552_p1 = por %p4551_p12, %p4550_p7 }
0x1985   : > { %p4553_p4 = pnand %p4552_p1, %p4546_p5 }
0x1987   : > { %4556 = shalt.err (!%p4553_p4)
}
0x1988   : > { %4225 = dma.vmem_to_hbm [thread:$0]  (%p5566_p2), %s3485_s15, 128, %s5444_s29, %s3466_s10  }
0x1989   : > { %s5567_s16 = sld [smem:[#allocation25_spill]]  ;;  %s492_s28 = scalar_lea.vmem [#allocation12], %s3666_s4 }
0x198a   : > { %s3497_s26 = sshll.u32 %s492_s28, 4  ;;  %s5568_s8 = sld [smem:[#allocation27_spill]]  ;;  %s5477_s26 = int_to_ptr.vmem [resolvable:$true] %s3497_s26 }
0x198b   : > { %s3471_s4 = scalar_lea.sflag [#allocation13], %s4940_s2  ;;  %s4557_s29 = scalar_lea.vmem %s5477_s26, 128 }
0x198c   : > { %p4558_p0 = scmp.ne.s32.totalorder %s5477_s26, %s4557_s29  ;;  %s4660_s15 = smov [#allocation12]  }
0x198d   : > { %s4561_s21 = sshll.u32 %s4660_s15, 4  ;;  %s4562_s21 = int_to_ptr.vmem [resolvable:$false] %s4561_s21 }
0x198e   : > { %p4559_p8 = pnand %p4558_p0, %p5566_p2  ;;  %s4563_s10 = scalar_lea.vmem %s4562_s21, 256 }
0x198f   : > { %v3752_v63 = vld [vmem:[%s5567_s16] ss:$0 sm:$0xff]  ;;  %p4564_p10 = scmp.lt.s32.totalorder %s5477_s26, %s4562_s21  ;;  %p4565_p13 = scmp.lt.s32.totalorder %s4563_s10, %s4557_s29 }
0x1990   : > { %s5475_s12 = scalar_lea.hbm %s5568_s8, %s3755_s13  ;;  %p4560_p6 = pneg %p4559_p8 }
0x1991   : > { %p4566_p9 = por %p4565_p13, %p4564_p10 }
0x1993   : > { %p4567_p5 = pnand %p4566_p9, %p4560_p6 }
0x1a4e   : > { %v3449_v62 = vpop.f32.mrb[104].mxu1 }
0x1a4f   : > { %v3455_v1 = vadd.f32 %v3449_v62, %v3295_v47  ;;  %v4207_v2 = vpop.f32.mrb[105].mxu1 }
0x1a50   : > { %v3452_v10 = vpop.f32.mrb[106].mxu1 }
0x1a51   : > { %v3463_v3 = vadd.f32 %v3752_v63, %v3455_v1  ;;  %v4208_v4 = vpop.f32.mrb[107].mxu1 }
0x1a53   : > { %3464 = vst.msk [vmem:[%s492_s28] sm:$0xff] %vm519_vm1, %v3463_v3 }
0x1a54   : > { %4570 = shalt.err (!%p4567_p5)
}
0x1a55   : > { %s4571_s2 = scalar_lea.hbm %s5475_s12, 128  ;;  %s4575_s14 = scalar_lea.hbm %s5568_s8, 256 }
0x1a56   : > { %p4572_p11 = scmp.ne.s32.totalorder %s5475_s12, %s4571_s2  ;;  %p4576_p12 = scmp.lt.u32.totalorder %s5475_s12, %s5568_s8 }
0x1a57   : > { %p4577_p1 = scmp.lt.u32.totalorder %s4575_s14, %s4571_s2  ;;  %p4579_p0 = scmp.lt.u32.totalorder %s4571_s2, %s5475_s12 }
0x1a58   : > { %p4573_p3 = pnand %p4572_p11, %p5566_p2 }
0x1a59   : > { %p4578_p4 = por %p4577_p1, %p4576_p12 }
0x1a5a   : > { %p4574_p7 = pneg %p4573_p3 }
0x1a5b   : > { %p4580_p8 = por %p4579_p0, %p4578_p4 }
0x1a5d   : > { %p4581_p6 = pnand %p4580_p8, %p4574_p7 }
0x1a5f   : > { %4584 = shalt.err (!%p4581_p6)
}
0x1a60   : > { %4226 = dma.vmem_to_hbm [thread:$0]  (%p5566_p2), %s5477_s26, 128, %s5475_s12, %s3471_s4  }
0x1a61 PF: > { %s5569_s16 = sld [smem:[#allocation20_spill]]  ;;  %s5570_s28 = sld [smem:[#allocation21_spill]] }
0x1a62   : > { %p5572_p13 = scmp.ge.s32.totalorder %s4639_s20, 2 }
0x1a67   : > { %s3509_s30 = sand.u32 1, %s5569_s16   ;;  %p5571_p10 = scmp.ne.s32.totalorder %s5570_s28, 0 }
0x1a68   : > { %s3510_s11 = scalar_lea.sflag [#allocation4], %s3509_s30 }
0x1a69   : > { %p4247_p9 = pnand %p5572_p13, %p5571_p10 }
0x1a6b   : > { %4618 = dma.done.wait (!%p4247_p9), %s3510_s11, 128  }
0x1a6c   : > { %4620 = vsyncadd (!%p4247_p9), %s3510_s11, 4294967168  ;;  %s3519_s29 = scalar_lea.sflag [#allocation13], %s3509_s30 }
0x1a6d   : > { %4622 = dma.done.wait (!%p4247_p9), %s3519_s29, 128  }
0x1a6e   : > { %4624 = vsyncadd (!%p4247_p9), %s3519_s29, 4294967168  ;;  %s5573_s22 = smov %s4862_s17  ;;  %p32_p2 = scmp.ge.s32.totalorder %s4852_s9, 4  }
0x1a6f   : > { %s5574_s17 = smov %s4631_s18  ;;  %s5575_s18 = smov %s4635_s19 }
0x1a70   : > { %s5576_s19 = smov %s5573_s22  ;;  %s5577_s20 = smov %s4852_s9 }
0x1a71   :  { %34 = sbr.rel (!%p32_p2) target bundleno = 17 (0x11), region = 169 }
0x1a78   :  { %3524 = vsyncpa [#allocation3], 1 }
0x1a79   :  { %3526 = vsyncpa [#allocation3 + $0x1], 1 }
0x1a7a   :  { %3527 = vsyncpa [#allocation6], 1 }
0x1a7b   :  { %3529 = vsyncpa [#allocation6 + $0x1], 1 }
0x1a7c   :  { %3530 = vsyncpa [#allocation9], 1 }
0x1a7d   :  { %3531 = vsyncpa [#allocation4], 1 }
0x1a7e   :  { %3533 = vsyncpa [#allocation4 + $0x1], 1 }
0x1a7f   :  { %3534 = vsyncpa [#allocation13], 1 }
0x1a80   :  { %3536 = vsyncpa [#allocation13 + $0x1], 1 }

</bundles_post_ra>
